<compile_context>
chip_gen: v7x
topology: tpu7x:2x2x1
jax: 0.10.0
libtpu: 0.0.40
codegen_flags: <defaults>
</compile_context>

<pallas_src>
import functools
import math

import jax
import jax.numpy as jnp
from jax.experimental import pallas as pl
from jax.experimental.pallas import tpu as pltpu

LN_EPS = 1e-5


def _hw_config():
    """Generation-aware VMEM / tile sizing (v5e/v6e: 128 MiB VMEM, v7x: 64 MiB)."""
    vmem_cap = 128 * 1024 * 1024
    try:
        info = pltpu.get_tpu_info()
        vmem_cap = int(getattr(info, "vmem_capacity_bytes", vmem_cap) or vmem_cap)
    except Exception:
        pass
    if vmem_cap >= 96 * 1024 * 1024:   # v5e / v6e (128 MiB physical VMEM)
        return {"vmem_limit": 64 * 1024 * 1024, "ffn_row_tile": 512,
                "mha_row_target": 512}
    # v7x (64 MiB per TensorCore): smaller tiles, tighter scoped-VMEM cap.
    return {"vmem_limit": 40 * 1024 * 1024, "ffn_row_tile": 256,
            "mha_row_target": 256}


_HW = _hw_config()


def _layer_norm(z, gamma, beta):
    # z: (rows, E) f32, gamma/beta: (1, E) f32
    mean = jnp.mean(z, axis=-1, keepdims=True)
    var = jnp.mean(jnp.square(z - mean), axis=-1, keepdims=True)
    return (z - mean) * jax.lax.rsqrt(var + LN_EPS) * gamma + beta


# --------------------------------------------------------------------------
# Shared fused MHA core (runs entirely on VMEM-resident arrays for one tile).
# --------------------------------------------------------------------------
def _mha_core(q_in, k_in, v_in, residual, wq, bq, wk, bk, wv, bv, wo, bo,
              gamma, beta, nhead, cd):
    B, L, E = q_in.shape
    S = k_in.shape[1]
    Dh = E // nhead
    approx = cd == jnp.bfloat16   # EUP approx reciprocal only on the bf16 path

    rows_q = B * L
    rows_k = B * S

    # Input projections as single (rows, E) @ (E, E) matmuls over the whole
    # batch tile.  1/sqrt(Dh) is already folded into wq/bq (prepare_params).
    qp = jnp.dot(q_in.reshape(rows_q, E).astype(cd), wq,
                 preferred_element_type=jnp.float32) + bq
    kp = jnp.dot(k_in.reshape(rows_k, E).astype(cd), wk,
                 preferred_element_type=jnp.float32) + bk
    vp = jnp.dot(v_in.reshape(rows_k, E).astype(cd), wv,
                 preferred_element_type=jnp.float32) + bv

    # Cast to the compute dtype once; softmax statistics stay in f32.
    q3 = qp.reshape(B, L, E).astype(cd)
    k3 = kp.reshape(B, S, E).astype(cd)
    v3 = vp.reshape(B, S, E).astype(cd)

    # Per-head attention (nhead is a small static count) with batched-over-B
    # einsums; results are concatenated once into an (rows, E) slab.
    # TODO(synk): for very long memory sequences S, tile K/V with an online
    # softmax instead of materializing the full (B, L, S) score block.
    heads = []
    for h in range(nhead):
        sl = slice(h * Dh, (h + 1) * Dh)
        s = jnp.einsum("bqd,bkd->bqk", q3[..., sl], k3[..., sl],
                       preferred_element_type=jnp.float32)      # (B, L, S) f32
        s = s - jnp.max(s, axis=-1, keepdims=True)
        p = jnp.exp(s)
        inv = pl.reciprocal(jnp.sum(p, axis=-1, keepdims=True), approx=approx)
        o_h = jnp.einsum("bqk,bkd->bqd", p.astype(cd), v3[..., sl],
                         preferred_element_type=jnp.float32) * inv
        heads.append(o_h)

    attn = jnp.concatenate(heads, axis=-1).reshape(rows_q, E)   # (rows, E) f32

    # Single E-contraction out_proj matmul (not decomposed per head).
    proj = jnp.dot(attn.astype(cd), wo, preferred_element_type=jnp.float32)

    z = residual.reshape(rows_q, E) + proj + bo                 # residual + bias (f32)
    return _layer_norm(z, gamma, beta).reshape(B, L, E)


# --------------------------------------------------------------------------
# Kernel entry points: self-attn (2 unique activation tensors) and cross-attn
# (4 unique activation tensors).  Pos-adds are fused inside the kernels.
# --------------------------------------------------------------------------
def _self_attn_block_kernel(tgt_ref, qpos_ref,
                            wq_ref, bq_ref, wk_ref, bk_ref, wv_ref, bv_ref,
                            wo_ref, bo_ref, g_ref, b_ref, o_ref,
                            *, nhead, compute_dtype):
    tgt = tgt_ref[...]                     # (B, L, E) f32
    qk = tgt + qpos_ref[...]               # q == k == tgt + query_pos; v == residual == tgt
    o_ref[...] = _mha_core(qk, qk, tgt, tgt,
                           wq_ref[...], bq_ref[...], wk_ref[...], bk_ref[...],
                           wv_ref[...], bv_ref[...], wo_ref[...], bo_ref[...],
                           g_ref[...], b_ref[...], nhead, compute_dtype)


def _cross_attn_block_kernel(tgt_ref, qpos_ref, mem_ref, pos_ref,
                             wq_ref, bq_ref, wk_ref, bk_ref, wv_ref, bv_ref,
                             wo_ref, bo_ref, g_ref, b_ref, o_ref,
                             *, nhead, compute_dtype):
    tgt = tgt_ref[...]                     # (B, L, E) f32
    mem = mem_ref[...]                     # (B, S, E) f32
    q = tgt + qpos_ref[...]
    k = mem + pos_ref[...]
    o_ref[...] = _mha_core(q, k, mem, tgt,
                           wq_ref[...], bq_ref[...], wk_ref[...], bk_ref[...],
                           wv_ref[...], bv_ref[...], wo_ref[...], bo_ref[...],
                           g_ref[...], b_ref[...], nhead, compute_dtype)


# --------------------------------------------------------------------------
# pallas_call wrappers (grid over batch tiles).
# --------------------------------------------------------------------------
# TODO(synk): for very large E / dim_feedforward on v7x, mark the grid-invariant
# weight BlockSpecs with pipeline_mode=pl.Buffered(1) to stop Pallas from
# double-buffering weights that are fetched once.
def _self_attn_block(tgt_b, qpos_b, p, gamma, beta, nhead, compute_dtype, b_tile):
    N, L, E = tgt_b.shape
    act = pl.BlockSpec((b_tile, L, E), lambda n: (n, 0, 0))
    w_sp = pl.BlockSpec((E, E), lambda n: (0, 0))
    vec = pl.BlockSpec((1, E), lambda n: (0, 0))
    kernel = functools.partial(_self_attn_block_kernel, nhead=nhead,
                               compute_dtype=compute_dtype)
    return pl.pallas_call(
        kernel,
        out_shape=jax.ShapeDtypeStruct((N, L, E), jnp.float32),
        grid=(pl.cdiv(N, b_tile),),
        in_specs=[act, act,
                  w_sp, vec, w_sp, vec, w_sp, vec, w_sp, vec, vec, vec],
        out_specs=act,
        compiler_params=pltpu.CompilerParams(
            dimension_semantics=("parallel",),
            vmem_limit_bytes=_HW["vmem_limit"]),
    )(tgt_b, qpos_b,
      p["wq_t"], p["bq"], p["wk_t"], p["bk"], p["wv_t"], p["bv"],
      p["wo_t"], p["bo"], gamma, beta)


def _cross_attn_block(tgt_b, qpos_b, mem_b, pos_b, p, gamma, beta, nhead,
                      compute_dtype, b_tile):
    N, L, E = tgt_b.shape
    S = mem_b.shape[1]
    act_l = pl.BlockSpec((b_tile, L, E), lambda n: (n, 0, 0))
    act_s = pl.BlockSpec((b_tile, S, E), lambda n: (n, 0, 0))
    w_sp = pl.BlockSpec((E, E), lambda n: (0, 0))
    vec = pl.BlockSpec((1, E), lambda n: (0, 0))
    kernel = functools.partial(_cross_attn_block_kernel, nhead=nhead,
                               compute_dtype=compute_dtype)
    return pl.pallas_call(
        kernel,
        out_shape=jax.ShapeDtypeStruct((N, L, E), jnp.float32),
        grid=(pl.cdiv(N, b_tile),),
        in_specs=[act_l, act_l, act_s, act_s,
                  w_sp, vec, w_sp, vec, w_sp, vec, w_sp, vec, vec, vec],
        out_specs=act_l,
        compiler_params=pltpu.CompilerParams(
            dimension_semantics=("parallel",),
            vmem_limit_bytes=_HW["vmem_limit"]),
    )(tgt_b, qpos_b, mem_b, pos_b,
      p["wq_t"], p["bq"], p["wk_t"], p["bk"], p["wv_t"], p["bv"],
      p["wo_t"], p["bo"], gamma, beta)


# --------------------------------------------------------------------------
# Fused FFN block kernel: linear1 -> relu -> linear2 + residual add + LN.
# Grid over row tiles of the flattened (N*L, E) residual stream.
# --------------------------------------------------------------------------
def _ffn_block_kernel(x_ref, w1_ref, b1_ref, w2_ref, b2_ref, g_ref, b_ref, o_ref,
                      *, compute_dtype):
    cd = compute_dtype
    x = x_ref[...]                                            # (bm, E) f32, also residual
    h = jnp.dot(x.astype(cd), w1_ref[...],
                preferred_element_type=jnp.float32) + b1_ref[...]
    h = jnp.maximum(h, 0.0)
    y = jnp.dot(h.astype(cd), w2_ref[...],
                preferred_element_type=jnp.float32) + b2_ref[...]
    o_ref[...] = _layer_norm(x + y, g_ref[...], b_ref[...])


def _ffn_block(x2, p, gamma, beta, compute_dtype, row_tile):
    M, E = x2.shape
    dff = p["w1_t"].shape[1]
    bm = M if M <= row_tile else row_tile                     # row_tile is a multiple of 8
    grid = (pl.cdiv(M, bm),)

    kernel = functools.partial(_ffn_block_kernel, compute_dtype=compute_dtype)
    return pl.pallas_call(
        kernel,
        out_shape=jax.ShapeDtypeStruct((M, E), jnp.float32),
        grid=grid,
        in_specs=[pl.BlockSpec((bm, E), lambda i: (i, 0)),
                  pl.BlockSpec((E, dff), lambda i: (0, 0)),
                  pl.BlockSpec((1, dff), lambda i: (0, 0)),
                  pl.BlockSpec((dff, E), lambda i: (0, 0)),
                  pl.BlockSpec((1, E), lambda i: (0, 0)),
                  pl.BlockSpec((1, E), lambda i: (0, 0)),
                  pl.BlockSpec((1, E), lambda i: (0, 0))],
        out_specs=pl.BlockSpec((bm, E), lambda i: (i, 0)),
        compiler_params=pltpu.CompilerParams(
            dimension_semantics=("parallel",),
            vmem_limit_bytes=_HW["vmem_limit"]),
    )(x2, p["w1_t"], p["b1"], p["w2_t"], p["b2"], gamma, beta)


# --------------------------------------------------------------------------
# Parameter preparation (done ONCE, outside the hot path): pre-transpose all
# weights to (in, out) layout, fold the 1/sqrt(Dh) q-scaling into wq/bq, cast
# matmul weights to the compute dtype, and pre-reshape biases / LN params.
# --------------------------------------------------------------------------
def prepare_params(params, nhead, compute_dtype=jnp.bfloat16):
    cd = compute_dtype

    def prep_mha(p):
        wq, wk, wv = jnp.split(p["in_proj_weight"], 3, axis=0)
        bq, bk, bv = jnp.split(p["in_proj_bias"], 3)
        E = wq.shape[0]
        scale = 1.0 / math.sqrt(E // nhead)        # PyTorch scales q incl. bias
        return {
            "wq_t": (wq.T * scale).astype(cd),
            "wk_t": wk.T.astype(cd), "wv_t": wv.T.astype(cd),
            "bq": (bq * scale).reshape(1, -1),
            "bk": bk.reshape(1, -1), "bv": bv.reshape(1, -1),
            "wo_t": p["out_proj_weight"].T.astype(cd),
            "bo": p["out_proj_bias"].reshape(1, -1),
        }

    return {
        "self_attn": prep_mha(params["self_attn"]),
        "multihead_attn": prep_mha(params["multihead_attn"]),
        "w1_t": params["linear1_w"].T.astype(cd),
        "b1": params["linear1_b"].reshape(1, -1),
        "w2_t": params["linear2_w"].T.astype(cd),
        "b2": params["linear2_b"].reshape(1, -1),
        "norm1_w": params["norm1_w"].reshape(1, -1), "norm1_b": params["norm1_b"].reshape(1, -1),
        "norm2_w": params["norm2_w"].reshape(1, -1), "norm2_b": params["norm2_b"].reshape(1, -1),
        "norm3_w": params["norm3_w"].reshape(1, -1), "norm3_b": params["norm3_b"].reshape(1, -1),
    }


def _pick_batch_tile(N, L, row_target):
    """Pick how many batch elements share one MHA grid step (B_tile*L ~ row_target)."""
    bt = max(1, min(N, row_target // max(L, 1)))
    # On v7x (2 TensorCores) prefer >=2 grid steps, but only when splitting the
    # batch still leaves a reasonably full MXU M dimension.
    if bt >= N and N >= 2 and (pl.cdiv(N, 2) * L) >= 128:
        bt = pl.cdiv(N, 2)
    return bt


# --------------------------------------------------------------------------
# Decoder layer forward (forward_post, normalize_before=False, eval mode).
# --------------------------------------------------------------------------
# TODO(synk): attn_mask / key_padding_mask paths are not implemented (None here).
def _decoder_layer(tgt, memory, prepared, nhead, pos=None, query_pos=None,
                   compute_dtype=jnp.bfloat16):
    L, N, E = tgt.shape

    # Single layout change at the layer boundary: go batch-major (N, seq, E) so
    # all inter-kernel traffic is lane-dense (E minor) with no relayouts between
    # the three fused kernels.
    bmaj = lambda x: jnp.transpose(x, (1, 0, 2))
    tgt_b = bmaj(tgt)
    mem_b = bmaj(memory)
    # TODO(synk): when pos / query_pos are None PyTorch skips the add; we pass
    # zeros rather than adding separate no-pos kernel variants.
    qpos_b = bmaj(query_pos) if query_pos is not None else jnp.zeros_like(tgt_b)
    pos_b = bmaj(pos) if pos is not None else jnp.zeros_like(mem_b)

    b_tile = _pick_batch_tile(N, L, _HW["mha_row_target"])

    # self-attention block (dropout1 = identity in eval mode)
    tgt_b = _self_attn_block(tgt_b, qpos_b, prepared["self_attn"],
                             prepared["norm1_w"], prepared["norm1_b"],
                             nhead, compute_dtype, b_tile)

    # cross-attention block (dropout2 = identity)
    tgt_b = _cross_attn_block(tgt_b, qpos_b, mem_b, pos_b,
                              prepared["multihead_attn"],
                              prepared["norm2_w"], prepared["norm2_b"],
                              nhead, compute_dtype, b_tile)

    # feed-forward block (dropout / dropout3 = identity)
    x2 = tgt_b.reshape(N * L, E)
    x2 = _ffn_block(x2, prepared, prepared["norm3_w"], prepared["norm3_b"],
                    compute_dtype, _HW["ffn_row_tile"])
    return jnp.transpose(x2.reshape(N, L, E), (1, 0, 2))


transformer_decoder_layer = jax.jit(_decoder_layer,
                                    static_argnames=("nhead", "compute_dtype"))


# ------------------------------ pure-JAX reference ---------------------------
def reference_decoder_layer(tgt, memory, params, nhead, pos, query_pos):
    def mha(q, k, v, p):
        L, N, E = q.shape
        S = k.shape[0]
        Dh = E // nhead
        wq, wk, wv = jnp.split(p["in_proj_weight"], 3, axis=0)
        bq, bk, bv = jnp.split(p["in_proj_bias"], 3)
        qp = q.reshape(L * N, E) @ wq.T + bq
        kp = k.reshape(S * N, E) @ wk.T + bk
        vp = v.reshape(S * N, E) @ wv.T + bv
        qh = qp.reshape(L, N * nhead, Dh).transpose(1, 0, 2) * (Dh ** -0.5)
        kh = kp.reshape(S, N * nhead, Dh).transpose(1, 0, 2)
        vh = vp.reshape(S, N * nhead, Dh).transpose(1, 0, 2)
        a = jax.nn.softmax(jnp.einsum("bld,bsd->bls", qh, kh), axis=-1)
        o = jnp.einsum("bls,bsd->bld", a, vh)
        o = o.transpose(1, 0, 2).reshape(L * N, E) @ p["out_proj_weight"].T + p["out_proj_bias"]
        return o.reshape(L, N, E)

    def ln(x, g, b):
        m = x.mean(-1, keepdims=True)
        v = ((x - m) ** 2).mean(-1, keepdims=True)
        return (x - m) / jnp.sqrt(v + LN_EPS) * g + b

    q = tgt + query_pos
    t = ln(tgt + mha(q, q, tgt, params["self_attn"]), params["norm1_w"], params["norm1_b"])
    t2 = mha(t + query_pos, memory + pos, memory, params["multihead_attn"])
    t = ln(t + t2, params["norm2_w"], params["norm2_b"])
    h = jnp.maximum(t @ params["linear1_w"].T + params["linear1_b"], 0.0)
    t2 = h @ params["linear2_w"].T + params["linear2_b"]
    return ln(t + t2, params["norm3_w"], params["norm3_b"])


# ------------------------------ params / main -------------------------------
def init_params(key, d_model, dim_feedforward):
    ks = jax.random.split(key, 12)

    def w(k, shape, scale=0.05):
        return scale * jax.random.normal(k, shape, jnp.float32)

    def mha_params(k1, k2):
        return {
            "in_proj_weight": w(k1, (3 * d_model, d_model)),
            "in_proj_bias": w(k2, (3 * d_model,)),
            "out_proj_weight": w(jax.random.fold_in(k1, 7), (d_model, d_model)),
            "out_proj_bias": w(jax.random.fold_in(k2, 7), (d_model,)),
        }

    return {
        "self_attn": mha_params(ks[0], ks[1]),
        "multihead_attn": mha_params(ks[2], ks[3]),
        "linear1_w": w(ks[4], (dim_feedforward, d_model)),
        "linear1_b": w(ks[5], (dim_feedforward,)),
        "linear2_w": w(ks[6], (d_model, dim_feedforward)),
        "linear2_b": w(ks[7], (d_model,)),
        "norm1_w": jnp.ones((d_model,), jnp.float32),
        "norm1_b": jnp.zeros((d_model,), jnp.float32),
        "norm2_w": jnp.ones((d_model,), jnp.float32),
        "norm2_b": jnp.zeros((d_model,), jnp.float32),
        "norm3_w": jnp.ones((d_model,), jnp.float32),
        "norm3_b": jnp.zeros((d_model,), jnp.float32),
    }


if __name__ == "__main__":
    d_model, nhead, dim_feedforward = 32, 4, 64
    L_tgt, S_mem, batch = 8, 16, 2

    root = jax.random.PRNGKey(0)
    k_tgt, k_mem, k_qpos, k_pos, k_par = jax.random.split(root, 5)

    tgt = jax.random.normal(k_tgt, (L_tgt, batch, d_model), jnp.float32)
    memory = jax.random.normal(k_mem, (S_mem, batch, d_model), jnp.float32)
    query_pos = jax.random.normal(k_qpos, (L_tgt, batch, d_model), jnp.float32)
    pos = jax.random.normal(k_pos, (S_mem, batch, d_model), jnp.float32)
    params = init_params(k_par, d_model, dim_feedforward)

    ref = reference_decoder_layer(tgt, memory, params, nhead, pos, query_pos)

    # f32 compute path: tight semantics check against the pure-JAX reference.
    out_f32 = transformer_decoder_layer(
        tgt, memory, prepare_params(params, nhead, jnp.float32), nhead=nhead,
        pos=pos, query_pos=query_pos, compute_dtype=jnp.float32)
    out_f32 = jax.block_until_ready(out_f32)
    assert out_f32.shape == (L_tgt, batch, d_model)
    assert jnp.allclose(out_f32, ref, rtol=1e-3, atol=1e-3), "f32 mismatch vs reference"

    # bf16 matmul-operand path (MXU-friendly on v6e/v7x); f32 accumulation,
    # f32 softmax / LayerNorm statistics.
    out_bf16 = transformer_decoder_layer(
        tgt, memory, prepare_params(params, nhead, jnp.bfloat16), nhead=nhead,
        pos=pos, query_pos=query_pos, compute_dtype=jnp.bfloat16)
    out_bf16 = jax.block_until_ready(out_bf16)
    assert jnp.allclose(out_bf16, ref, rtol=5e-2, atol=5e-2), "bf16 mismatch vs reference"

    print("KERNEL_OK")
</pallas_src>

<mosaic_0001>
module attributes {stable_mosaic.version = 11 : i64} {
  func.func @_cross_attn_block_kernel(%arg0: i32, %arg1: memref<2x8x32xf32, #tpu.memory_space<vmem>>, %arg2: memref<2x8x32xf32, #tpu.memory_space<vmem>>, %arg3: memref<2x16x32xf32, #tpu.memory_space<vmem>>, %arg4: memref<2x16x32xf32, #tpu.memory_space<vmem>>, %arg5: memref<32x32xf32, #tpu.memory_space<vmem>>, %arg6: memref<1x32xf32, #tpu.memory_space<vmem>>, %arg7: memref<32x32xf32, #tpu.memory_space<vmem>>, %arg8: memref<1x32xf32, #tpu.memory_space<vmem>>, %arg9: memref<32x32xf32, #tpu.memory_space<vmem>>, %arg10: memref<1x32xf32, #tpu.memory_space<vmem>>, %arg11: memref<32x32xf32, #tpu.memory_space<vmem>>, %arg12: memref<1x32xf32, #tpu.memory_space<vmem>>, %arg13: memref<1x32xf32, #tpu.memory_space<vmem>>, %arg14: memref<1x32xf32, #tpu.memory_space<vmem>>, %arg15: memref<2x8x32xf32, #tpu.memory_space<vmem>>) attributes {dimension_semantics = [#tpu.dimension_semantics<parallel>], iteration_bounds = array<i64: 1>, scalar_prefetch = 0 : i64, scratch_operands = 0 : i64, tpu.core_type = #tpu.core_type<tc>, window_params = [{transform_indices = @transform_0, window_bounds = array<i64: 2, 8, 32>}, {transform_indices = @transform_1, window_bounds = array<i64: 2, 8, 32>}, {transform_indices = @transform_2, window_bounds = array<i64: 2, 16, 32>}, {transform_indices = @transform_3, window_bounds = array<i64: 2, 16, 32>}, {pipeline_mode = #tpu.pipeline_mode<synchronous>, transform_indices = @transform_4, window_bounds = array<i64: 32, 32>}, {pipeline_mode = #tpu.pipeline_mode<synchronous>, transform_indices = @transform_5, window_bounds = array<i64: 1, 32>}, {pipeline_mode = #tpu.pipeline_mode<synchronous>, transform_indices = @transform_6, window_bounds = array<i64: 32, 32>}, {pipeline_mode = #tpu.pipeline_mode<synchronous>, transform_indices = @transform_7, window_bounds = array<i64: 1, 32>}, {pipeline_mode = #tpu.pipeline_mode<synchronous>, transform_indices = @transform_8, window_bounds = array<i64: 32, 32>}, {pipeline_mode = #tpu.pipeline_mode<synchronous>, transform_indices = @transform_9, window_bounds = array<i64: 1, 32>}, {pipeline_mode = #tpu.pipeline_mode<synchronous>, transform_indices = @transform_10, window_bounds = array<i64: 32, 32>}, {pipeline_mode = #tpu.pipeline_mode<synchronous>, transform_indices = @transform_11, window_bounds = array<i64: 1, 32>}, {pipeline_mode = #tpu.pipeline_mode<synchronous>, transform_indices = @transform_12, window_bounds = array<i64: 1, 32>}, {pipeline_mode = #tpu.pipeline_mode<synchronous>, transform_indices = @transform_13, window_bounds = array<i64: 1, 32>}, {transform_indices = @transform_14, window_bounds = array<i64: 2, 8, 32>}]} {
    %c0 = arith.constant 0 : index
    %c0_0 = arith.constant 0 : index
    %c0_1 = arith.constant 0 : index
    %0 = vector.load %arg1[%c0, %c0_0, %c0_1] : memref<2x8x32xf32, #tpu.memory_space<vmem>>, vector<2x8x32xf32>
    %c0_2 = arith.constant 0 : index
    %c0_3 = arith.constant 0 : index
    %c0_4 = arith.constant 0 : index
    %1 = vector.load %arg3[%c0_2, %c0_3, %c0_4] : memref<2x16x32xf32, #tpu.memory_space<vmem>>, vector<2x16x32xf32>
    %c0_5 = arith.constant 0 : index
    %c0_6 = arith.constant 0 : index
    %c0_7 = arith.constant 0 : index
    %2 = vector.load %arg2[%c0_5, %c0_6, %c0_7] : memref<2x8x32xf32, #tpu.memory_space<vmem>>, vector<2x8x32xf32>
    %3 = arith.addf %0, %2 : vector<2x8x32xf32>
    %c0_8 = arith.constant 0 : index
    %c0_9 = arith.constant 0 : index
    %c0_10 = arith.constant 0 : index
    %4 = vector.load %arg4[%c0_8, %c0_9, %c0_10] : memref<2x16x32xf32, #tpu.memory_space<vmem>>, vector<2x16x32xf32>
    %5 = arith.addf %1, %4 : vector<2x16x32xf32>
    %c0_11 = arith.constant 0 : index
    %c0_12 = arith.constant 0 : index
    %6 = vector.load %arg5[%c0_11, %c0_12] : memref<32x32xf32, #tpu.memory_space<vmem>>, vector<32x32xf32>
    %c0_13 = arith.constant 0 : index
    %c0_14 = arith.constant 0 : index
    %7 = vector.load %arg6[%c0_13, %c0_14] : memref<1x32xf32, #tpu.memory_space<vmem>>, vector<1x32xf32>
    %c0_15 = arith.constant 0 : index
    %c0_16 = arith.constant 0 : index
    %8 = vector.load %arg7[%c0_15, %c0_16] : memref<32x32xf32, #tpu.memory_space<vmem>>, vector<32x32xf32>
    %c0_17 = arith.constant 0 : index
    %c0_18 = arith.constant 0 : index
    %9 = vector.load %arg8[%c0_17, %c0_18] : memref<1x32xf32, #tpu.memory_space<vmem>>, vector<1x32xf32>
    %c0_19 = arith.constant 0 : index
    %c0_20 = arith.constant 0 : index
    %10 = vector.load %arg9[%c0_19, %c0_20] : memref<32x32xf32, #tpu.memory_space<vmem>>, vector<32x32xf32>
    %c0_21 = arith.constant 0 : index
    %c0_22 = arith.constant 0 : index
    %11 = vector.load %arg10[%c0_21, %c0_22] : memref<1x32xf32, #tpu.memory_space<vmem>>, vector<1x32xf32>
    %c0_23 = arith.constant 0 : index
    %c0_24 = arith.constant 0 : index
    %12 = vector.load %arg11[%c0_23, %c0_24] : memref<32x32xf32, #tpu.memory_space<vmem>>, vector<32x32xf32>
    %c0_25 = arith.constant 0 : index
    %c0_26 = arith.constant 0 : index
    %13 = vector.load %arg12[%c0_25, %c0_26] : memref<1x32xf32, #tpu.memory_space<vmem>>, vector<1x32xf32>
    %c0_27 = arith.constant 0 : index
    %c0_28 = arith.constant 0 : index
    %14 = vector.load %arg13[%c0_27, %c0_28] : memref<1x32xf32, #tpu.memory_space<vmem>>, vector<1x32xf32>
    %c0_29 = arith.constant 0 : index
    %c0_30 = arith.constant 0 : index
    %15 = vector.load %arg14[%c0_29, %c0_30] : memref<1x32xf32, #tpu.memory_space<vmem>>, vector<1x32xf32>
    %16 = vector.shape_cast %3 : vector<2x8x32xf32> to vector<16x32xf32>
    %cst = arith.constant dense<0.000000e+00> : vector<16x32xf32>
    %17 = tpu.matmul %16, %6, %cst {dimension_numbers = #tpu.dot_dimension_numbers<[1], [0], [0], [1], [0, 0, 1, 1], [], []>} : vector<16x32xf32>, vector<32x32xf32>, vector<16x32xf32> -> vector<16x32xf32>
    %18 = vector.broadcast %7 : vector<1x32xf32> to vector<16x32xf32>
    %19 = arith.addf %17, %18 : vector<16x32xf32>
    %20 = vector.shape_cast %5 : vector<2x16x32xf32> to vector<32x32xf32>
    %cst_31 = arith.constant dense<0.000000e+00> : vector<32x32xf32>
    %21 = tpu.matmul %20, %8, %cst_31 {dimension_numbers = #tpu.dot_dimension_numbers<[1], [0], [0], [1], [0, 0, 1, 1], [], []>} : vector<32x32xf32>, vector<32x32xf32>, vector<32x32xf32> -> vector<32x32xf32>
    %22 = vector.broadcast %9 : vector<1x32xf32> to vector<32x32xf32>
    %23 = arith.addf %21, %22 : vector<32x32xf32>
    %24 = vector.shape_cast %1 : vector<2x16x32xf32> to vector<32x32xf32>
    %cst_32 = arith.constant dense<0.000000e+00> : vector<32x32xf32>
    %25 = tpu.matmul %24, %10, %cst_32 {dimension_numbers = #tpu.dot_dimension_numbers<[1], [0], [0], [1], [0, 0, 1, 1], [], []>} : vector<32x32xf32>, vector<32x32xf32>, vector<32x32xf32> -> vector<32x32xf32>
    %26 = vector.broadcast %11 : vector<1x32xf32> to vector<32x32xf32>
    %27 = arith.addf %25, %26 : vector<32x32xf32>
    %28 = vector.shape_cast %19 : vector<16x32xf32> to vector<2x8x32xf32>
    %29 = vector.shape_cast %23 : vector<32x32xf32> to vector<2x16x32xf32>
    %30 = vector.shape_cast %27 : vector<32x32xf32> to vector<2x16x32xf32>
    %31 = vector.extract_strided_slice %28 {offsets = [0, 0, 0], sizes = [2, 8, 8], strides = [1, 1, 1]} : vector<2x8x32xf32> to vector<2x8x8xf32>
    %32 = vector.extract_strided_slice %29 {offsets = [0, 0, 0], sizes = [2, 16, 8], strides = [1, 1, 1]} : vector<2x16x32xf32> to vector<2x16x8xf32>
    "tpu.trace_start"() <{level = 10 : i32, message = "bqd,bkd->bqk"}> : () -> ()
    %cst_33 = arith.constant dense<0.000000e+00> : vector<2x8x16xf32>
    %33 = tpu.matmul %31, %32, %cst_33 {dimension_numbers = #tpu.dot_dimension_numbers<[2], [2], [1], [1], [0, 0, 0, 1, 1, 1], [0], [0]>} : vector<2x8x8xf32>, vector<2x16x8xf32>, vector<2x8x16xf32> -> vector<2x8x16xf32>
    "tpu.trace_stop"() : () -> ()
    %cst_34 = arith.constant dense<0xFF800000> : vector<2x8xf32>
    %34 = vector.multi_reduction <maximumf>, %33, %cst_34 [2] : vector<2x8x16xf32> to vector<2x8xf32>
    %35 = vector.shape_cast %34 : vector<2x8xf32> to vector<2x8x1xf32>
    %36 = vector.broadcast %35 : vector<2x8x1xf32> to vector<2x8x16xf32>
    %37 = arith.subf %33, %36 : vector<2x8x16xf32>
    %38 = math.exp %37 : vector<2x8x16xf32>
    %cst_35 = arith.constant dense<0.000000e+00> : vector<2x8xf32>
    %39 = vector.multi_reduction <add>, %38, %cst_35 [2] : vector<2x8x16xf32> to vector<2x8xf32>
    %40 = vector.shape_cast %39 : vector<2x8xf32> to vector<2x8x1xf32>
    %41 = tpu.reciprocal %40 : vector<2x8x1xf32> -> vector<2x8x1xf32>
    %42 = vector.extract_strided_slice %30 {offsets = [0, 0, 0], sizes = [2, 16, 8], strides = [1, 1, 1]} : vector<2x16x32xf32> to vector<2x16x8xf32>
    "tpu.trace_start"() <{level = 10 : i32, message = "bqk,bkd->bqd"}> : () -> ()
    %cst_36 = arith.constant dense<0.000000e+00> : vector<2x8x8xf32>
    %43 = tpu.matmul %38, %42, %cst_36 {dimension_numbers = #tpu.dot_dimension_numbers<[2], [1], [1], [2], [0, 0, 0, 1, 1, 2], [0], [0]>} : vector<2x8x16xf32>, vector<2x16x8xf32>, vector<2x8x8xf32> -> vector<2x8x8xf32>
    "tpu.trace_stop"() : () -> ()
    %44 = vector.broadcast %41 : vector<2x8x1xf32> to vector<2x8x8xf32>
    %45 = arith.mulf %43, %44 : vector<2x8x8xf32>
    %46 = vector.extract_strided_slice %28 {offsets = [0, 0, 8], sizes = [2, 8, 8], strides = [1, 1, 1]} : vector<2x8x32xf32> to vector<2x8x8xf32>
    %47 = vector.extract_strided_slice %29 {offsets = [0, 0, 8], sizes = [2, 16, 8], strides = [1, 1, 1]} : vector<2x16x32xf32> to vector<2x16x8xf32>
    "tpu.trace_start"() <{level = 10 : i32, message = "bqd,bkd->bqk"}> : () -> ()
    %cst_37 = arith.constant dense<0.000000e+00> : vector<2x8x16xf32>
    %48 = tpu.matmul %46, %47, %cst_37 {dimension_numbers = #tpu.dot_dimension_numbers<[2], [2], [1], [1], [0, 0, 0, 1, 1, 1], [0], [0]>} : vector<2x8x8xf32>, vector<2x16x8xf32>, vector<2x8x16xf32> -> vector<2x8x16xf32>
    "tpu.trace_stop"() : () -> ()
    %cst_38 = arith.constant dense<0xFF800000> : vector<2x8xf32>
    %49 = vector.multi_reduction <maximumf>, %48, %cst_38 [2] : vector<2x8x16xf32> to vector<2x8xf32>
    %50 = vector.shape_cast %49 : vector<2x8xf32> to vector<2x8x1xf32>
    %51 = vector.broadcast %50 : vector<2x8x1xf32> to vector<2x8x16xf32>
    %52 = arith.subf %48, %51 : vector<2x8x16xf32>
    %53 = math.exp %52 : vector<2x8x16xf32>
    %cst_39 = arith.constant dense<0.000000e+00> : vector<2x8xf32>
    %54 = vector.multi_reduction <add>, %53, %cst_39 [2] : vector<2x8x16xf32> to vector<2x8xf32>
    %55 = vector.shape_cast %54 : vector<2x8xf32> to vector<2x8x1xf32>
    %56 = tpu.reciprocal %55 : vector<2x8x1xf32> -> vector<2x8x1xf32>
    %57 = vector.extract_strided_slice %30 {offsets = [0, 0, 8], sizes = [2, 16, 8], strides = [1, 1, 1]} : vector<2x16x32xf32> to vector<2x16x8xf32>
    "tpu.trace_start"() <{level = 10 : i32, message = "bqk,bkd->bqd"}> : () -> ()
    %cst_40 = arith.constant dense<0.000000e+00> : vector<2x8x8xf32>
    %58 = tpu.matmul %53, %57, %cst_40 {dimension_numbers = #tpu.dot_dimension_numbers<[2], [1], [1], [2], [0, 0, 0, 1, 1, 2], [0], [0]>} : vector<2x8x16xf32>, vector<2x16x8xf32>, vector<2x8x8xf32> -> vector<2x8x8xf32>
    "tpu.trace_stop"() : () -> ()
    %59 = vector.broadcast %56 : vector<2x8x1xf32> to vector<2x8x8xf32>
    %60 = arith.mulf %58, %59 : vector<2x8x8xf32>
    %61 = vector.extract_strided_slice %28 {offsets = [0, 0, 16], sizes = [2, 8, 8], strides = [1, 1, 1]} : vector<2x8x32xf32> to vector<2x8x8xf32>
    %62 = vector.extract_strided_slice %29 {offsets = [0, 0, 16], sizes = [2, 16, 8], strides = [1, 1, 1]} : vector<2x16x32xf32> to vector<2x16x8xf32>
    "tpu.trace_start"() <{level = 10 : i32, message = "bqd,bkd->bqk"}> : () -> ()
    %cst_41 = arith.constant dense<0.000000e+00> : vector<2x8x16xf32>
    %63 = tpu.matmul %61, %62, %cst_41 {dimension_numbers = #tpu.dot_dimension_numbers<[2], [2], [1], [1], [0, 0, 0, 1, 1, 1], [0], [0]>} : vector<2x8x8xf32>, vector<2x16x8xf32>, vector<2x8x16xf32> -> vector<2x8x16xf32>
    "tpu.trace_stop"() : () -> ()
    %cst_42 = arith.constant dense<0xFF800000> : vector<2x8xf32>
    %64 = vector.multi_reduction <maximumf>, %63, %cst_42 [2] : vector<2x8x16xf32> to vector<2x8xf32>
    %65 = vector.shape_cast %64 : vector<2x8xf32> to vector<2x8x1xf32>
    %66 = vector.broadcast %65 : vector<2x8x1xf32> to vector<2x8x16xf32>
    %67 = arith.subf %63, %66 : vector<2x8x16xf32>
    %68 = math.exp %67 : vector<2x8x16xf32>
    %cst_43 = arith.constant dense<0.000000e+00> : vector<2x8xf32>
    %69 = vector.multi_reduction <add>, %68, %cst_43 [2] : vector<2x8x16xf32> to vector<2x8xf32>
    %70 = vector.shape_cast %69 : vector<2x8xf32> to vector<2x8x1xf32>
    %71 = tpu.reciprocal %70 : vector<2x8x1xf32> -> vector<2x8x1xf32>
    %72 = vector.extract_strided_slice %30 {offsets = [0, 0, 16], sizes = [2, 16, 8], strides = [1, 1, 1]} : vector<2x16x32xf32> to vector<2x16x8xf32>
    "tpu.trace_start"() <{level = 10 : i32, message = "bqk,bkd->bqd"}> : () -> ()
    %cst_44 = arith.constant dense<0.000000e+00> : vector<2x8x8xf32>
    %73 = tpu.matmul %68, %72, %cst_44 {dimension_numbers = #tpu.dot_dimension_numbers<[2], [1], [1], [2], [0, 0, 0, 1, 1, 2], [0], [0]>} : vector<2x8x16xf32>, vector<2x16x8xf32>, vector<2x8x8xf32> -> vector<2x8x8xf32>
    "tpu.trace_stop"() : () -> ()
    %74 = vector.broadcast %71 : vector<2x8x1xf32> to vector<2x8x8xf32>
    %75 = arith.mulf %73, %74 : vector<2x8x8xf32>
    %76 = vector.extract_strided_slice %28 {offsets = [0, 0, 24], sizes = [2, 8, 8], strides = [1, 1, 1]} : vector<2x8x32xf32> to vector<2x8x8xf32>
    %77 = vector.extract_strided_slice %29 {offsets = [0, 0, 24], sizes = [2, 16, 8], strides = [1, 1, 1]} : vector<2x16x32xf32> to vector<2x16x8xf32>
    "tpu.trace_start"() <{level = 10 : i32, message = "bqd,bkd->bqk"}> : () -> ()
    %cst_45 = arith.constant dense<0.000000e+00> : vector<2x8x16xf32>
    %78 = tpu.matmul %76, %77, %cst_45 {dimension_numbers = #tpu.dot_dimension_numbers<[2], [2], [1], [1], [0, 0, 0, 1, 1, 1], [0], [0]>} : vector<2x8x8xf32>, vector<2x16x8xf32>, vector<2x8x16xf32> -> vector<2x8x16xf32>
    "tpu.trace_stop"() : () -> ()
    %cst_46 = arith.constant dense<0xFF800000> : vector<2x8xf32>
    %79 = vector.multi_reduction <maximumf>, %78, %cst_46 [2] : vector<2x8x16xf32> to vector<2x8xf32>
    %80 = vector.shape_cast %79 : vector<2x8xf32> to vector<2x8x1xf32>
    %81 = vector.broadcast %80 : vector<2x8x1xf32> to vector<2x8x16xf32>
    %82 = arith.subf %78, %81 : vector<2x8x16xf32>
    %83 = math.exp %82 : vector<2x8x16xf32>
    %cst_47 = arith.constant dense<0.000000e+00> : vector<2x8xf32>
    %84 = vector.multi_reduction <add>, %83, %cst_47 [2] : vector<2x8x16xf32> to vector<2x8xf32>
    %85 = vector.shape_cast %84 : vector<2x8xf32> to vector<2x8x1xf32>
    %86 = tpu.reciprocal %85 : vector<2x8x1xf32> -> vector<2x8x1xf32>
    %87 = vector.extract_strided_slice %30 {offsets = [0, 0, 24], sizes = [2, 16, 8], strides = [1, 1, 1]} : vector<2x16x32xf32> to vector<2x16x8xf32>
    "tpu.trace_start"() <{level = 10 : i32, message = "bqk,bkd->bqd"}> : () -> ()
    %cst_48 = arith.constant dense<0.000000e+00> : vector<2x8x8xf32>
    %88 = tpu.matmul %83, %87, %cst_48 {dimension_numbers = #tpu.dot_dimension_numbers<[2], [1], [1], [2], [0, 0, 0, 1, 1, 2], [0], [0]>} : vector<2x8x16xf32>, vector<2x16x8xf32>, vector<2x8x8xf32> -> vector<2x8x8xf32>
    "tpu.trace_stop"() : () -> ()
    %89 = vector.broadcast %86 : vector<2x8x1xf32> to vector<2x8x8xf32>
    %90 = arith.mulf %88, %89 : vector<2x8x8xf32>
    %91 = tpu.concatenate %45, %60, %75, %90 in 2 : vector<2x8x8xf32>, vector<2x8x8xf32>, vector<2x8x8xf32>, vector<2x8x8xf32> -> vector<2x8x32xf32>
    %92 = vector.shape_cast %91 : vector<2x8x32xf32> to vector<16x32xf32>
    %cst_49 = arith.constant dense<0.000000e+00> : vector<16x32xf32>
    %93 = tpu.matmul %92, %12, %cst_49 {dimension_numbers = #tpu.dot_dimension_numbers<[1], [0], [0], [1], [0, 0, 1, 1], [], []>} : vector<16x32xf32>, vector<32x32xf32>, vector<16x32xf32> -> vector<16x32xf32>
    %94 = vector.shape_cast %0 : vector<2x8x32xf32> to vector<16x32xf32>
    %95 = arith.addf %94, %93 : vector<16x32xf32>
    %96 = vector.broadcast %13 : vector<1x32xf32> to vector<16x32xf32>
    %97 = arith.addf %95, %96 : vector<16x32xf32>
    %cst_50 = arith.constant dense<0.000000e+00> : vector<16xf32>
    %98 = vector.multi_reduction <add>, %97, %cst_50 [1] : vector<16x32xf32> to vector<16xf32>
    %99 = vector.shape_cast %98 : vector<16xf32> to vector<16x1xf32>
    %cst_51 = arith.constant 3.200000e+01 : f32
    %100 = vector.broadcast %cst_51 : f32 to vector<16x1xf32>
    %101 = arith.divf %99, %100 : vector<16x1xf32>
    %102 = vector.broadcast %101 : vector<16x1xf32> to vector<16x32xf32>
    %103 = arith.subf %97, %102 : vector<16x32xf32>
    %104 = arith.mulf %103, %103 : vector<16x32xf32>
    %cst_52 = arith.constant dense<0.000000e+00> : vector<16xf32>
    %105 = vector.multi_reduction <add>, %104, %cst_52 [1] : vector<16x32xf32> to vector<16xf32>
    %106 = vector.shape_cast %105 : vector<16xf32> to vector<16x1xf32>
    %cst_53 = arith.constant 3.200000e+01 : f32
    %107 = vector.broadcast %cst_53 : f32 to vector<16x1xf32>
    %108 = arith.divf %106, %107 : vector<16x1xf32>
    %109 = vector.broadcast %101 : vector<16x1xf32> to vector<16x32xf32>
    %110 = arith.subf %97, %109 : vector<16x32xf32>
    %cst_54 = arith.constant 9.99999974E-6 : f32
    %111 = vector.broadcast %cst_54 : f32 to vector<16x1xf32>
    %112 = arith.addf %108, %111 : vector<16x1xf32>
    %113 = math.rsqrt %112 : vector<16x1xf32>
    %114 = vector.broadcast %113 : vector<16x1xf32> to vector<16x32xf32>
    %115 = arith.mulf %110, %114 : vector<16x32xf32>
    %116 = vector.broadcast %14 : vector<1x32xf32> to vector<16x32xf32>
    %117 = arith.mulf %115, %116 : vector<16x32xf32>
    %118 = vector.broadcast %15 : vector<1x32xf32> to vector<16x32xf32>
    %119 = arith.addf %117, %118 : vector<16x32xf32>
    %120 = vector.shape_cast %119 : vector<16x32xf32> to vector<2x8x32xf32>
    %c0_55 = arith.constant 0 : index
    %c0_56 = arith.constant 0 : index
    %c0_57 = arith.constant 0 : index
    %121 = vector.load %arg15[%c0_55, %c0_56, %c0_57] : memref<2x8x32xf32, #tpu.memory_space<vmem>>, vector<2x8x32xf32>
    tpu.vector_store %arg15[%c0_55, %c0_56, %c0_57], %120 {strides = array<i32>} : memref<2x8x32xf32, #tpu.memory_space<vmem>>, vector<2x8x32xf32>,
    return
  }
  func.func @transform_0(%arg0: i32) -> (i32, i32, i32) {
    %c0_i32 = arith.constant 0 : i32
    %c0_i32_0 = arith.constant 0 : i32
    %c0_i32_1 = arith.constant 0 : i32
    return %arg0, %c0_i32, %c0_i32_0 : i32, i32, i32
  }
  func.func @transform_1(%arg0: i32) -> (i32, i32, i32) {
    %c0_i32 = arith.constant 0 : i32
    %c0_i32_0 = arith.constant 0 : i32
    %c0_i32_1 = arith.constant 0 : i32
    return %arg0, %c0_i32, %c0_i32_0 : i32, i32, i32
  }
  func.func @transform_2(%arg0: i32) -> (i32, i32, i32) {
    %c0_i32 = arith.constant 0 : i32
    %c0_i32_0 = arith.constant 0 : i32
    %c0_i32_1 = arith.constant 0 : i32
    return %arg0, %c0_i32, %c0_i32_0 : i32, i32, i32
  }
  func.func @transform_3(%arg0: i32) -> (i32, i32, i32) {
    %c0_i32 = arith.constant 0 : i32
    %c0_i32_0 = arith.constant 0 : i32
    %c0_i32_1 = arith.constant 0 : i32
    return %arg0, %c0_i32, %c0_i32_0 : i32, i32, i32
  }
  func.func @transform_4(%arg0: i32) -> (i32, i32) {
    %c0_i32 = arith.constant 0 : i32
    %c0_i32_0 = arith.constant 0 : i32
    %c0_i32_1 = arith.constant 0 : i32
    return %c0_i32, %c0_i32_0 : i32, i32
  }
  func.func @transform_5(%arg0: i32) -> (i32, i32) {
    %c0_i32 = arith.constant 0 : i32
    %c0_i32_0 = arith.constant 0 : i32
    %c0_i32_1 = arith.constant 0 : i32
    return %c0_i32, %c0_i32_0 : i32, i32
  }
  func.func @transform_6(%arg0: i32) -> (i32, i32) {
    %c0_i32 = arith.constant 0 : i32
    %c0_i32_0 = arith.constant 0 : i32
    %c0_i32_1 = arith.constant 0 : i32
    return %c0_i32, %c0_i32_0 : i32, i32
  }
  func.func @transform_7(%arg0: i32) -> (i32, i32) {
    %c0_i32 = arith.constant 0 : i32
    %c0_i32_0 = arith.constant 0 : i32
    %c0_i32_1 = arith.constant 0 : i32
    return %c0_i32, %c0_i32_0 : i32, i32
  }
  func.func @transform_8(%arg0: i32) -> (i32, i32) {
    %c0_i32 = arith.constant 0 : i32
    %c0_i32_0 = arith.constant 0 : i32
    %c0_i32_1 = arith.constant 0 : i32
    return %c0_i32, %c0_i32_0 : i32, i32
  }
  func.func @transform_9(%arg0: i32) -> (i32, i32) {
    %c0_i32 = arith.constant 0 : i32
    %c0_i32_0 = arith.constant 0 : i32
    %c0_i32_1 = arith.constant 0 : i32
    return %c0_i32, %c0_i32_0 : i32, i32
  }
  func.func @transform_10(%arg0: i32) -> (i32, i32) {
    %c0_i32 = arith.constant 0 : i32
    %c0_i32_0 = arith.constant 0 : i32
    %c0_i32_1 = arith.constant 0 : i32
    return %c0_i32, %c0_i32_0 : i32, i32
  }
  func.func @transform_11(%arg0: i32) -> (i32, i32) {
    %c0_i32 = arith.constant 0 : i32
    %c0_i32_0 = arith.constant 0 : i32
    %c0_i32_1 = arith.constant 0 : i32
    return %c0_i32, %c0_i32_0 : i32, i32
  }
  func.func @transform_12(%arg0: i32) -> (i32, i32) {
    %c0_i32 = arith.constant 0 : i32
    %c0_i32_0 = arith.constant 0 : i32
    %c0_i32_1 = arith.constant 0 : i32
    return %c0_i32, %c0_i32_0 : i32, i32
  }
  func.func @transform_13(%arg0: i32) -> (i32, i32) {
    %c0_i32 = arith.constant 0 : i32
    %c0_i32_0 = arith.constant 0 : i32
    %c0_i32_1 = arith.constant 0 : i32
    return %c0_i32, %c0_i32_0 : i32, i32
  }
  func.func @transform_14(%arg0: i32) -> (i32, i32, i32) {
    %c0_i32 = arith.constant 0 : i32
    %c0_i32_0 = arith.constant 0 : i32
    %c0_i32_1 = arith.constant 0 : i32
    return %arg0, %c0_i32, %c0_i32_0 : i32, i32, i32
  }
}

module attributes {stable_mosaic.version = 11 : i64} {
  func.func @_self_attn_block_kernel(%arg0: i32, %arg1: memref<2x8x32xf32, #tpu.memory_space<vmem>>, %arg2: memref<2x8x32xf32, #tpu.memory_space<vmem>>, %arg3: memref<32x32xf32, #tpu.memory_space<vmem>>, %arg4: memref<1x32xf32, #tpu.memory_space<vmem>>, %arg5: memref<32x32xf32, #tpu.memory_space<vmem>>, %arg6: memref<1x32xf32, #tpu.memory_space<vmem>>, %arg7: memref<32x32xf32, #tpu.memory_space<vmem>>, %arg8: memref<1x32xf32, #tpu.memory_space<vmem>>, %arg9: memref<32x32xf32, #tpu.memory_space<vmem>>, %arg10: memref<1x32xf32, #tpu.memory_space<vmem>>, %arg11: memref<1x32xf32, #tpu.memory_space<vmem>>, %arg12: memref<1x32xf32, #tpu.memory_space<vmem>>, %arg13: memref<2x8x32xf32, #tpu.memory_space<vmem>>) attributes {dimension_semantics = [#tpu.dimension_semantics<parallel>], iteration_bounds = array<i64: 1>, scalar_prefetch = 0 : i64, scratch_operands = 0 : i64, tpu.core_type = #tpu.core_type<tc>, window_params = [{transform_indices = @transform_0, window_bounds = array<i64: 2, 8, 32>}, {transform_indices = @transform_1, window_bounds = array<i64: 2, 8, 32>}, {pipeline_mode = #tpu.pipeline_mode<synchronous>, transform_indices = @transform_2, window_bounds = array<i64: 32, 32>}, {pipeline_mode = #tpu.pipeline_mode<synchronous>, transform_indices = @transform_3, window_bounds = array<i64: 1, 32>}, {pipeline_mode = #tpu.pipeline_mode<synchronous>, transform_indices = @transform_4, window_bounds = array<i64: 32, 32>}, {pipeline_mode = #tpu.pipeline_mode<synchronous>, transform_indices = @transform_5, window_bounds = array<i64: 1, 32>}, {pipeline_mode = #tpu.pipeline_mode<synchronous>, transform_indices = @transform_6, window_bounds = array<i64: 32, 32>}, {pipeline_mode = #tpu.pipeline_mode<synchronous>, transform_indices = @transform_7, window_bounds = array<i64: 1, 32>}, {pipeline_mode = #tpu.pipeline_mode<synchronous>, transform_indices = @transform_8, window_bounds = array<i64: 32, 32>}, {pipeline_mode = #tpu.pipeline_mode<synchronous>, transform_indices = @transform_9, window_bounds = array<i64: 1, 32>}, {pipeline_mode = #tpu.pipeline_mode<synchronous>, transform_indices = @transform_10, window_bounds = array<i64: 1, 32>}, {pipeline_mode = #tpu.pipeline_mode<synchronous>, transform_indices = @transform_11, window_bounds = array<i64: 1, 32>}, {transform_indices = @transform_12, window_bounds = array<i64: 2, 8, 32>}]} {
    %c0 = arith.constant 0 : index
    %c0_0 = arith.constant 0 : index
    %c0_1 = arith.constant 0 : index
    %0 = vector.load %arg1[%c0, %c0_0, %c0_1] : memref<2x8x32xf32, #tpu.memory_space<vmem>>, vector<2x8x32xf32>
    %c0_2 = arith.constant 0 : index
    %c0_3 = arith.constant 0 : index
    %c0_4 = arith.constant 0 : index
    %1 = vector.load %arg2[%c0_2, %c0_3, %c0_4] : memref<2x8x32xf32, #tpu.memory_space<vmem>>, vector<2x8x32xf32>
    %2 = arith.addf %0, %1 : vector<2x8x32xf32>
    %c0_5 = arith.constant 0 : index
    %c0_6 = arith.constant 0 : index
    %3 = vector.load %arg3[%c0_5, %c0_6] : memref<32x32xf32, #tpu.memory_space<vmem>>, vector<32x32xf32>
    %c0_7 = arith.constant 0 : index
    %c0_8 = arith.constant 0 : index
    %4 = vector.load %arg4[%c0_7, %c0_8] : memref<1x32xf32, #tpu.memory_space<vmem>>, vector<1x32xf32>
    %c0_9 = arith.constant 0 : index
    %c0_10 = arith.constant 0 : index
    %5 = vector.load %arg5[%c0_9, %c0_10] : memref<32x32xf32, #tpu.memory_space<vmem>>, vector<32x32xf32>
    %c0_11 = arith.constant 0 : index
    %c0_12 = arith.constant 0 : index
    %6 = vector.load %arg6[%c0_11, %c0_12] : memref<1x32xf32, #tpu.memory_space<vmem>>, vector<1x32xf32>
    %c0_13 = arith.constant 0 : index
    %c0_14 = arith.constant 0 : index
    %7 = vector.load %arg7[%c0_13, %c0_14] : memref<32x32xf32, #tpu.memory_space<vmem>>, vector<32x32xf32>
    %c0_15 = arith.constant 0 : index
    %c0_16 = arith.constant 0 : index
    %8 = vector.load %arg8[%c0_15, %c0_16] : memref<1x32xf32, #tpu.memory_space<vmem>>, vector<1x32xf32>
    %c0_17 = arith.constant 0 : index
    %c0_18 = arith.constant 0 : index
    %9 = vector.load %arg9[%c0_17, %c0_18] : memref<32x32xf32, #tpu.memory_space<vmem>>, vector<32x32xf32>
    %c0_19 = arith.constant 0 : index
    %c0_20 = arith.constant 0 : index
    %10 = vector.load %arg10[%c0_19, %c0_20] : memref<1x32xf32, #tpu.memory_space<vmem>>, vector<1x32xf32>
    %c0_21 = arith.constant 0 : index
    %c0_22 = arith.constant 0 : index
    %11 = vector.load %arg11[%c0_21, %c0_22] : memref<1x32xf32, #tpu.memory_space<vmem>>, vector<1x32xf32>
    %c0_23 = arith.constant 0 : index
    %c0_24 = arith.constant 0 : index
    %12 = vector.load %arg12[%c0_23, %c0_24] : memref<1x32xf32, #tpu.memory_space<vmem>>, vector<1x32xf32>
    %13 = vector.shape_cast %2 : vector<2x8x32xf32> to vector<16x32xf32>
    %cst = arith.constant dense<0.000000e+00> : vector<16x32xf32>
    %14 = tpu.matmul %13, %3, %cst {dimension_numbers = #tpu.dot_dimension_numbers<[1], [0], [0], [1], [0, 0, 1, 1], [], []>} : vector<16x32xf32>, vector<32x32xf32>, vector<16x32xf32> -> vector<16x32xf32>
    %15 = vector.broadcast %4 : vector<1x32xf32> to vector<16x32xf32>
    %16 = arith.addf %14, %15 : vector<16x32xf32>
    %17 = vector.shape_cast %2 : vector<2x8x32xf32> to vector<16x32xf32>
    %cst_25 = arith.constant dense<0.000000e+00> : vector<16x32xf32>
    %18 = tpu.matmul %17, %5, %cst_25 {dimension_numbers = #tpu.dot_dimension_numbers<[1], [0], [0], [1], [0, 0, 1, 1], [], []>} : vector<16x32xf32>, vector<32x32xf32>, vector<16x32xf32> -> vector<16x32xf32>
    %19 = vector.broadcast %6 : vector<1x32xf32> to vector<16x32xf32>
    %20 = arith.addf %18, %19 : vector<16x32xf32>
    %21 = vector.shape_cast %0 : vector<2x8x32xf32> to vector<16x32xf32>
    %cst_26 = arith.constant dense<0.000000e+00> : vector<16x32xf32>
    %22 = tpu.matmul %21, %7, %cst_26 {dimension_numbers = #tpu.dot_dimension_numbers<[1], [0], [0], [1], [0, 0, 1, 1], [], []>} : vector<16x32xf32>, vector<32x32xf32>, vector<16x32xf32> -> vector<16x32xf32>
    %23 = vector.broadcast %8 : vector<1x32xf32> to vector<16x32xf32>
    %24 = arith.addf %22, %23 : vector<16x32xf32>
    %25 = vector.shape_cast %16 : vector<16x32xf32> to vector<2x8x32xf32>
    %26 = vector.shape_cast %20 : vector<16x32xf32> to vector<2x8x32xf32>
    %27 = vector.shape_cast %24 : vector<16x32xf32> to vector<2x8x32xf32>
    %28 = vector.extract_strided_slice %25 {offsets = [0, 0, 0], sizes = [2, 8, 8], strides = [1, 1, 1]} : vector<2x8x32xf32> to vector<2x8x8xf32>
    %29 = vector.extract_strided_slice %26 {offsets = [0, 0, 0], sizes = [2, 8, 8], strides = [1, 1, 1]} : vector<2x8x32xf32> to vector<2x8x8xf32>
    "tpu.trace_start"() <{level = 10 : i32, message = "bqd,bkd->bqk"}> : () -> ()
    %cst_27 = arith.constant dense<0.000000e+00> : vector<2x8x8xf32>
    %30 = tpu.matmul %28, %29, %cst_27 {dimension_numbers = #tpu.dot_dimension_numbers<[2], [2], [1], [1], [0, 0, 0, 1, 1, 1], [0], [0]>} : vector<2x8x8xf32>, vector<2x8x8xf32>, vector<2x8x8xf32> -> vector<2x8x8xf32>
    "tpu.trace_stop"() : () -> ()
    %cst_28 = arith.constant dense<0xFF800000> : vector<2x8xf32>
    %31 = vector.multi_reduction <maximumf>, %30, %cst_28 [2] : vector<2x8x8xf32> to vector<2x8xf32>
    %32 = vector.shape_cast %31 : vector<2x8xf32> to vector<2x8x1xf32>
    %33 = vector.broadcast %32 : vector<2x8x1xf32> to vector<2x8x8xf32>
    %34 = arith.subf %30, %33 : vector<2x8x8xf32>
    %35 = math.exp %34 : vector<2x8x8xf32>
    %cst_29 = arith.constant dense<0.000000e+00> : vector<2x8xf32>
    %36 = vector.multi_reduction <add>, %35, %cst_29 [2] : vector<2x8x8xf32> to vector<2x8xf32>
    %37 = vector.shape_cast %36 : vector<2x8xf32> to vector<2x8x1xf32>
    %38 = tpu.reciprocal %37 : vector<2x8x1xf32> -> vector<2x8x1xf32>
    %39 = vector.extract_strided_slice %27 {offsets = [0, 0, 0], sizes = [2, 8, 8], strides = [1, 1, 1]} : vector<2x8x32xf32> to vector<2x8x8xf32>
    "tpu.trace_start"() <{level = 10 : i32, message = "bqk,bkd->bqd"}> : () -> ()
    %cst_30 = arith.constant dense<0.000000e+00> : vector<2x8x8xf32>
    %40 = tpu.matmul %35, %39, %cst_30 {dimension_numbers = #tpu.dot_dimension_numbers<[2], [1], [1], [2], [0, 0, 0, 1, 1, 2], [0], [0]>} : vector<2x8x8xf32>, vector<2x8x8xf32>, vector<2x8x8xf32> -> vector<2x8x8xf32>
    "tpu.trace_stop"() : () -> ()
    %41 = vector.broadcast %38 : vector<2x8x1xf32> to vector<2x8x8xf32>
    %42 = arith.mulf %40, %41 : vector<2x8x8xf32>
    %43 = vector.extract_strided_slice %25 {offsets = [0, 0, 8], sizes = [2, 8, 8], strides = [1, 1, 1]} : vector<2x8x32xf32> to vector<2x8x8xf32>
    %44 = vector.extract_strided_slice %26 {offsets = [0, 0, 8], sizes = [2, 8, 8], strides = [1, 1, 1]} : vector<2x8x32xf32> to vector<2x8x8xf32>
    "tpu.trace_start"() <{level = 10 : i32, message = "bqd,bkd->bqk"}> : () -> ()
    %cst_31 = arith.constant dense<0.000000e+00> : vector<2x8x8xf32>
    %45 = tpu.matmul %43, %44, %cst_31 {dimension_numbers = #tpu.dot_dimension_numbers<[2], [2], [1], [1], [0, 0, 0, 1, 1, 1], [0], [0]>} : vector<2x8x8xf32>, vector<2x8x8xf32>, vector<2x8x8xf32> -> vector<2x8x8xf32>
    "tpu.trace_stop"() : () -> ()
    %cst_32 = arith.constant dense<0xFF800000> : vector<2x8xf32>
    %46 = vector.multi_reduction <maximumf>, %45, %cst_32 [2] : vector<2x8x8xf32> to vector<2x8xf32>
    %47 = vector.shape_cast %46 : vector<2x8xf32> to vector<2x8x1xf32>
    %48 = vector.broadcast %47 : vector<2x8x1xf32> to vector<2x8x8xf32>
    %49 = arith.subf %45, %48 : vector<2x8x8xf32>
    %50 = math.exp %49 : vector<2x8x8xf32>
    %cst_33 = arith.constant dense<0.000000e+00> : vector<2x8xf32>
    %51 = vector.multi_reduction <add>, %50, %cst_33 [2] : vector<2x8x8xf32> to vector<2x8xf32>
    %52 = vector.shape_cast %51 : vector<2x8xf32> to vector<2x8x1xf32>
    %53 = tpu.reciprocal %52 : vector<2x8x1xf32> -> vector<2x8x1xf32>
    %54 = vector.extract_strided_slice %27 {offsets = [0, 0, 8], sizes = [2, 8, 8], strides = [1, 1, 1]} : vector<2x8x32xf32> to vector<2x8x8xf32>
    "tpu.trace_start"() <{level = 10 : i32, message = "bqk,bkd->bqd"}> : () -> ()
    %cst_34 = arith.constant dense<0.000000e+00> : vector<2x8x8xf32>
    %55 = tpu.matmul %50, %54, %cst_34 {dimension_numbers = #tpu.dot_dimension_numbers<[2], [1], [1], [2], [0, 0, 0, 1, 1, 2], [0], [0]>} : vector<2x8x8xf32>, vector<2x8x8xf32>, vector<2x8x8xf32> -> vector<2x8x8xf32>
    "tpu.trace_stop"() : () -> ()
    %56 = vector.broadcast %53 : vector<2x8x1xf32> to vector<2x8x8xf32>
    %57 = arith.mulf %55, %56 : vector<2x8x8xf32>
    %58 = vector.extract_strided_slice %25 {offsets = [0, 0, 16], sizes = [2, 8, 8], strides = [1, 1, 1]} : vector<2x8x32xf32> to vector<2x8x8xf32>
    %59 = vector.extract_strided_slice %26 {offsets = [0, 0, 16], sizes = [2, 8, 8], strides = [1, 1, 1]} : vector<2x8x32xf32> to vector<2x8x8xf32>
    "tpu.trace_start"() <{level = 10 : i32, message = "bqd,bkd->bqk"}> : () -> ()
    %cst_35 = arith.constant dense<0.000000e+00> : vector<2x8x8xf32>
    %60 = tpu.matmul %58, %59, %cst_35 {dimension_numbers = #tpu.dot_dimension_numbers<[2], [2], [1], [1], [0, 0, 0, 1, 1, 1], [0], [0]>} : vector<2x8x8xf32>, vector<2x8x8xf32>, vector<2x8x8xf32> -> vector<2x8x8xf32>
    "tpu.trace_stop"() : () -> ()
    %cst_36 = arith.constant dense<0xFF800000> : vector<2x8xf32>
    %61 = vector.multi_reduction <maximumf>, %60, %cst_36 [2] : vector<2x8x8xf32> to vector<2x8xf32>
    %62 = vector.shape_cast %61 : vector<2x8xf32> to vector<2x8x1xf32>
    %63 = vector.broadcast %62 : vector<2x8x1xf32> to vector<2x8x8xf32>
    %64 = arith.subf %60, %63 : vector<2x8x8xf32>
    %65 = math.exp %64 : vector<2x8x8xf32>
    %cst_37 = arith.constant dense<0.000000e+00> : vector<2x8xf32>
    %66 = vector.multi_reduction <add>, %65, %cst_37 [2] : vector<2x8x8xf32> to vector<2x8xf32>
    %67 = vector.shape_cast %66 : vector<2x8xf32> to vector<2x8x1xf32>
    %68 = tpu.reciprocal %67 : vector<2x8x1xf32> -> vector<2x8x1xf32>
    %69 = vector.extract_strided_slice %27 {offsets = [0, 0, 16], sizes = [2, 8, 8], strides = [1, 1, 1]} : vector<2x8x32xf32> to vector<2x8x8xf32>
    "tpu.trace_start"() <{level = 10 : i32, message = "bqk,bkd->bqd"}> : () -> ()
    %cst_38 = arith.constant dense<0.000000e+00> : vector<2x8x8xf32>
    %70 = tpu.matmul %65, %69, %cst_38 {dimension_numbers = #tpu.dot_dimension_numbers<[2], [1], [1], [2], [0, 0, 0, 1, 1, 2], [0], [0]>} : vector<2x8x8xf32>, vector<2x8x8xf32>, vector<2x8x8xf32> -> vector<2x8x8xf32>
    "tpu.trace_stop"() : () -> ()
    %71 = vector.broadcast %68 : vector<2x8x1xf32> to vector<2x8x8xf32>
    %72 = arith.mulf %70, %71 : vector<2x8x8xf32>
    %73 = vector.extract_strided_slice %25 {offsets = [0, 0, 24], sizes = [2, 8, 8], strides = [1, 1, 1]} : vector<2x8x32xf32> to vector<2x8x8xf32>
    %74 = vector.extract_strided_slice %26 {offsets = [0, 0, 24], sizes = [2, 8, 8], strides = [1, 1, 1]} : vector<2x8x32xf32> to vector<2x8x8xf32>
    "tpu.trace_start"() <{level = 10 : i32, message = "bqd,bkd->bqk"}> : () -> ()
    %cst_39 = arith.constant dense<0.000000e+00> : vector<2x8x8xf32>
    %75 = tpu.matmul %73, %74, %cst_39 {dimension_numbers = #tpu.dot_dimension_numbers<[2], [2], [1], [1], [0, 0, 0, 1, 1, 1], [0], [0]>} : vector<2x8x8xf32>, vector<2x8x8xf32>, vector<2x8x8xf32> -> vector<2x8x8xf32>
    "tpu.trace_stop"() : () -> ()
    %cst_40 = arith.constant dense<0xFF800000> : vector<2x8xf32>
    %76 = vector.multi_reduction <maximumf>, %75, %cst_40 [2] : vector<2x8x8xf32> to vector<2x8xf32>
    %77 = vector.shape_cast %76 : vector<2x8xf32> to vector<2x8x1xf32>
    %78 = vector.broadcast %77 : vector<2x8x1xf32> to vector<2x8x8xf32>
    %79 = arith.subf %75, %78 : vector<2x8x8xf32>
    %80 = math.exp %79 : vector<2x8x8xf32>
    %cst_41 = arith.constant dense<0.000000e+00> : vector<2x8xf32>
    %81 = vector.multi_reduction <add>, %80, %cst_41 [2] : vector<2x8x8xf32> to vector<2x8xf32>
    %82 = vector.shape_cast %81 : vector<2x8xf32> to vector<2x8x1xf32>
    %83 = tpu.reciprocal %82 : vector<2x8x1xf32> -> vector<2x8x1xf32>
    %84 = vector.extract_strided_slice %27 {offsets = [0, 0, 24], sizes = [2, 8, 8], strides = [1, 1, 1]} : vector<2x8x32xf32> to vector<2x8x8xf32>
    "tpu.trace_start"() <{level = 10 : i32, message = "bqk,bkd->bqd"}> : () -> ()
    %cst_42 = arith.constant dense<0.000000e+00> : vector<2x8x8xf32>
    %85 = tpu.matmul %80, %84, %cst_42 {dimension_numbers = #tpu.dot_dimension_numbers<[2], [1], [1], [2], [0, 0, 0, 1, 1, 2], [0], [0]>} : vector<2x8x8xf32>, vector<2x8x8xf32>, vector<2x8x8xf32> -> vector<2x8x8xf32>
    "tpu.trace_stop"() : () -> ()
    %86 = vector.broadcast %83 : vector<2x8x1xf32> to vector<2x8x8xf32>
    %87 = arith.mulf %85, %86 : vector<2x8x8xf32>
    %88 = tpu.concatenate %42, %57, %72, %87 in 2 : vector<2x8x8xf32>, vector<2x8x8xf32>, vector<2x8x8xf32>, vector<2x8x8xf32> -> vector<2x8x32xf32>
    %89 = vector.shape_cast %88 : vector<2x8x32xf32> to vector<16x32xf32>
    %cst_43 = arith.constant dense<0.000000e+00> : vector<16x32xf32>
    %90 = tpu.matmul %89, %9, %cst_43 {dimension_numbers = #tpu.dot_dimension_numbers<[1], [0], [0], [1], [0, 0, 1, 1], [], []>} : vector<16x32xf32>, vector<32x32xf32>, vector<16x32xf32> -> vector<16x32xf32>
    %91 = vector.shape_cast %0 : vector<2x8x32xf32> to vector<16x32xf32>
    %92 = arith.addf %91, %90 : vector<16x32xf32>
    %93 = vector.broadcast %10 : vector<1x32xf32> to vector<16x32xf32>
    %94 = arith.addf %92, %93 : vector<16x32xf32>
    %cst_44 = arith.constant dense<0.000000e+00> : vector<16xf32>
    %95 = vector.multi_reduction <add>, %94, %cst_44 [1] : vector<16x32xf32> to vector<16xf32>
    %96 = vector.shape_cast %95 : vector<16xf32> to vector<16x1xf32>
    %cst_45 = arith.constant 3.200000e+01 : f32
    %97 = vector.broadcast %cst_45 : f32 to vector<16x1xf32>
    %98 = arith.divf %96, %97 : vector<16x1xf32>
    %99 = vector.broadcast %98 : vector<16x1xf32> to vector<16x32xf32>
    %100 = arith.subf %94, %99 : vector<16x32xf32>
    %101 = arith.mulf %100, %100 : vector<16x32xf32>
    %cst_46 = arith.constant dense<0.000000e+00> : vector<16xf32>
    %102 = vector.multi_reduction <add>, %101, %cst_46 [1] : vector<16x32xf32> to vector<16xf32>
    %103 = vector.shape_cast %102 : vector<16xf32> to vector<16x1xf32>
    %cst_47 = arith.constant 3.200000e+01 : f32
    %104 = vector.broadcast %cst_47 : f32 to vector<16x1xf32>
    %105 = arith.divf %103, %104 : vector<16x1xf32>
    %106 = vector.broadcast %98 : vector<16x1xf32> to vector<16x32xf32>
    %107 = arith.subf %94, %106 : vector<16x32xf32>
    %cst_48 = arith.constant 9.99999974E-6 : f32
    %108 = vector.broadcast %cst_48 : f32 to vector<16x1xf32>
    %109 = arith.addf %105, %108 : vector<16x1xf32>
    %110 = math.rsqrt %109 : vector<16x1xf32>
    %111 = vector.broadcast %110 : vector<16x1xf32> to vector<16x32xf32>
    %112 = arith.mulf %107, %111 : vector<16x32xf32>
    %113 = vector.broadcast %11 : vector<1x32xf32> to vector<16x32xf32>
    %114 = arith.mulf %112, %113 : vector<16x32xf32>
    %115 = vector.broadcast %12 : vector<1x32xf32> to vector<16x32xf32>
    %116 = arith.addf %114, %115 : vector<16x32xf32>
    %117 = vector.shape_cast %116 : vector<16x32xf32> to vector<2x8x32xf32>
    %c0_49 = arith.constant 0 : index
    %c0_50 = arith.constant 0 : index
    %c0_51 = arith.constant 0 : index
    %118 = vector.load %arg13[%c0_49, %c0_50, %c0_51] : memref<2x8x32xf32, #tpu.memory_space<vmem>>, vector<2x8x32xf32>
    tpu.vector_store %arg13[%c0_49, %c0_50, %c0_51], %117 {strides = array<i32>} : memref<2x8x32xf32, #tpu.memory_space<vmem>>, vector<2x8x32xf32>,
    return
  }
  func.func @transform_0(%arg0: i32) -> (i32, i32, i32) {
    %c0_i32 = arith.constant 0 : i32
    %c0_i32_0 = arith.constant 0 : i32
    %c0_i32_1 = arith.constant 0 : i32
    return %arg0, %c0_i32, %c0_i32_0 : i32, i32, i32
  }
  func.func @transform_1(%arg0: i32) -> (i32, i32, i32) {
    %c0_i32 = arith.constant 0 : i32
    %c0_i32_0 = arith.constant 0 : i32
    %c0_i32_1 = arith.constant 0 : i32
    return %arg0, %c0_i32, %c0_i32_0 : i32, i32, i32
  }
  func.func @transform_2(%arg0: i32) -> (i32, i32) {
    %c0_i32 = arith.constant 0 : i32
    %c0_i32_0 = arith.constant 0 : i32
    %c0_i32_1 = arith.constant 0 : i32
    return %c0_i32, %c0_i32_0 : i32, i32
  }
  func.func @transform_3(%arg0: i32) -> (i32, i32) {
    %c0_i32 = arith.constant 0 : i32
    %c0_i32_0 = arith.constant 0 : i32
    %c0_i32_1 = arith.constant 0 : i32
    return %c0_i32, %c0_i32_0 : i32, i32
  }
  func.func @transform_4(%arg0: i32) -> (i32, i32) {
    %c0_i32 = arith.constant 0 : i32
    %c0_i32_0 = arith.constant 0 : i32
    %c0_i32_1 = arith.constant 0 : i32
    return %c0_i32, %c0_i32_0 : i32, i32
  }
  func.func @transform_5(%arg0: i32) -> (i32, i32) {
    %c0_i32 = arith.constant 0 : i32
    %c0_i32_0 = arith.constant 0 : i32
    %c0_i32_1 = arith.constant 0 : i32
    return %c0_i32, %c0_i32_0 : i32, i32
  }
  func.func @transform_6(%arg0: i32) -> (i32, i32) {
    %c0_i32 = arith.constant 0 : i32
    %c0_i32_0 = arith.constant 0 : i32
    %c0_i32_1 = arith.constant 0 : i32
    return %c0_i32, %c0_i32_0 : i32, i32
  }
  func.func @transform_7(%arg0: i32) -> (i32, i32) {
    %c0_i32 = arith.constant 0 : i32
    %c0_i32_0 = arith.constant 0 : i32
    %c0_i32_1 = arith.constant 0 : i32
    return %c0_i32, %c0_i32_0 : i32, i32
  }
  func.func @transform_8(%arg0: i32) -> (i32, i32) {
    %c0_i32 = arith.constant 0 : i32
    %c0_i32_0 = arith.constant 0 : i32
    %c0_i32_1 = arith.constant 0 : i32
    return %c0_i32, %c0_i32_0 : i32, i32
  }
  func.func @transform_9(%arg0: i32) -> (i32, i32) {
    %c0_i32 = arith.constant 0 : i32
    %c0_i32_0 = arith.constant 0 : i32
    %c0_i32_1 = arith.constant 0 : i32
    return %c0_i32, %c0_i32_0 : i32, i32
  }
  func.func @transform_10(%arg0: i32) -> (i32, i32) {
    %c0_i32 = arith.constant 0 : i32
    %c0_i32_0 = arith.constant 0 : i32
    %c0_i32_1 = arith.constant 0 : i32
    return %c0_i32, %c0_i32_0 : i32, i32
  }
  func.func @transform_11(%arg0: i32) -> (i32, i32) {
    %c0_i32 = arith.constant 0 : i32
    %c0_i32_0 = arith.constant 0 : i32
    %c0_i32_1 = arith.constant 0 : i32
    return %c0_i32, %c0_i32_0 : i32, i32
  }
  func.func @transform_12(%arg0: i32) -> (i32, i32, i32) {
    %c0_i32 = arith.constant 0 : i32
    %c0_i32_0 = arith.constant 0 : i32
    %c0_i32_1 = arith.constant 0 : i32
    return %arg0, %c0_i32, %c0_i32_0 : i32, i32, i32
  }
}

module attributes {stable_mosaic.version = 11 : i64} {
  func.func @_ffn_block_kernel(%arg0: i32, %arg1: memref<16x32xf32, #tpu.memory_space<vmem>>, %arg2: memref<32x64xf32, #tpu.memory_space<vmem>>, %arg3: memref<1x64xf32, #tpu.memory_space<vmem>>, %arg4: memref<64x32xf32, #tpu.memory_space<vmem>>, %arg5: memref<1x32xf32, #tpu.memory_space<vmem>>, %arg6: memref<1x32xf32, #tpu.memory_space<vmem>>, %arg7: memref<1x32xf32, #tpu.memory_space<vmem>>, %arg8: memref<16x32xf32, #tpu.memory_space<vmem>>) attributes {dimension_semantics = [#tpu.dimension_semantics<parallel>], iteration_bounds = array<i64: 1>, scalar_prefetch = 0 : i64, scratch_operands = 0 : i64, tpu.core_type = #tpu.core_type<tc>, window_params = [{transform_indices = @transform_0, window_bounds = array<i64: 16, 32>}, {pipeline_mode = #tpu.pipeline_mode<synchronous>, transform_indices = @transform_1, window_bounds = array<i64: 32, 64>}, {pipeline_mode = #tpu.pipeline_mode<synchronous>, transform_indices = @transform_2, window_bounds = array<i64: 1, 64>}, {pipeline_mode = #tpu.pipeline_mode<synchronous>, transform_indices = @transform_3, window_bounds = array<i64: 64, 32>}, {pipeline_mode = #tpu.pipeline_mode<synchronous>, transform_indices = @transform_4, window_bounds = array<i64: 1, 32>}, {pipeline_mode = #tpu.pipeline_mode<synchronous>, transform_indices = @transform_5, window_bounds = array<i64: 1, 32>}, {pipeline_mode = #tpu.pipeline_mode<synchronous>, transform_indices = @transform_6, window_bounds = array<i64: 1, 32>}, {transform_indices = @transform_7, window_bounds = array<i64: 16, 32>}]} {
    %c0 = arith.constant 0 : index
    %c0_0 = arith.constant 0 : index
    %0 = vector.load %arg1[%c0, %c0_0] : memref<16x32xf32, #tpu.memory_space<vmem>>, vector<16x32xf32>
    %c0_1 = arith.constant 0 : index
    %c0_2 = arith.constant 0 : index
    %1 = vector.load %arg2[%c0_1, %c0_2] : memref<32x64xf32, #tpu.memory_space<vmem>>, vector<32x64xf32>
    %cst = arith.constant dense<0.000000e+00> : vector<16x64xf32>
    %2 = tpu.matmul %0, %1, %cst {dimension_numbers = #tpu.dot_dimension_numbers<[1], [0], [0], [1], [0, 0, 1, 1], [], []>} : vector<16x32xf32>, vector<32x64xf32>, vector<16x64xf32> -> vector<16x64xf32>
    %c0_3 = arith.constant 0 : index
    %c0_4 = arith.constant 0 : index
    %3 = vector.load %arg3[%c0_3, %c0_4] : memref<1x64xf32, #tpu.memory_space<vmem>>, vector<1x64xf32>
    %4 = vector.broadcast %3 : vector<1x64xf32> to vector<16x64xf32>
    %5 = arith.addf %2, %4 : vector<16x64xf32>
    %cst_5 = arith.constant 0.000000e+00 : f32
    %6 = vector.broadcast %cst_5 : f32 to vector<16x64xf32>
    %7 = arith.maximumf %5, %6 : vector<16x64xf32>
    %c0_6 = arith.constant 0 : index
    %c0_7 = arith.constant 0 : index
    %8 = vector.load %arg4[%c0_6, %c0_7] : memref<64x32xf32, #tpu.memory_space<vmem>>, vector<64x32xf32>
    %cst_8 = arith.constant dense<0.000000e+00> : vector<16x32xf32>
    %9 = tpu.matmul %7, %8, %cst_8 {dimension_numbers = #tpu.dot_dimension_numbers<[1], [0], [0], [1], [0, 0, 1, 1], [], []>} : vector<16x64xf32>, vector<64x32xf32>, vector<16x32xf32> -> vector<16x32xf32>
    %c0_9 = arith.constant 0 : index
    %c0_10 = arith.constant 0 : index
    %10 = vector.load %arg5[%c0_9, %c0_10] : memref<1x32xf32, #tpu.memory_space<vmem>>, vector<1x32xf32>
    %11 = vector.broadcast %10 : vector<1x32xf32> to vector<16x32xf32>
    %12 = arith.addf %9, %11 : vector<16x32xf32>
    %13 = arith.addf %0, %12 : vector<16x32xf32>
    %c0_11 = arith.constant 0 : index
    %c0_12 = arith.constant 0 : index
    %14 = vector.load %arg6[%c0_11, %c0_12] : memref<1x32xf32, #tpu.memory_space<vmem>>, vector<1x32xf32>
    %c0_13 = arith.constant 0 : index
    %c0_14 = arith.constant 0 : index
    %15 = vector.load %arg7[%c0_13, %c0_14] : memref<1x32xf32, #tpu.memory_space<vmem>>, vector<1x32xf32>
    %cst_15 = arith.constant dense<0.000000e+00> : vector<16xf32>
    %16 = vector.multi_reduction <add>, %13, %cst_15 [1] : vector<16x32xf32> to vector<16xf32>
    %17 = vector.shape_cast %16 : vector<16xf32> to vector<16x1xf32>
    %cst_16 = arith.constant 3.200000e+01 : f32
    %18 = vector.broadcast %cst_16 : f32 to vector<16x1xf32>
    %19 = arith.divf %17, %18 : vector<16x1xf32>
    %20 = vector.broadcast %19 : vector<16x1xf32> to vector<16x32xf32>
    %21 = arith.subf %13, %20 : vector<16x32xf32>
    %22 = arith.mulf %21, %21 : vector<16x32xf32>
    %cst_17 = arith.constant dense<0.000000e+00> : vector<16xf32>
    %23 = vector.multi_reduction <add>, %22, %cst_17 [1] : vector<16x32xf32> to vector<16xf32>
    %24 = vector.shape_cast %23 : vector<16xf32> to vector<16x1xf32>
    %cst_18 = arith.constant 3.200000e+01 : f32
    %25 = vector.broadcast %cst_18 : f32 to vector<16x1xf32>
    %26 = arith.divf %24, %25 : vector<16x1xf32>
    %27 = vector.broadcast %19 : vector<16x1xf32> to vector<16x32xf32>
    %28 = arith.subf %13, %27 : vector<16x32xf32>
    %cst_19 = arith.constant 9.99999974E-6 : f32
    %29 = vector.broadcast %cst_19 : f32 to vector<16x1xf32>
    %30 = arith.addf %26, %29 : vector<16x1xf32>
    %31 = math.rsqrt %30 : vector<16x1xf32>
    %32 = vector.broadcast %31 : vector<16x1xf32> to vector<16x32xf32>
    %33 = arith.mulf %28, %32 : vector<16x32xf32>
    %34 = vector.broadcast %14 : vector<1x32xf32> to vector<16x32xf32>
    %35 = arith.mulf %33, %34 : vector<16x32xf32>
    %36 = vector.broadcast %15 : vector<1x32xf32> to vector<16x32xf32>
    %37 = arith.addf %35, %36 : vector<16x32xf32>
    %c0_20 = arith.constant 0 : index
    %c0_21 = arith.constant 0 : index
    %38 = vector.load %arg8[%c0_20, %c0_21] : memref<16x32xf32, #tpu.memory_space<vmem>>, vector<16x32xf32>
    tpu.vector_store %arg8[%c0_20, %c0_21], %37 {strides = array<i32>} : memref<16x32xf32, #tpu.memory_space<vmem>>, vector<16x32xf32>,
    return
  }
  func.func @transform_0(%arg0: i32) -> (i32, i32) {
    %c0_i32 = arith.constant 0 : i32
    %c0_i32_0 = arith.constant 0 : i32
    return %arg0, %c0_i32 : i32, i32
  }
  func.func @transform_1(%arg0: i32) -> (i32, i32) {
    %c0_i32 = arith.constant 0 : i32
    %c0_i32_0 = arith.constant 0 : i32
    %c0_i32_1 = arith.constant 0 : i32
    return %c0_i32, %c0_i32_0 : i32, i32
  }
  func.func @transform_2(%arg0: i32) -> (i32, i32) {
    %c0_i32 = arith.constant 0 : i32
    %c0_i32_0 = arith.constant 0 : i32
    %c0_i32_1 = arith.constant 0 : i32
    return %c0_i32, %c0_i32_0 : i32, i32
  }
  func.func @transform_3(%arg0: i32) -> (i32, i32) {
    %c0_i32 = arith.constant 0 : i32
    %c0_i32_0 = arith.constant 0 : i32
    %c0_i32_1 = arith.constant 0 : i32
    return %c0_i32, %c0_i32_0 : i32, i32
  }
  func.func @transform_4(%arg0: i32) -> (i32, i32) {
    %c0_i32 = arith.constant 0 : i32
    %c0_i32_0 = arith.constant 0 : i32
    %c0_i32_1 = arith.constant 0 : i32
    return %c0_i32, %c0_i32_0 : i32, i32
  }
  func.func @transform_5(%arg0: i32) -> (i32, i32) {
    %c0_i32 = arith.constant 0 : i32
    %c0_i32_0 = arith.constant 0 : i32
    %c0_i32_1 = arith.constant 0 : i32
    return %c0_i32, %c0_i32_0 : i32, i32
  }
  func.func @transform_6(%arg0: i32) -> (i32, i32) {
    %c0_i32 = arith.constant 0 : i32
    %c0_i32_0 = arith.constant 0 : i32
    %c0_i32_1 = arith.constant 0 : i32
    return %c0_i32, %c0_i32_0 : i32, i32
  }
  func.func @transform_7(%arg0: i32) -> (i32, i32) {
    %c0_i32 = arith.constant 0 : i32
    %c0_i32_0 = arith.constant 0 : i32
    return %arg0, %c0_i32 : i32, i32
  }
}

</mosaic_0001>

<bundles_post_ra>
// kernel: _decoder_layer.5
= control target key start
LH: loop header
LB: loop body
LE: loop exit
PB: predicated region body
PF: predicated region fallthrough
CT: control target
= control target key end

     0   :  { %12 = vsyncpa [#allocation3], 0  ;;  %s835_s0 = inlined_call_operand.hbm [shape: f32[16,32], index: 0, kind: input, shape index: {}]   ;;  %s836_s1 = inlined_call_operand.hbm [shape: f32[32,64], index: 1, kind: input, shape index: {}]   ;;  %s837_s2 = inlined_call_operand.hbm [shape: f32[1,64], index: 2, kind: input, shape index: {}]   ;;  %s838_s3 = inlined_call_operand.hbm [shape: f32[64,32], index: 3, kind: input, shape index: {}]   ;;  %s839_s4 = inlined_call_operand.hbm [shape: f32[1,32], index: 4, kind: input, shape index: {}]   ;;  %s840_s5 = inlined_call_operand.hbm [shape: f32[1,32], index: 5, kind: input, shape index: {}]   ;;  %s841_s6 = inlined_call_operand.hbm [shape: f32[1,32], index: 6, kind: input, shape index: {}]   ;;  %s842_s7 = inlined_call_operand.hbm [shape: f32[16,32], index: 7, kind: output, shape index: {}]  }
   0x1   :  { %13 = vsyncpa [#allocation6], 0 }
   0x2   :  { %14 = vsyncpa [#allocation9], 0 }
   0x3   :  { %15 = vsyncpa [#allocation12], 0 }
   0x4   :  { %16 = vsyncpa [#allocation4], 0  ;;  %s655_s24 = smov [#allocation5]   ;;  %s656_s26 = smov [#allocation8]  }
   0x5   :  { %s34_s25 = sshll.u32 %s655_s24, 4  ;;  %s56_s27 = sshll.u32 %s656_s26, 4  ;;  %s35_s25 = int_to_ptr.vmem [resolvable:$true] %s34_s25  ;;  %s705_s27 = int_to_ptr.vmem [resolvable:$true] %s56_s27 }
   0x6   :  { %s469_s30 = scalar_lea.hbm %s836_s1, 512 }
   0x7   :  { %p470_p0 = scmp.ne.s32.totalorder %s836_s1, %s469_s30  ;;  %p473_p1 = scmp.lt.u32.totalorder %s469_s30, %s836_s1 }
   0x9   :  { %p475_p2 = pnand %p473_p1, %p470_p0 }
   0xb   :  { %478 = shalt.err (!%p475_p2)
}
   0xc   :  { %s479_s12 = scalar_lea.vmem %s35_s25, 512  ;;  %p484_p4 = scmp.lt.s32.totalorder %s35_s25, %s35_s25 }
   0xd   :  { %p480_p3 = scmp.ne.s32.totalorder %s35_s25, %s479_s12  ;;  %p485_p5 = scmp.lt.s32.totalorder %s479_s12, %s479_s12 }
   0xf   :  { %p486_p6 = por %p485_p5, %p484_p4 }
  0x11   :  { %p487_p7 = pnand %p486_p6, %p480_p3 }
  0x13   :  { %490 = shalt.err (!%p487_p7)
}
  0x14   :  { %s657_s13 = smov 128   ;;  %s658_s14 = smov 8  }
  0x15   :  { %40 = dma.hbm_to_vmem [thread:$0]  %s836_s1, 512, %s35_s25, [#allocation6], %s657_s13, %s657_s13, %s658_s14  }
  0x16   :  { %s491_s19 = scalar_lea.hbm %s838_s3, 1024 }
  0x17   :  { %p492_p8 = scmp.ne.s32.totalorder %s838_s3, %s491_s19  ;;  %p495_p9 = scmp.lt.u32.totalorder %s491_s19, %s838_s3 }
  0x19   :  { %p497_p10 = pnand %p495_p9, %p492_p8 }
  0x1b   :  { %500 = shalt.err (!%p497_p10)
}
  0x1c   :  { %s501_s24 = scalar_lea.vmem %s705_s27, 1024  ;;  %p506_p12 = scmp.lt.s32.totalorder %s705_s27, %s705_s27 }
  0x1d   :  { %p502_p11 = scmp.ne.s32.totalorder %s705_s27, %s501_s24  ;;  %p507_p13 = scmp.lt.s32.totalorder %s501_s24, %s501_s24 }
  0x1f   :  { %p508_p0 = por %p507_p13, %p506_p12 }
  0x21   :  { %p509_p1 = pnand %p508_p0, %p502_p11 }
  0x23   :  { %512 = shalt.err (!%p509_p1)
}
  0x24   :  { %62 = dma.hbm_to_vmem [thread:$0]  %s838_s3, 1024, %s705_s27, [#allocation9], %s657_s13, %s657_s13, %s658_s14  }
  0x25   :  { %s659_s26 = smov [#allocation11]   ;;  %s660_s29 = smov [#allocation2]  }
  0x26   :  { %s79_s28 = sshll.u32 %s659_s26, 4  ;;  %s22_s30 = sshll.u32 %s660_s29, 4  ;;  %s80_s28 = int_to_ptr.vmem [resolvable:$true] %s79_s28  ;;  %s742_s30 = int_to_ptr.vmem [resolvable:$true] %s22_s30 }
  0x27   :  { %s513_s10 = scalar_lea.hbm %s840_s5, 16 }
  0x28   :  { %p514_p2 = scmp.ne.s32.totalorder %s840_s5, %s513_s10  ;;  %p517_p3 = scmp.lt.u32.totalorder %s513_s10, %s840_s5 }
  0x2a   :  { %p519_p4 = pnand %p517_p3, %p514_p2 }
  0x2c   :  { %522 = shalt.err (!%p519_p4)
}
  0x2d   :  { %s523_s3 = scalar_lea.vmem %s80_s28, 16  ;;  %s527_s27 = scalar_lea.vmem %s80_s28, 32 }
  0x2e   :  { %p524_p5 = scmp.ne.s32.totalorder %s80_s28, %s523_s3  ;;  %p528_p6 = scmp.lt.s32.totalorder %s80_s28, %s80_s28 }
  0x2f   :  { %p529_p7 = scmp.lt.s32.totalorder %s527_s27, %s523_s3 }
  0x31   :  { %p530_p8 = por %p529_p7, %p528_p6 }
  0x33   :  { %p531_p9 = pnand %p530_p8, %p524_p5 }
  0x35   :  { %534 = shalt.err (!%p531_p9)
}
  0x36   :  { %82 = dma.hbm_to_vmem [thread:$0]  %s840_s5, 16, %s80_s28, [#allocation12]  }
  0x37   :  { %s535_s21 = scalar_lea.hbm %s835_s0, 256 }
  0x38   :  { %p536_p10 = scmp.ne.s32.totalorder %s835_s0, %s535_s21  ;;  %p539_p11 = scmp.lt.u32.totalorder %s535_s21, %s835_s0 }
  0x3a   :  { %p541_p12 = pnand %p539_p11, %p536_p10 }
  0x3c   :  { %544 = shalt.err (!%p541_p12)
}
  0x3d   :  { %s545_s25 = scalar_lea.vmem %s742_s30, 256  ;;  %p550_p0 = scmp.lt.s32.totalorder %s742_s30, %s742_s30 }
  0x3e   :  { %p546_p13 = scmp.ne.s32.totalorder %s742_s30, %s545_s25  ;;  %p551_p1 = scmp.lt.s32.totalorder %s545_s25, %s545_s25 }
  0x40   :  { %p552_p2 = por %p551_p1, %p550_p0 }
  0x42   :  { %p553_p3 = pnand %p552_p2, %p546_p13 }
  0x44   :  { %556 = shalt.err (!%p553_p3)
}
  0x45   :  { %28 = dma.hbm_to_vmem [thread:$0]  %s835_s0, 256, %s742_s30, [#allocation3], %s657_s13, %s657_s13, %s658_s14  }
  0x46   :  { %s661_s28 = smov [#allocation7]   ;;  %s662_s8 = smov [#allocation10]  }
  0x47   :  { %s47_s29 = sshll.u32 %s661_s28, 4  ;;  %s69_s9 = sshll.u32 %s662_s8, 4  ;;  %s48_s29 = int_to_ptr.vmem [resolvable:$true] %s47_s29  ;;  %s70_s9 = int_to_ptr.vmem [resolvable:$true] %s69_s9 }
  0x48   :  { %s557_s12 = scalar_lea.hbm %s837_s2, 16 }
  0x49   :  { %p558_p4 = scmp.ne.s32.totalorder %s837_s2, %s557_s12  ;;  %p561_p5 = scmp.lt.u32.totalorder %s557_s12, %s837_s2 }
  0x4b   :  { %p563_p6 = pnand %p561_p5, %p558_p4 }
  0x4d   :  { %566 = shalt.err (!%p563_p6)
}
  0x4e   :  { %s567_s0 = scalar_lea.vmem %s48_s29, 16  ;;  %s571_s30 = scalar_lea.vmem %s48_s29, 32 }
  0x4f   :  { %p568_p7 = scmp.ne.s32.totalorder %s48_s29, %s567_s0  ;;  %p572_p8 = scmp.lt.s32.totalorder %s48_s29, %s48_s29 }
  0x50   :  { %p573_p9 = scmp.lt.s32.totalorder %s571_s30, %s567_s0 }
  0x52   :  { %p574_p10 = por %p573_p9, %p572_p8 }
  0x54   :  { %p575_p11 = pnand %p574_p10, %p568_p7 }
  0x56   :  { %578 = shalt.err (!%p575_p11)
}
  0x57   :  { %50 = dma.hbm_to_vmem [thread:$0]  %s837_s2, 16, %s48_s29, [#allocation6]  }
  0x58   :  { %s579_s21 = scalar_lea.hbm %s839_s4, 16 }
  0x59   :  { %p580_p12 = scmp.ne.s32.totalorder %s839_s4, %s579_s21  ;;  %p583_p13 = scmp.lt.u32.totalorder %s579_s21, %s839_s4 }
  0x5b   :  { %p585_p0 = pnand %p583_p13, %p580_p12 }
  0x5d   :  { %588 = shalt.err (!%p585_p0)
}
  0x5e   :  { %s589_s25 = scalar_lea.vmem %s70_s9, 16  ;;  %s593_s5 = scalar_lea.vmem %s70_s9, 32 }
  0x5f   :  { %p590_p1 = scmp.ne.s32.totalorder %s70_s9, %s589_s25  ;;  %p594_p2 = scmp.lt.s32.totalorder %s70_s9, %s70_s9 }
  0x60   :  { %p595_p3 = scmp.lt.s32.totalorder %s593_s5, %s589_s25 }
  0x62   :  { %p596_p4 = por %p595_p3, %p594_p2 }
  0x64   :  { %p597_p5 = pnand %p596_p4, %p590_p1 }
  0x66   :  { %600 = shalt.err (!%p597_p5)
}
  0x67   :  { %72 = dma.hbm_to_vmem [thread:$0]  %s839_s4, 16, %s70_s9, [#allocation9]  }
  0x68   :  { %s663_s28 = smov [#allocation13]   ;;  %s601_s11 = scalar_lea.hbm %s841_s6, 16 }
  0x69   :  { %s89_s29 = sshll.u32 %s663_s28, 4  ;;  %p602_p6 = scmp.ne.s32.totalorder %s841_s6, %s601_s11  ;;  %s90_s29 = int_to_ptr.vmem [resolvable:$true] %s89_s29 }
  0x6a   :  { %p605_p7 = scmp.lt.u32.totalorder %s601_s11, %s841_s6 }
  0x6c   :  { %p607_p8 = pnand %p605_p7, %p602_p6 }
  0x6e   :  { %610 = shalt.err (!%p607_p8)
}
  0x6f   :  { %s611_s27 = scalar_lea.vmem %s90_s29, 16  ;;  %s615_s4 = scalar_lea.vmem %s90_s29, 32 }
  0x70   :  { %p612_p9 = scmp.ne.s32.totalorder %s90_s29, %s611_s27  ;;  %p616_p10 = scmp.lt.s32.totalorder %s90_s29, %s90_s29 }
  0x71   :  { %p617_p11 = scmp.lt.s32.totalorder %s615_s4, %s611_s27 }
  0x73   :  { %p618_p12 = por %p617_p11, %p616_p10 }
  0x75   :  { %p619_p13 = pnand %p618_p12, %p612_p9 }
  0x77   :  { %622 = shalt.err (!%p619_p13)
}
  0x78   :  { %92 = dma.hbm_to_vmem [thread:$0]  %s841_s6, 16, %s90_s29, [#allocation12]  }
  0x79   :  { %645 = dma.done.wait [#allocation3], 256  }
  0x7a   :  { %646 = vsyncadd [#allocation3], 4294967040 }
  0x7b   :  { %647 = dma.done.wait [#allocation6], 528  }
  0x7c   :  { %648 = vsyncadd [#allocation6], 4294966768 }
  0x7d   :  { %649 = dma.done.wait [#allocation9], 1040  }
  0x7e   :  { %650 = vsyncadd [#allocation9], 4294966256 }
  0x7f   :  { %651 = dma.done.wait [#allocation12], 32  }
  0x80   :  { %652 = vsyncadd [#allocation12], 4294967264  ;;  %vm127_vm0 = vcmask 261120   ;;  %v116_v0 = vld [vmem:[#allocation5] sm:$0xff]  ;;  %v117_v1 = vld [vmem:[#allocation5 + $0x8] sm:$0xff]  ;;  %vm226_vm1 = vcmask 523264  }
  0x81   :  { %v118_v2 = vld [vmem:[#allocation5 + $0x10] sm:$0xff]  ;;  %v431_v3 = vpack.c.bf16 %v117_v1, %v116_v0  ;;  %v119_v4 = vld [vmem:[#allocation5 + $0x18] sm:$0xff]  ;;  %v211_v7 = vld [vmem:[#allocation8] sm:$0xff]  ;;  %s664_s6 = smov [#allocation14]  }
  0x82   :  { %v114_v5 = vld [vmem:[#allocation2] sm:$0xff]  ;;  %v435_v6 = vpack.c.bf16 %v119_v4, %v118_v2  ;;  %v214_v11 = vld [vmem:[#allocation8 + $0x18] sm:$0xff]  ;;  %v215_v13 = vld [vmem:[#allocation8 + $0x20] sm:$0xff]  ;;  %s362_s30 = sshll.u32 %s664_s6, 4  ;;  %s363_s30 = int_to_ptr.vmem [resolvable:$true] %s362_s30 }
  0x83   :  { %409 = vmatprep.mubr.msk.f32.mxu0 %vm127_vm0, %v114_v5  ;;  %v212_v8 = vld [vmem:[#allocation8 + $0x8] sm:$0xff]  ;;  %v213_v9 = vld [vmem:[#allocation8 + $0x10] sm:$0xff]  ;;  %432 = vmatprep.subr.bf16.mxu0 %v431_v3  ;;  %v218_v18 = vld [vmem:[#allocation8 + $0x38] sm:$0xff]  ;;  %s623_s17 = scalar_lea.vmem %s363_s30, 256  ;;  %p628_p1 = scmp.lt.s32.totalorder %s363_s30, %s363_s30 }
  0x84   :  { %v439_v10 = vpack.c.bf16 %v212_v8, %v211_v7  ;;  %434 = vmatpush3.bf16.msra.mxu0 %v431_v3  ;;  %v443_v12 = vpack.c.bf16 %v214_v11, %v213_v9  ;;  %v216_v14 = vld [vmem:[#allocation8 + $0x28] sm:$0xff]  ;;  %v115_v16 = vld [vmem:[#allocation2 + $0x8] sm:$0xff]  ;;  %v377_v20 = vld [vmem:[#allocation7] ss:$0 sm:$0xff]  ;;  %p624_p0 = scmp.ne.s32.totalorder %s363_s30, %s623_s17  ;;  %p629_p2 = scmp.lt.s32.totalorder %s623_s17, %s623_s17 }
  0x85   :  { %436 = vmatprep.subr.bf16.mxu0 %v435_v6  ;;  %v447_v15 = vpack.c.bf16 %v216_v14, %v215_v13  ;;  %v217_v17 = vld [vmem:[#allocation8 + $0x30] sm:$0xff]  ;;  %v380_v27 = vld [vmem:[#allocation10] ss:$0 sm:$0xff]  ;;  %v383_v53 = vld [vmem:[#allocation11] ss:$0 sm:$0xff] }
  0x86   :  { %440 = vmatprep.subr.bf16.mxu1 %v439_v10  ;;  %v451_v19 = vpack.c.bf16 %v218_v18, %v217_v17  ;;  %v384_v55 = vld [vmem:[#allocation13] ss:$0 sm:$0xff]  ;;  %p630_p3 = por %p629_p2, %p628_p1 }
  0x87   :  { %442 = vmatpush3.bf16.msra.mxu1 %v439_v10 }
  0x88   :  { %444 = vmatprep.subr.bf16.mxu1 %v443_v12  ;;  %438 = vmatpush3.bf16.msra.mxu0 %v435_v6  ;;  %p631_p4 = pnand %p630_p3, %p624_p0 }
  0x8b   :  { %446 = vmatpush3.bf16.msra.mxu1 %v443_v12  ;;  %410 = vmatmul.mubr.msk.f32.vlgmr.msra.gmra.mrb[0].mxu0 %vm127_vm0, %v115_v16 }
  0x8c   :  { %448 = vmatprep.subr.bf16.mxu1 %v447_v15 }
  0x8f   :  { %450 = vmatpush3.bf16.msra.mxu1 %v447_v15 }
  0x90   :  { %452 = vmatprep.subr.bf16.mxu1 %v451_v19 }
  0x93   :  { %454 = vmatpush3.bf16.msra.mxu1 %v451_v19 }
 0x15e   :  { %v411_v21 = vpop.f32.mrb[0].mxu0 }
 0x15f   :  { %v206_v22 = vadd.f32 %v411_v21, %v377_v20  ;;  %v200_v23 = vpop.f32.mrb[1].mxu0 }
 0x160   :  { %v201_v24 = vadd.f32 %v377_v20, %v200_v23 }
 0x161   :  { %v210_v26 = vmax.f32 %v206_v22, 0.0 }
 0x162   :  { %v209_v25 = vmax.f32 %v201_v24, 0.0 }
 0x164   :  { %428 = vmatprep.mubr.msk.f32.mxu1 %vm226_vm1, %v209_v25 }
 0x165   :  { %429 = vmatmul.mubr.msk.f32.vlgmr.msra.gmra.mrb[0].mxu1 %vm226_vm1, %v210_v26 }
 0x238   :  { %v430_v28 = vpop.f32.mrb[0].mxu1 }
 0x239   :  { %v299_v29 = vpop.f32.mrb[1].mxu1  ;;  %v305_v30 = vadd.f32 %v430_v28, %v380_v27 }
 0x23a   :  { %v300_v31 = vadd.f32 %v380_v27, %v299_v29 }
 0x23b   :  { %v309_v34 = vadd.f32 %v305_v30, %v115_v16 }
 0x23c   :  { %v308_v32 = vadd.f32 %v300_v31, %v114_v5 }
 0x23d   :  { %v315_v35 = vsel %vm127_vm0, %v309_v34, 0.0 }
 0x23e   :  { %v312_v33 = vsel %vm127_vm0, %v308_v32, 0.0 }
 0x23f   :  { %313 = vadd.xlane.f32.xlu0 %v312_v33 }
 0x243   :  { %316 = vadd.xlane.f32.xlu0 %v315_v35 }
 0x2cc   :  { %v314_v36 = vpop.xlane.xlu0 %313 }
 0x2cd   :  { %v319_v37 = vmul.f32 0.03125, %v314_v36 }
 0x2cf   :  { %v321_v38 = vsub.f32 %v308_v32, %v319_v37 }
 0x2d0   :  { %v317_v39 = vpop.xlane.xlu0 %316 }
 0x2d1   :  { %v320_v40 = vmul.f32 0.03125, %v317_v39  ;;  %v323_v41 = vmul.f32 %v321_v38, %v321_v38 }
 0x2d3   :  { %v322_v42 = vsub.f32 %v309_v34, %v320_v40  ;;  %v325_v43 = vsel %vm127_vm0, %v323_v41, 0.0 }
 0x2d4   :  { %326 = vadd.xlane.f32.xlu1 %v325_v43 }
 0x2d5   :  { %v324_v44 = vmul.f32 %v322_v42, %v322_v42 }
 0x2d7   :  { %v328_v45 = vsel %vm127_vm0, %v324_v44, 0.0 }
 0x2d8   :  { %329 = vadd.xlane.f32.xlu1 %v328_v45 }
 0x361   :  { %v327_v46 = vpop.xlane.xlu1 %326 }
 0x362   :  { %v331_v47 = vmul.f32 0.03125, %v327_v46 }
 0x364   :  { %v333_v48 = vadd.f32 1e-05, %v331_v47 }
 0x365   :  { %v330_v49 = vpop.xlane.xlu1 %329 }
 0x366   :  { %465 = vrsqrt.f32 %v333_v48  ;;  %v332_v50 = vmul.f32 0.03125, %v330_v49 }
 0x368   :  { %v334_v51 = vadd.f32 1e-05, %v332_v50 }
 0x36a   :  { %467 = vrsqrt.f32 %v334_v51 }
 0x370   :  { %v466_v52 = vpop.eup %465 }
 0x371   :  { %v337_v54 = vmul.f32 %v466_v52, %v321_v38 }
 0x373   :  { %v345_v56 = vmul.f32 %v383_v53, %v337_v54 }
 0x374   :  { %v468_v57 = vpop.eup %467 }
 0x375   :  { %v338_v58 = vmul.f32 %v468_v57, %v322_v42  ;;  %v353_v59 = vadd.f32 %v384_v55, %v345_v56 }
 0x377   :  { %v346_v60 = vmul.f32 %v383_v53, %v338_v58  ;;  %355 = vst.msk [vmem:[#allocation14] sm:$0xff] %vm127_vm0, %v353_v59 }
 0x379   :  { %v354_v61 = vadd.f32 %v384_v55, %v346_v60 }
 0x37b   :  { %356 = vst.msk [vmem:[#allocation14 + $0x8] sm:$0xff] %vm127_vm0, %v354_v61 }
 0x37c   :  { %634 = shalt.err (!%p631_p4)
}
 0x37d   :  { %s635_s20 = scalar_lea.hbm %s842_s7, 256 }
 0x37e   :  { %p636_p5 = scmp.ne.s32.totalorder %s842_s7, %s635_s20  ;;  %p639_p6 = scmp.lt.u32.totalorder %s635_s20, %s842_s7 }
 0x380   :  { %p641_p7 = pnand %p639_p6, %p636_p5 }
 0x382   :  { %644 = shalt.err (!%p641_p7)
}
 0x383   :  { %368 = dma.vmem_to_hbm [thread:$0]  %s363_s30, 256, %s842_s7, [#allocation4], %s657_s13, %s657_s13, %s658_s14  }
 0x384   :  { %653 = dma.done.wait [#allocation4], 256  }
 0x385   :  { %654 = vsyncadd [#allocation4], 4294967040 }
 0x386   :  { %372 = vsyncpa [#allocation3], 1 }
 0x387   :  { %373 = vsyncpa [#allocation6], 1 }
 0x388   :  { %374 = vsyncpa [#allocation9], 1 }
 0x389   :  { %375 = vsyncpa [#allocation12], 1 }
 0x38a   :  { %376 = vsyncpa [#allocation4], 1 }

// kernel: _decoder_layer.3
= control target key start
LH: loop header
LB: loop body
LE: loop exit
PB: predicated region body
PF: predicated region fallthrough
CT: control target
= control target key end

     0   :  { %17 = vsyncpa [#allocation3], 0  ;;  %s3079_s0 = inlined_call_operand.hbm [shape: f32[2,8,32], index: 0, kind: input, shape index: {}]   ;;  %s3080_s1 = inlined_call_operand.hbm [shape: f32[2,8,32], index: 1, kind: input, shape index: {}]   ;;  %s3081_s2 = inlined_call_operand.hbm [shape: f32[32,32], index: 2, kind: input, shape index: {}]   ;;  %s3082_s3 = inlined_call_operand.hbm [shape: f32[1,32], index: 3, kind: input, shape index: {}]   ;;  %s3083_s4 = inlined_call_operand.hbm [shape: f32[32,32], index: 4, kind: input, shape index: {}]   ;;  %s3084_s5 = inlined_call_operand.hbm [shape: f32[1,32], index: 5, kind: input, shape index: {}]   ;;  %s3085_s6 = inlined_call_operand.hbm [shape: f32[32,32], index: 6, kind: input, shape index: {}]   ;;  %s3086_s7 = inlined_call_operand.hbm [shape: f32[1,32], index: 7, kind: input, shape index: {}]   ;;  %s3087_s8 = inlined_call_operand.hbm [shape: f32[32,32], index: 8, kind: input, shape index: {}]   ;;  %s3088_s9 = inlined_call_operand.hbm [shape: f32[1,32], index: 9, kind: input, shape index: {}]   ;;  %s3089_s10 = inlined_call_operand.hbm [shape: f32[1,32], index: 10, kind: input, shape index: {}]   ;;  %s3090_s11 = inlined_call_operand.hbm [shape: f32[1,32], index: 11, kind: input, shape index: {}]   ;;  %s3091_s12 = inlined_call_operand.hbm [shape: f32[2,8,32], index: 12, kind: output, shape index: {}]  }
   0x1   :  { %18 = vsyncpa [#allocation6], 0 }
   0x2   :  { %19 = vsyncpa [#allocation9], 0 }
   0x3   :  { %20 = vsyncpa [#allocation12], 0 }
   0x4   :  { %21 = vsyncpa [#allocation15], 0 }
   0x5   :  { %22 = vsyncpa [#allocation18], 0 }
   0x6   :  { %23 = vsyncpa [#allocation21], 0 }
   0x7   :  { %24 = vsyncpa [#allocation4], 0  ;;  %s2591_s21 = smov [#allocation5]   ;;  %s2592_s23 = smov [#allocation8]  }
   0x8   :  { %s42_s22 = sshll.u32 %s2591_s21, 4  ;;  %s67_s24 = sshll.u32 %s2592_s23, 4  ;;  %s43_s22 = int_to_ptr.vmem [resolvable:$true] %s42_s22  ;;  %s2678_s24 = int_to_ptr.vmem [resolvable:$true] %s67_s24 }
   0x9   :  { %s2289_s27 = scalar_lea.hbm %s3080_s1, 256 }
   0xa   :  { %p2290_p0 = scmp.ne.s32.totalorder %s3080_s1, %s2289_s27  ;;  %p2293_p1 = scmp.lt.u32.totalorder %s2289_s27, %s3080_s1 }
   0xc   :  { %p2295_p2 = pnand %p2293_p1, %p2290_p0 }
   0xe   :  { %2298 = shalt.err (!%p2295_p2)
}
   0xf   :  { %s2299_s14 = scalar_lea.vmem %s43_s22, 256  ;;  %p2304_p4 = scmp.lt.s32.totalorder %s43_s22, %s43_s22 }
  0x10   :  { %p2300_p3 = scmp.ne.s32.totalorder %s43_s22, %s2299_s14  ;;  %p2305_p5 = scmp.lt.s32.totalorder %s2299_s14, %s2299_s14 }
  0x12   :  { %p2306_p6 = por %p2305_p5, %p2304_p4 }
  0x14   :  { %p2307_p7 = pnand %p2306_p6, %p2300_p3 }
  0x16   :  { %2310 = shalt.err (!%p2307_p7)
}
  0x17   :  { %s2593_s15 = smov 128   ;;  %s2594_s16 = smov 8  }
  0x18   :  { %48 = dma.hbm_to_vmem [thread:$0]  %s3080_s1, 256, %s43_s22, [#allocation6], %s2593_s15, %s2593_s15, %s2594_s16  }
  0x19   :  { %s2311_s21 = scalar_lea.hbm %s3082_s3, 16 }
  0x1a   :  { %p2312_p8 = scmp.ne.s32.totalorder %s3082_s3, %s2311_s21  ;;  %p2315_p9 = scmp.lt.u32.totalorder %s2311_s21, %s3082_s3 }
  0x1c   :  { %p2317_p10 = pnand %p2315_p9, %p2312_p8 }
  0x1e   :  { %2320 = shalt.err (!%p2317_p10)
}
  0x1f   :  { %s2321_s28 = scalar_lea.vmem %s2678_s24, 16  ;;  %s2325_s1 = scalar_lea.vmem %s2678_s24, 32 }
  0x20   :  { %p2322_p11 = scmp.ne.s32.totalorder %s2678_s24, %s2321_s28  ;;  %p2326_p12 = scmp.lt.s32.totalorder %s2678_s24, %s2678_s24 }
  0x21   :  { %p2327_p13 = scmp.lt.s32.totalorder %s2325_s1, %s2321_s28 }
  0x23   :  { %p2328_p0 = por %p2327_p13, %p2326_p12 }
  0x25   :  { %p2329_p1 = pnand %p2328_p0, %p2322_p11 }
  0x27   :  { %2332 = shalt.err (!%p2329_p1)
}
  0x28   :  { %70 = dma.hbm_to_vmem [thread:$0]  %s3082_s3, 16, %s2678_s24, [#allocation9]  }
  0x29   :  { %s2595_s30 = smov [#allocation11]   ;;  %s2596_s14 = smov [#allocation14]  }
  0x2a   :  { %s89_s13 = sshll.u32 %s2595_s30, 4  ;;  %s111_s17 = sshll.u32 %s2596_s14, 4  ;;  %s90_s13 = int_to_ptr.vmem [resolvable:$true] %s89_s13  ;;  %s112_s17 = int_to_ptr.vmem [resolvable:$true] %s111_s17 }
  0x2b   :  { %s2333_s20 = scalar_lea.hbm %s3084_s5, 16 }
  0x2c   :  { %p2334_p2 = scmp.ne.s32.totalorder %s3084_s5, %s2333_s20  ;;  %p2337_p3 = scmp.lt.u32.totalorder %s2333_s20, %s3084_s5 }
  0x2e   :  { %p2339_p4 = pnand %p2337_p3, %p2334_p2 }
  0x30   :  { %2342 = shalt.err (!%p2339_p4)
}
  0x31   :  { %s2343_s3 = scalar_lea.vmem %s90_s13, 16  ;;  %s2347_s24 = scalar_lea.vmem %s90_s13, 32 }
  0x32   :  { %p2344_p5 = scmp.ne.s32.totalorder %s90_s13, %s2343_s3  ;;  %p2348_p6 = scmp.lt.s32.totalorder %s90_s13, %s90_s13 }
  0x33   :  { %p2349_p7 = scmp.lt.s32.totalorder %s2347_s24, %s2343_s3 }
  0x35   :  { %p2350_p8 = por %p2349_p7, %p2348_p6 }
  0x37   :  { %p2351_p9 = pnand %p2350_p8, %p2344_p5 }
  0x39   :  { %2354 = shalt.err (!%p2351_p9)
}
  0x3a   :  { %92 = dma.hbm_to_vmem [thread:$0]  %s3084_s5, 16, %s90_s13, [#allocation12]  }
  0x3b   :  { %s2355_s29 = scalar_lea.hbm %s3086_s7, 16 }
  0x3c   :  { %p2356_p10 = scmp.ne.s32.totalorder %s3086_s7, %s2355_s29  ;;  %p2359_p11 = scmp.lt.u32.totalorder %s2355_s29, %s3086_s7 }
  0x3e   :  { %p2361_p12 = pnand %p2359_p11, %p2356_p10 }
  0x40   :  { %2364 = shalt.err (!%p2361_p12)
}
  0x41   :  { %s2365_s20 = scalar_lea.vmem %s112_s17, 16  ;;  %s2369_s21 = scalar_lea.vmem %s112_s17, 32 }
  0x42   :  { %p2366_p13 = scmp.ne.s32.totalorder %s112_s17, %s2365_s20  ;;  %p2370_p0 = scmp.lt.s32.totalorder %s112_s17, %s112_s17 }
  0x43   :  { %p2371_p1 = scmp.lt.s32.totalorder %s2369_s21, %s2365_s20 }
  0x45   :  { %p2372_p2 = por %p2371_p1, %p2370_p0 }
  0x47   :  { %p2373_p3 = pnand %p2372_p2, %p2366_p13 }
  0x49   :  { %2376 = shalt.err (!%p2373_p3)
}
  0x4a   :  { %114 = dma.hbm_to_vmem [thread:$0]  %s3086_s7, 16, %s112_s17, [#allocation15]  }
  0x4b   :  { %s2597_s23 = smov [#allocation17]   ;;  %s2598_s26 = smov [#allocation2]  }
  0x4c   :  { %s133_s25 = sshll.u32 %s2597_s23, 4  ;;  %s30_s3 = sshll.u32 %s2598_s26, 4  ;;  %s134_s25 = int_to_ptr.vmem [resolvable:$true] %s133_s25  ;;  %s2737_s3 = int_to_ptr.vmem [resolvable:$true] %s30_s3 }
  0x4d   :  { %s2377_s28 = scalar_lea.hbm %s3088_s9, 16 }
  0x4e   :  { %p2378_p4 = scmp.ne.s32.totalorder %s3088_s9, %s2377_s28  ;;  %p2381_p5 = scmp.lt.u32.totalorder %s2377_s28, %s3088_s9 }
  0x50   :  { %p2383_p6 = pnand %p2381_p5, %p2378_p4 }
  0x52   :  { %2386 = shalt.err (!%p2383_p6)
}
  0x53   :  { %s2387_s7 = scalar_lea.vmem %s134_s25, 16  ;;  %s2391_s17 = scalar_lea.vmem %s134_s25, 32 }
  0x54   :  { %p2388_p7 = scmp.ne.s32.totalorder %s134_s25, %s2387_s7  ;;  %p2392_p8 = scmp.lt.s32.totalorder %s134_s25, %s134_s25 }
  0x55   :  { %p2393_p9 = scmp.lt.s32.totalorder %s2391_s17, %s2387_s7 }
  0x57   :  { %p2394_p10 = por %p2393_p9, %p2392_p8 }
  0x59   :  { %p2395_p11 = pnand %p2394_p10, %p2388_p7 }
  0x5b   :  { %2398 = shalt.err (!%p2395_p11)
}
  0x5c   :  { %136 = dma.hbm_to_vmem [thread:$0]  %s3088_s9, 16, %s134_s25, [#allocation18]  }
  0x5d   :  { %s2399_s21 = scalar_lea.hbm %s3079_s0, 256 }
  0x5e   :  { %p2400_p12 = scmp.ne.s32.totalorder %s3079_s0, %s2399_s21  ;;  %p2403_p13 = scmp.lt.u32.totalorder %s2399_s21, %s3079_s0 }
  0x60   :  { %p2405_p0 = pnand %p2403_p13, %p2400_p12 }
  0x62   :  { %2408 = shalt.err (!%p2405_p0)
}
  0x63   :  { %s2409_s24 = scalar_lea.vmem %s2737_s3, 256  ;;  %p2414_p2 = scmp.lt.s32.totalorder %s2737_s3, %s2737_s3 }
  0x64   :  { %p2410_p1 = scmp.ne.s32.totalorder %s2737_s3, %s2409_s24  ;;  %p2415_p3 = scmp.lt.s32.totalorder %s2409_s24, %s2409_s24 }
  0x66   :  { %p2416_p4 = por %p2415_p3, %p2414_p2 }
  0x68   :  { %p2417_p5 = pnand %p2416_p4, %p2410_p1 }
  0x6a   :  { %2420 = shalt.err (!%p2417_p5)
}
  0x6b   :  { %36 = dma.hbm_to_vmem [thread:$0]  %s3079_s0, 256, %s2737_s3, [#allocation3], %s2593_s15, %s2593_s15, %s2594_s16  }
  0x6c   :  { %s2599_s27 = smov [#allocation7]   ;;  %s2600_s1 = smov [#allocation10]  }
  0x6d   :  { %s54_s28 = sshll.u32 %s2599_s27, 4  ;;  %s76_s22 = sshll.u32 %s2600_s1, 4  ;;  %s55_s28 = int_to_ptr.vmem [resolvable:$true] %s54_s28  ;;  %s2771_s22 = int_to_ptr.vmem [resolvable:$true] %s76_s22 }
  0x6e   :  { %s2421_s7 = scalar_lea.hbm %s3081_s2, 512 }
  0x6f   :  { %p2422_p6 = scmp.ne.s32.totalorder %s3081_s2, %s2421_s7  ;;  %p2425_p7 = scmp.lt.u32.totalorder %s2421_s7, %s3081_s2 }
  0x71   :  { %p2427_p8 = pnand %p2425_p7, %p2422_p6 }
  0x73   :  { %2430 = shalt.err (!%p2427_p8)
}
  0x74   :  { %s2431_s0 = scalar_lea.vmem %s55_s28, 512  ;;  %p2436_p10 = scmp.lt.s32.totalorder %s55_s28, %s55_s28 }
  0x75   :  { %p2432_p9 = scmp.ne.s32.totalorder %s55_s28, %s2431_s0  ;;  %p2437_p11 = scmp.lt.s32.totalorder %s2431_s0, %s2431_s0 }
  0x77   :  { %p2438_p12 = por %p2437_p11, %p2436_p10 }
  0x79   :  { %p2439_p13 = pnand %p2438_p12, %p2432_p9 }
  0x7b   :  { %2442 = shalt.err (!%p2439_p13)
}
  0x7c   :  { %60 = dma.hbm_to_vmem [thread:$0]  %s3081_s2, 512, %s55_s28, [#allocation6], %s2593_s15, %s2593_s15, %s2594_s16  }
  0x7d   :  { %s2443_s13 = scalar_lea.hbm %s3083_s4, 512 }
  0x7e   :  { %p2444_p0 = scmp.ne.s32.totalorder %s3083_s4, %s2443_s13  ;;  %p2447_p1 = scmp.lt.u32.totalorder %s2443_s13, %s3083_s4 }
  0x80   :  { %p2449_p2 = pnand %p2447_p1, %p2444_p0 }
  0x82   :  { %2452 = shalt.err (!%p2449_p2)
}
  0x83   :  { %s2453_s25 = scalar_lea.vmem %s2771_s22, 512  ;;  %p2458_p4 = scmp.lt.s32.totalorder %s2771_s22, %s2771_s22 }
  0x84   :  { %p2454_p3 = scmp.ne.s32.totalorder %s2771_s22, %s2453_s25  ;;  %p2459_p5 = scmp.lt.s32.totalorder %s2453_s25, %s2453_s25 }
  0x86   :  { %p2460_p6 = por %p2459_p5, %p2458_p4 }
  0x88   :  { %p2461_p7 = pnand %p2460_p6, %p2454_p3 }
  0x8a   :  { %2464 = shalt.err (!%p2461_p7)
}
  0x8b   :  { %82 = dma.hbm_to_vmem [thread:$0]  %s3083_s4, 512, %s2771_s22, [#allocation9], %s2593_s15, %s2593_s15, %s2594_s16  }
  0x8c   :  { %s2601_s28 = smov [#allocation13]   ;;  %s2602_s29 = smov [#allocation16]  }
  0x8d   :  { %s98_s1 = sshll.u32 %s2601_s28, 4  ;;  %s120_s30 = sshll.u32 %s2602_s29, 4  ;;  %s99_s1 = int_to_ptr.vmem [resolvable:$true] %s98_s1  ;;  %s2808_s30 = int_to_ptr.vmem [resolvable:$true] %s120_s30 }
  0x8e   :  { %s2465_s14 = scalar_lea.hbm %s3085_s6, 512 }
  0x8f   :  { %p2466_p8 = scmp.ne.s32.totalorder %s3085_s6, %s2465_s14  ;;  %p2469_p9 = scmp.lt.u32.totalorder %s2465_s14, %s3085_s6 }
  0x91   :  { %p2471_p10 = pnand %p2469_p9, %p2466_p8 }
  0x93   :  { %2474 = shalt.err (!%p2471_p10)
}
  0x94   :  { %s2475_s4 = scalar_lea.vmem %s99_s1, 512  ;;  %p2480_p12 = scmp.lt.s32.totalorder %s99_s1, %s99_s1 }
  0x95   :  { %p2476_p11 = scmp.ne.s32.totalorder %s99_s1, %s2475_s4  ;;  %p2481_p13 = scmp.lt.s32.totalorder %s2475_s4, %s2475_s4 }
  0x97   :  { %p2482_p0 = por %p2481_p13, %p2480_p12 }
  0x99   :  { %p2483_p1 = pnand %p2482_p0, %p2476_p11 }
  0x9b   :  { %2486 = shalt.err (!%p2483_p1)
}
  0x9c   :  { %104 = dma.hbm_to_vmem [thread:$0]  %s3085_s6, 512, %s99_s1, [#allocation12], %s2593_s15, %s2593_s15, %s2594_s16  }
  0x9d   :  { %s2487_s13 = scalar_lea.hbm %s3087_s8, 512 }
  0x9e   :  { %p2488_p2 = scmp.ne.s32.totalorder %s3087_s8, %s2487_s13  ;;  %p2491_p3 = scmp.lt.u32.totalorder %s2487_s13, %s3087_s8 }
  0xa0   :  { %p2493_p4 = pnand %p2491_p3, %p2488_p2 }
  0xa2   :  { %2496 = shalt.err (!%p2493_p4)
}
  0xa3   :  { %s2497_s25 = scalar_lea.vmem %s2808_s30, 512  ;;  %p2502_p6 = scmp.lt.s32.totalorder %s2808_s30, %s2808_s30 }
  0xa4   :  { %p2498_p5 = scmp.ne.s32.totalorder %s2808_s30, %s2497_s25  ;;  %p2503_p7 = scmp.lt.s32.totalorder %s2497_s25, %s2497_s25 }
  0xa6   :  { %p2504_p8 = por %p2503_p7, %p2502_p6 }
  0xa8   :  { %p2505_p9 = pnand %p2504_p8, %p2498_p5 }
  0xaa   :  { %2508 = shalt.err (!%p2505_p9)
}
  0xab   :  { %126 = dma.hbm_to_vmem [thread:$0]  %s3087_s8, 512, %s2808_s30, [#allocation15], %s2593_s15, %s2593_s15, %s2594_s16  }
  0xac   :  { %s2603_s27 = smov [#allocation19]   ;;  %s2604_s1 = smov [#allocation20]  }
  0xad   :  { %s143_s28 = sshll.u32 %s2603_s27, 4  ;;  %s153_s29 = sshll.u32 %s2604_s1, 4  ;;  %s144_s28 = int_to_ptr.vmem [resolvable:$true] %s143_s28  ;;  %s154_s29 = int_to_ptr.vmem [resolvable:$true] %s153_s29 }
  0xae   :  { %s2509_s14 = scalar_lea.hbm %s3089_s10, 16 }
  0xaf   :  { %p2510_p10 = scmp.ne.s32.totalorder %s3089_s10, %s2509_s14  ;;  %p2513_p11 = scmp.lt.u32.totalorder %s2509_s14, %s3089_s10 }
  0xb1   :  { %p2515_p12 = pnand %p2513_p11, %p2510_p10 }
  0xb3   :  { %2518 = shalt.err (!%p2515_p12)
}
  0xb4   :  { %s2519_s8 = scalar_lea.vmem %s144_s28, 16  ;;  %s2523_s30 = scalar_lea.vmem %s144_s28, 32 }
  0xb5   :  { %p2520_p13 = scmp.ne.s32.totalorder %s144_s28, %s2519_s8  ;;  %p2524_p0 = scmp.lt.s32.totalorder %s144_s28, %s144_s28 }
  0xb6   :  { %p2525_p1 = scmp.lt.s32.totalorder %s2523_s30, %s2519_s8 }
  0xb8   :  { %p2526_p2 = por %p2525_p1, %p2524_p0 }
  0xba   :  { %p2527_p3 = pnand %p2526_p2, %p2520_p13 }
  0xbc   :  { %2530 = shalt.err (!%p2527_p3)
}
  0xbd   :  { %146 = dma.hbm_to_vmem [thread:$0]  %s3089_s10, 16, %s144_s28, [#allocation18]  }
  0xbe   :  { %s2531_s5 = scalar_lea.hbm %s3090_s11, 16 }
  0xbf   :  { %p2532_p4 = scmp.ne.s32.totalorder %s3090_s11, %s2531_s5  ;;  %p2535_p5 = scmp.lt.u32.totalorder %s2531_s5, %s3090_s11 }
  0xc1   :  { %p2537_p6 = pnand %p2535_p5, %p2532_p4 }
  0xc3   :  { %2540 = shalt.err (!%p2537_p6)
}
  0xc4   :  { %s2541_s9 = scalar_lea.vmem %s154_s29, 16  ;;  %s2545_s25 = scalar_lea.vmem %s154_s29, 32 }
  0xc5   :  { %p2542_p7 = scmp.ne.s32.totalorder %s154_s29, %s2541_s9  ;;  %p2546_p8 = scmp.lt.s32.totalorder %s154_s29, %s154_s29 }
  0xc6   :  { %p2547_p9 = scmp.lt.s32.totalorder %s2545_s25, %s2541_s9 }
  0xc8   :  { %p2548_p10 = por %p2547_p9, %p2546_p8 }
  0xca   :  { %p2549_p11 = pnand %p2548_p10, %p2542_p7 }
  0xcc   :  { %2552 = shalt.err (!%p2549_p11)
}
  0xcd   :  { %156 = dma.hbm_to_vmem [thread:$0]  %s3090_s11, 16, %s154_s29, [#allocation21]  }
  0xce   :  { %2575 = dma.done.wait [#allocation3], 256  }
  0xcf   :  { %2576 = vsyncadd [#allocation3], 4294967040 }
  0xd0   :  { %2577 = dma.done.wait [#allocation6], 768  }
  0xd1   :  { %2578 = vsyncadd [#allocation6], 4294966528 }
  0xd2   :  { %2579 = dma.done.wait [#allocation9], 528  }
  0xd3   :  { %2580 = vsyncadd [#allocation9], 4294966768 }
  0xd4   :  { %2581 = dma.done.wait [#allocation12], 528  }
  0xd5   :  { %2582 = vsyncadd [#allocation12], 4294966768 }
  0xd6   :  { %2583 = dma.done.wait [#allocation15], 528  }
  0xd7   :  { %2584 = vsyncadd [#allocation15], 4294966768 }
  0xd8   :  { %2585 = dma.done.wait [#allocation18], 32  }
  0xd9   :  { %2586 = vsyncadd [#allocation18], 4294967264 }
  0xda   :  { %2587 = dma.done.wait [#allocation21], 16  }
  0xdb   :  { %2588 = vsyncadd [#allocation21], 4294967280  ;;  %v204_v0 = vld [vmem:[#allocation10] sm:$0xff]  ;;  %v205_v1 = vld [vmem:[#allocation10 + $0x8] sm:$0xff]  ;;  %vm227_vm0 = vcmask 261120   ;;  %v2605_v18 = vmov 0.0  }
  0xdc   :  { %v199_v2 = vld [vmem:[#allocation7] sm:$0xff]  ;;  %v2207_v3 = vpack.c.bf16 %v205_v1, %v204_v0  ;;  %v200_v4 = vld [vmem:[#allocation7 + $0x8] sm:$0xff]  ;;  %v206_v5 = vld [vmem:[#allocation10 + $0x10] sm:$0xff]  ;;  %vm2606_vm1 = vmmov 0   ;;  %vm477_vm2 = vcmask 64512   ;;  %s2607_s11 = smov 120  }
  0xdd   :  { %v207_v6 = vld [vmem:[#allocation10 + $0x18] sm:$0xff]  ;;  %v2199_v7 = vpack.c.bf16 %v200_v4, %v199_v2  ;;  %v201_v9 = vld [vmem:[#allocation7 + $0x10] sm:$0xff]  ;;  %v2872_v15 = vld [vmem:[#allocation2 + $0x8] sm:$0xff]  ;;  %s2608_s2 = smov 112   ;;  %s2609_s27 = smov 104   ;;  %vm1819_vm3 = vcmask 195584  }
  0xde   :  { %v2211_v8 = vpack.c.bf16 %v207_v6, %v206_v5  ;;  %v202_v10 = vld [vmem:[#allocation7 + $0x18] sm:$0xff]  ;;  %v2869_v11 = vld [vmem:[#allocation2] sm:$0xff]  ;;  %2208 = vmatprep.subr.bf16.mxu1 %v2207_v3  ;;  %v195_v13 = vld [vmem:[#allocation5] sm:$0xff]  ;;  %s2610_s28 = smov 16   ;;  %s2611_s1 = smov 24   ;;  %vm1816_vm4 = vcmask 130048  }
  0xdf   :  { %v2203_v12 = vpack.c.bf16 %v202_v10, %v201_v9  ;;  %2210 = vmatpush3.bf16.msra.mxu1 %v2207_v3  ;;  %2200 = vmatprep.subr.bf16.mxu0 %v2199_v7  ;;  %v197_v14 = vadd.f32 %v195_v13, %v2869_v11  ;;  %v196_v16 = vld [vmem:[#allocation5 + $0x8] sm:$0xff]  ;;  %v209_v19 = vld [vmem:[#allocation13] sm:$0xff]  ;;  %v210_v20 = vld [vmem:[#allocation13 + $0x8] sm:$0xff]  ;;  %s2612_s29 = smov [#allocation22]  }
  0xe0   :  { %2202 = vmatpush3.bf16.msra.mxu0 %v2199_v7  ;;  %2212 = vmatprep.subr.bf16.mxu1 %v2211_v8  ;;  %v198_v17 = vadd.f32 %v196_v16, %v2872_v15  ;;  %v211_v21 = vld [vmem:[#allocation13 + $0x10] sm:$0xff]  ;;  %v2215_v22 = vpack.c.bf16 %v210_v20, %v209_v19  ;;  %v212_v23 = vld [vmem:[#allocation13 + $0x18] sm:$0xff]  ;;  %v1987_v43 = vld [vmem:[#allocation14] ss:$0 sm:$0xff]  ;;  %s1963_s7 = sshll.u32 %s2612_s29, 4  ;;  %s1964_s7 = int_to_ptr.vmem [resolvable:$true] %s1963_s7 }
  0xe1   :  { %2204 = vmatprep.subr.bf16.mxu0 %v2203_v12  ;;  %2094 = vmatprep.mubr.msk.f32.mxu1 %vm227_vm0, %v197_v14  ;;  %v2219_v24 = vpack.c.bf16 %v212_v23, %v211_v21  ;;  %v1984_v25 = vld [vmem:[#allocation11] ss:$0 sm:$0xff]  ;;  %v1981_v27 = vld [vmem:[#allocation8] ss:$0 sm:$0xff]  ;;  %s2553_s17 = scalar_lea.vmem %s1964_s7, 256  ;;  %p2558_p13 = scmp.lt.s32.totalorder %s1964_s7, %s1964_s7 }
  0xe2   :  { %2083 = vmatprep.mubr.msk.f32.mxu0 %vm227_vm0, %v197_v14  ;;  %p2554_p12 = scmp.ne.s32.totalorder %s1964_s7, %s2553_s17  ;;  %p2559_p0 = scmp.lt.s32.totalorder %s2553_s17, %s2553_s17 }
  0xe3   :  { %2214 = vmatpush3.bf16.msra.mxu1 %v2211_v8 }
  0xe4   :  { %2206 = vmatpush3.bf16.msra.mxu0 %v2203_v12  ;;  %2108 = vmatprep.subr.mxu1 %v2605_v18  ;;  %p2560_p1 = por %p2559_p0, %p2558_p13 }
  0xe5   :  { %2216 = vmatprep.subr.bf16.mxu0 %v2215_v22 }
  0xe6   :  { %2095 = vmatmul.mubr.msk.f32.vlgmr.msra.gmra.mrb[0].mxu1 %vm227_vm0, %v198_v17  ;;  %p2561_p2 = pnand %p2560_p1, %p2554_p12 }
  0xe7   :  { %2084 = vmatmul.mubr.msk.f32.vlgmr.msra.gmra.mrb[0].mxu0 %vm227_vm0, %v198_v17  ;;  %2110 = vmatprep.mubr.msk.f32.mxu1 %vm2606_vm1, %v2605_v18 }
  0xe8   :  { %2105 = vmatprep.mubr.msk.f32.mxu0 %vm227_vm0, %v2869_v11  ;;  %2218 = vmatpush3.bf16.msra.mxu0 %v2215_v22 }
  0xe9   :  { %2220 = vmatprep.subr.bf16.mxu0 %v2219_v24 }
  0xec   :  { %2222 = vmatpush3.bf16.msra.mxu0 %v2219_v24 }
  0xed   :  { %2128 = vmatprep.subr.mxu0 %v2605_v18 }
  0xef   :  { %2106 = vmatmul.mubr.msk.f32.vlgmr.msra.gmra.mrb[2].mxu0 %vm227_vm0, %v2872_v15 }
  0xf0   :  { %2130 = vmatprep.mubr.msk.f32.mxu0 %vm2606_vm1, %v2605_v18 }
 0x1b9   :  { %v2096_v26 = vpop.f32.mrb[0].mxu1 }
 0x1ba   :  { %v381_v28 = vpop.f32.mrb[1].mxu1  ;;  %v2085_v29 = vpop.f32.mrb[0].mxu0  ;;  %v2898_v33 = vadd.f32 %v2096_v26, %v1984_v25 }
 0x1bb   :  { %v2889_v30 = vadd.f32 %v1984_v25, %v381_v28  ;;  %v300_v31 = vpop.f32.mrb[1].mxu0  ;;  %v2906_v34 = vadd.f32 %v2085_v29, %v1981_v27 }
 0x1bc   :  { %v2891_v32 = vadd.f32 %v1981_v27, %v300_v31 }
 0x1bd   :  { %800 = vrot.lane.b32.xlu1 %v2889_v30, %s2607_s11  ;;  %2109 = vmatpush3.xpose.msk.msra.mxu1 %vm477_vm2, %v2889_v30 }
 0x1be   :  { %2113 = vmatprep.subr.mxu1 %v2605_v18 }
 0x1c0   :  { %2111 = vmatmul.mubr.msk.f32.vlgmr.msra.gmra.mrb[2].mxu1 %vm477_vm2, %v2891_v32 }
 0x1c1   :  { %878 = vrot.lane.b32.xlu1 %v2898_v33, %s2607_s11  ;;  %2114 = vmatpush3.xpose.msk.msra.mxu1 %vm477_vm2, %v2898_v33 }
 0x1c2   :  { %2115 = vmatprep.mubr.msk.f32.mxu1 %vm2606_vm1, %v2605_v18  ;;  %2118 = vmatprep.subr.mxu1 %v2605_v18  ;;  %v2107_v42 = vpop.f32.mrb[2].mxu0 }
 0x1c3   :  { %v2921_v44 = vadd.f32 %v2107_v42, %v1987_v43  ;;  %v468_v45 = vpop.f32.mrb[3].mxu0 }
 0x1c4   :  { %2116 = vmatmul.mubr.msk.f32.vlgmr.msra.gmra.mrb[4].mxu1 %vm477_vm2, %v2906_v34  ;;  %v2923_v46 = vadd.f32 %v1987_v43, %v468_v45 }
 0x1c5   :  { %876 = vrot.lane.b32.xlu1 %v2906_v34, %s2607_s11  ;;  %2120 = vmatprep.mubr.msk.f32.mxu1 %vm2606_vm1, %v2605_v18 }
 0x1c6   :  { %2119 = vmatpush3.msra.mxu1 %v2923_v46 }
 0x1c7   :  { %2123 = vmatprep.subr.mxu1 %v2605_v18 }
 0x1c9   :  { %975 = vrot.lane.b32.xlu1 %v2923_v46, %s2607_s11 }
 0x22f   :  { %v801_v35 = vpop.permute.xlu1 %800 }
 0x230   :  { %2129 = vmatpush3.xpose.msk.msra.mxu0 %vm477_vm2, %v801_v35 }
 0x231   :  { %2138 = vmatprep.subr.mxu0 %v2605_v18 }
 0x233   :  { %v879_v47 = vpop.permute.xlu1 %878 }
 0x237   :  { %v877_v50 = vpop.permute.xlu1 %876 }
 0x23b   :  { %v976_v55 = vpop.permute.xlu1 %975 }
 0x293   :  { %v550_v36 = vpop.f32.mrb[2].mxu1 }
 0x294   :  { %v2112_v37 = vpop.f32.mrb[3].mxu1  ;;  %v630_v38 = vsel %vm477_vm2, %v550_v36, -inf }
 0x295   :  { %631 = vmax.xlane.f32.xlu0 %v630_v38 }
 0x297   :  { %v626_v39 = vpop.f32.mrb[4].mxu1 }
 0x298   :  { %v2117_v40 = vpop.f32.mrb[5].mxu1  ;;  %v633_v41 = vsel %vm477_vm2, %v626_v39, -inf }
 0x299   :  { %634 = vmax.xlane.f32.xlu0 %v633_v41 }
 0x2af   :  { %798 = vrot.lane.b32.xlu0 %v2891_v32, %s2607_s11 }
 0x322   :  { %v632_v48 = vpop.xlane.xlu0 %631 }
 0x323   :  { %v636_v49 = vsub.f32 %v550_v36, %v632_v48 }
 0x325   :  { %v638_v51 = vmul.f32 1.442695, %v636_v49 }
 0x326   :  { %v635_v52 = vpop.xlane.xlu0 %634 }
 0x327   :  { %2253 = vpow2.f32 %v638_v51  ;;  %v637_v53 = vsub.f32 %v626_v39, %v635_v52 }
 0x329   :  { %v640_v54 = vmul.f32 1.442695, %v637_v53 }
 0x32a   :  { %v799_v56 = vpop.permute.xlu0 %798 }
 0x32b   :  { %2255 = vpow2.f32 %v640_v54  ;;  %2131 = vmatmul.mubr.msk.f32.vlgmr.msra.gmra.mrb[4].mxu0 %vm477_vm2, %v799_v56 }
 0x32c   :  { %2139 = vmatpush3.msra.mxu0 %v976_v55  ;;  %2140 = vmatprep.mubr.msk.f32.mxu0 %vm2606_vm1, %v2605_v18 }
 0x32d   :  { %2148 = vmatprep.subr.mxu0 %v2605_v18 }
 0x331   :  { %v2935_v57 = vpop.eup %2253 }
 0x332   :  { %2121 = vmatmul.mubr.msk.f32.vlgmr.msra.gmra.mrb[6].mxu1 %vm477_vm2, %v2935_v57 }
 0x333   :  { %2124 = vmatpush3.msra.mxu1 %v2921_v44  ;;  %2125 = vmatprep.mubr.msk.f32.mxu1 %vm2606_vm1, %v2605_v18 }
 0x334   :  { %2133 = vmatprep.subr.mxu1 %v2605_v18 }
 0x335   :  { %v2943_v58 = vpop.eup %2255 }
 0x336   :  { %2126 = vmatmul.mubr.msk.f32.vlgmr.msra.gmra.mrb[8].mxu1 %vm477_vm2, %v2943_v58 }
 0x337   :  { %2135 = vmatprep.mubr.msk.f32.mxu1 %vm2606_vm1, %v2605_v18 }
 0x33a   :  { %2134 = vmatpush3.xpose.msk.msra.mxu1 %vm477_vm2, %v879_v47 }
 0x33b   :  { %2143 = vmatprep.subr.mxu1 %v2605_v18 }
 0x33d   :  { %2136 = vmatmul.mubr.msk.f32.vlgmr.msra.gmra.mrb[10].mxu1 %vm477_vm2, %v877_v50 }
 0x33e   :  { %2145 = vmatprep.mubr.msk.f32.mxu1 %vm2606_vm1, %v2605_v18 }
 0x3fe   :  { %v872_v59 = vpop.f32.mrb[4].mxu0 }
 0x3ff   :  { %v2132_v60 = vpop.f32.mrb[5].mxu0  ;;  %v954_v61 = vsel %vm477_vm2, %v872_v59, -inf }
 0x400   :  { %955 = vmax.xlane.f32.xlu1 %v954_v61 }
 0x405   :  { %v2955_v62 = vpop.f32.mrb[6].mxu1 }
 0x406   :  { %v2122_v63 = vpop.f32.mrb[7].mxu1 }
 0x409   :  { %v2957_v0 = vpop.f32.mrb[8].mxu1 }
 0x40a   :  { %v2127_v1 = vpop.f32.mrb[9].mxu1 }
 0x410   :  { %v950_v2 = vpop.f32.mrb[10].mxu1 }
 0x411   :  { %v2137_v3 = vpop.f32.mrb[11].mxu1  ;;  %1132 = vrot.lane.b32.xlu1 %v2889_v30, %s2608_s2  ;;  %v957_v4 = vsel %vm477_vm2, %v950_v2, -inf }
 0x412   :  { %958 = vmax.xlane.f32.xlu0 %v957_v4 }
 0x415   :  { %1210 = vrot.lane.b32.xlu1 %v2898_v33, %s2608_s2 }
 0x419   :  { %1130 = vrot.lane.b32.xlu1 %v2891_v32, %s2608_s2 }
 0x41d   :  { %1208 = vrot.lane.b32.xlu1 %v2906_v34, %s2608_s2 }
 0x421   :  { %1382 = vrot.lane.b32.xlu1 %v2921_v44, %s2608_s2 }
 0x425   :  { %1462 = vrot.lane.b32.xlu1 %v2889_v30, %s2609_s27 }
 0x428   :  { %1052 = vrot.lane.b32.xlu0 %v2921_v44, %s2607_s11 }
 0x42c   :  { %1306 = vrot.lane.b32.xlu0 %v2923_v46, %s2608_s2 }
 0x48d   :  { %v956_v5 = vpop.xlane.xlu1 %955 }
 0x48e   :  { %v960_v6 = vsub.f32 %v872_v59, %v956_v5 }
 0x490   :  { %v962_v7 = vmul.f32 1.442695, %v960_v6  ;;  %v642_v6 = vsel %vm477_vm2, %v2935_v57, 0.0 }
 0x491   :  { %v1133_v8 = vpop.permute.xlu1 %1132 }
 0x492   :  { %2257 = vpow2.f32 %v962_v7 }
 0x495   :  { %v1211_v9 = vpop.permute.xlu1 %1210 }
 0x499   :  { %v1131_v13 = vpop.permute.xlu1 %1130 }
 0x49c   :  { %v2970_v10 = vpop.eup %2257 }
 0x49d   :  { %2141 = vmatmul.mubr.msk.f32.vlgmr.msra.gmra.mrb[6].mxu0 %vm477_vm2, %v2970_v10  ;;  %v1209_v20 = vpop.permute.xlu1 %1208 }
 0x49e   :  { %2149 = vmatpush3.xpose.msk.msra.mxu0 %vm477_vm2, %v1133_v8  ;;  %2150 = vmatprep.mubr.msk.f32.mxu0 %vm2606_vm1, %v2605_v18 }
 0x49f   :  { %v959_v12 = vpop.xlane.xlu0 %958  ;;  %2158 = vmatprep.subr.mxu0 %v2605_v18 }
 0x4a0   :  { %v961_v14 = vsub.f32 %v950_v2, %v959_v12  ;;  %v645_v12 = vsel %vm477_vm2, %v2943_v58, 0.0 }
 0x4a1   :  { %2151 = vmatmul.mubr.msk.f32.vlgmr.msra.gmra.mrb[8].mxu0 %vm477_vm2, %v1131_v13  ;;  %v1383_v22 = vpop.permute.xlu1 %1382 }
 0x4a2   :  { %v964_v16 = vmul.f32 1.442695, %v961_v14  ;;  %2160 = vmatprep.mubr.msk.f32.mxu0 %vm2606_vm1, %v2605_v18 }
 0x4a3   :  { %v1053_v17 = vpop.permute.xlu0 %1052 }
 0x4a4   :  { %2259 = vpow2.f32 %v964_v16  ;;  %2144 = vmatpush3.msra.mxu1 %v1053_v17 }
 0x4a5   :  { %2153 = vmatprep.subr.mxu1 %v2605_v18  ;;  %v1463_v36 = vpop.permute.xlu1 %1462 }
 0x4a7   :  { %v1307_v19 = vpop.permute.xlu0 %1306 }
 0x4a8   :  { %2159 = vmatpush3.msra.mxu0 %v1307_v19 }
 0x4a9   :  { %2168 = vmatprep.subr.mxu0 %v2605_v18 }
 0x4ae   :  { %v2983_v21 = vpop.eup %2259 }
 0x4af   :  { %2146 = vmatmul.mubr.msk.f32.vlgmr.msra.gmra.mrb[12].mxu1 %vm477_vm2, %v2983_v21  ;;  %v969_v60 = vsel %vm477_vm2, %v2983_v21, 0.0 }
 0x4b0   :  { %2154 = vmatpush3.xpose.msk.msra.mxu1 %vm477_vm2, %v1211_v9  ;;  %2155 = vmatprep.mubr.msk.f32.mxu1 %vm2606_vm1, %v2605_v18 }
 0x4b1   :  { %2163 = vmatprep.subr.mxu1 %v2605_v18 }
 0x4b3   :  { %2156 = vmatmul.mubr.msk.f32.vlgmr.msra.gmra.mrb[14].mxu1 %vm477_vm2, %v1209_v20 }
 0x4b4   :  { %2164 = vmatpush3.msra.mxu1 %v1383_v22  ;;  %2165 = vmatprep.mubr.msk.f32.mxu1 %vm2606_vm1, %v2605_v18 }
 0x4b5   :  { %2173 = vmatprep.subr.mxu1 %v2605_v18 }
 0x570   :  { %v2995_v23 = vpop.f32.mrb[6].mxu0 }
 0x571   :  { %v2142_v24 = vpop.f32.mrb[7].mxu0 }
 0x574   :  { %v1204_v25 = vpop.f32.mrb[8].mxu0 }
 0x575   :  { %v2152_v26 = vpop.f32.mrb[9].mxu0  ;;  %v1286_v27 = vsel %vm477_vm2, %v1204_v25, -inf }
 0x576   :  { %1287 = vmax.xlane.f32.xlu1 %v1286_v27  ;;  %v214_v26 = vld [vmem:[#allocation16] sm:$0xff]  ;;  %v215_v27 = vld [vmem:[#allocation16 + $0x8] sm:$0xff] }
 0x582   :  { %v2998_v28 = vpop.f32.mrb[12].mxu1 }
 0x583   :  { %v2147_v29 = vpop.f32.mrb[13].mxu1 }
 0x584   :  { %v216_v29 = vld [vmem:[#allocation16 + $0x10] sm:$0xff] }
 0x586   :  { %v1282_v30 = vpop.f32.mrb[14].mxu1 }
 0x587   :  { %v2157_v31 = vpop.f32.mrb[15].mxu1  ;;  %1460 = vrot.lane.b32.xlu1 %v2891_v32, %s2609_s27  ;;  %v1289_v35 = vsel %vm477_vm2, %v1282_v30, -inf }
 0x588   :  { %1290 = vmax.xlane.f32.xlu0 %v1289_v35  ;;  %v217_v31 = vld [vmem:[#allocation16 + $0x18] sm:$0xff] }
 0x589   :  { %v2227_v35 = vpack.c.bf16 %v217_v31, %v216_v29 }
 0x59e   :  { %1540 = vrot.lane.b32.xlu0 %v2898_v33, %s2609_s27 }
 0x5a2   :  { %1538 = vrot.lane.b32.xlu0 %v2906_v34, %s2609_s27 }
 0x603   :  { %v1288_v37 = vpop.xlane.xlu1 %1287 }
 0x604   :  { %v1292_v38 = vsub.f32 %v1204_v25, %v1288_v37 }
 0x606   :  { %v1294_v39 = vmul.f32 1.442695, %v1292_v38 }
 0x607   :  { %v1461_v33 = vpop.permute.xlu1 %1460 }
 0x608   :  { %2261 = vpow2.f32 %v1294_v39 }
 0x612   :  { %v2262_v40 = vpop.eup %2261 }
 0x613   :  { %2161 = vmatmul.mubr.msk.f32.vlgmr.msra.gmra.mrb[10].mxu0 %vm477_vm2, %v2262_v40  ;;  %v1298_v61 = vsel %vm477_vm2, %v2262_v40, 0.0 }
 0x614   :  { %2169 = vmatpush3.xpose.msk.msra.mxu0 %vm477_vm2, %v1463_v36  ;;  %2170 = vmatprep.mubr.msk.f32.mxu0 %vm2606_vm1, %v2605_v18 }
 0x615   :  { %v1291_v32 = vpop.xlane.xlu0 %1290  ;;  %2178 = vmatprep.subr.mxu0 %v2605_v18 }
 0x616   :  { %v1293_v41 = vsub.f32 %v1282_v30, %v1291_v32  ;;  %v2223_v30 = vpack.c.bf16 %v215_v27, %v214_v26 }
 0x617   :  { %2171 = vmatmul.mubr.msk.f32.vlgmr.msra.gmra.mrb[12].mxu0 %vm477_vm2, %v1461_v33 }
 0x618   :  { %v1296_v34 = vmul.f32 1.442695, %v1293_v41  ;;  %2180 = vmatprep.mubr.msk.f32.mxu0 %vm2606_vm1, %v2605_v18 }
 0x619   :  { %v1541_v42 = vpop.permute.xlu0 %1540 }
 0x61a   :  { %2263 = vpow2.f32 %v1296_v34 }
 0x61d   :  { %v1539_v45 = vpop.permute.xlu0 %1538 }
 0x624   :  { %v2264_v43 = vpop.eup %2263 }
 0x625   :  { %2166 = vmatmul.mubr.msk.f32.vlgmr.msra.gmra.mrb[16].mxu1 %vm477_vm2, %v2264_v43  ;;  %v1301_v59 = vsel %vm477_vm2, %v2264_v43, 0.0 }
 0x626   :  { %2174 = vmatpush3.xpose.msk.msra.mxu1 %vm477_vm2, %v1541_v42  ;;  %2175 = vmatprep.mubr.msk.f32.mxu1 %vm2606_vm1, %v2605_v18 }
 0x627   :  { %2183 = vmatprep.subr.mxu1 %v2605_v18 }
 0x629   :  { %2176 = vmatmul.mubr.msk.f32.vlgmr.msra.gmra.mrb[18].mxu1 %vm477_vm2, %v1539_v45 }
 0x62a   :  { %2185 = vmatprep.mubr.msk.f32.mxu1 %vm2606_vm1, %v2605_v18  ;;  %v966_v18 = vsel %vm477_vm2, %v2970_v10, 0.0 }
 0x6e6   :  { %v3023_v47 = vpop.f32.mrb[10].mxu0 }
 0x6e7   :  { %v2162_v48 = vpop.f32.mrb[11].mxu0 }
 0x6ea   :  { %v1534_v49 = vpop.f32.mrb[12].mxu0 }
 0x6eb   :  { %v2172_v50 = vpop.f32.mrb[13].mxu0  ;;  %v1616_v51 = vsel %vm477_vm2, %v1534_v49, -inf }
 0x6ec   :  { %1617 = vmax.xlane.f32.xlu1 %v1616_v51 }
 0x6f8   :  { %v1454_v52 = vpop.f32.mrb[16].mxu1 }
 0x6f9   :  { %v2167_v53 = vpop.f32.mrb[17].mxu1 }
 0x6fc   :  { %v1612_v54 = vpop.f32.mrb[18].mxu1 }
 0x6fd   :  { %v2177_v55 = vpop.f32.mrb[19].mxu1  ;;  %1712 = vrot.lane.b32.xlu1 %v2921_v44, %s2609_s27  ;;  %v1619_v56 = vsel %vm477_vm2, %v1612_v54, -inf }
 0x6fe   :  { %1620 = vmax.xlane.f32.xlu0 %v1619_v56 }
 0x714   :  { %1636 = vrot.lane.b32.xlu0 %v2923_v46, %s2609_s27 }
 0x721   :  { %967 = vadd.xlane.f32.xlu1 %v966_v18 }
 0x725   :  { %1302 = vadd.xlane.f32.xlu1 %v1301_v59 }
 0x733   :  { %970 = vadd.xlane.f32.xlu0 %v969_v60 }
 0x737   :  { %1299 = vadd.xlane.f32.xlu0 %v1298_v61 }
 0x779   :  { %v1618_v44 = vpop.xlane.xlu1 %1617 }
 0x77a   :  { %v1622_v63 = vsub.f32 %v1534_v49, %v1618_v44  ;;  %v2016_v44 = vld [vmem:[#allocation17] ss:$0 sm:$0xff] }
 0x77c   :  { %v1624_v1 = vmul.f32 1.442695, %v1622_v63 }
 0x77d   :  { %v1713_v2 = vpop.permute.xlu1 %1712 }
 0x77e   :  { %2265 = vpow2.f32 %v1624_v1  ;;  %2184 = vmatpush3.msra.mxu1 %v1713_v2 }
 0x788   :  { %v2266_v46 = vpop.eup %2265 }
 0x789   :  { %v1628_v3 = vsel %vm477_vm2, %v2266_v46, 0.0 }
 0x78a   :  { %1629 = vadd.xlane.f32.xlu0 %v1628_v3 }
 0x78b   :  { %v1621_v4 = vpop.xlane.xlu0 %1620 }
 0x78c   :  { %v1623_v5 = vsub.f32 %v1612_v54, %v1621_v4 }
 0x78e   :  { %v1626_v7 = vmul.f32 1.442695, %v1623_v5  ;;  %643 = vadd.xlane.f32.xlu0 %v642_v6 }
 0x78f   :  { %v1637_v8 = vpop.permute.xlu0 %1636 }
 0x790   :  { %2267 = vpow2.f32 %v1626_v7  ;;  %2179 = vmatpush3.msra.mxu0 %v1637_v8 }
 0x791   :  { %2181 = vmatmul.mubr.msk.f32.vlgmr.msra.gmra.mrb[14].mxu0 %vm477_vm2, %v2266_v46  ;;  %2224 = vmatprep.subr.bf16.mxu0 %v2223_v30 }
 0x792   :  { %2226 = vmatpush3.bf16.msra.mxu0 %v2223_v30 }
 0x793   :  { %2228 = vmatprep.subr.bf16.mxu0 %v2227_v35 }
 0x796   :  { %2230 = vmatpush3.bf16.msra.mxu0 %v2227_v35 }
 0x79a   :  { %v2268_v9 = vpop.eup %2267 }
 0x79b   :  { %2186 = vmatmul.mubr.msk.f32.vlgmr.msra.gmra.mrb[20].mxu1 %vm477_vm2, %v2268_v9  ;;  %v1631_v10 = vsel %vm477_vm2, %v2268_v9, 0.0 }
 0x79c   :  { %1632 = vadd.xlane.f32.xlu1 %v1631_v10 }
 0x7a0   :  { %646 = vadd.xlane.f32.xlu1 %v645_v12 }
 0x7ae   :  { %v968_v13 = vpop.xlane.xlu1 %967 }
 0x7af   :  { %2269 = vrcp.f32 %v968_v13 }
 0x7b2   :  { %v1303_v57 = vpop.xlane.xlu1 %1302 }
 0x7b3   :  { %2271 = vrcp.f32 %v1303_v57 }
 0x7b9   :  { %v2270_v14 = vpop.eup %2269 }
 0x7ba   :  { %v1128_v16 = vmul.f32 %v2270_v14, %v2995_v23 }
 0x7bc   :  { %1792 = vrot.lane.b32.xlu0 %v1128_v16, %s2594_s16 }
 0x7bd   :  { %v2272_v17 = vpop.eup %2271 }
 0x7be   :  { %v1459_v19 = vmul.f32 %v2272_v17, %v1454_v52 }
 0x7c0   :  { %v971_v20 = vpop.xlane.xlu0 %970  ;;  %1802 = vrot.lane.b32.xlu0 %v1459_v19, %s2610_s28 }
 0x7c1   :  { %2273 = vrcp.f32 %v971_v20 }
 0x7c4   :  { %v1300_v21 = vpop.xlane.xlu0 %1299 }
 0x7c5   :  { %2275 = vrcp.f32 %v1300_v21 }
 0x7cb   :  { %v2274_v22 = vpop.eup %2273 }
 0x7cc   :  { %v1129_v58 = vmul.f32 %v2274_v22, %v2998_v28  ;;  %v2017_v22 = vld [vmem:[#allocation19] ss:$0 sm:$0xff] }
 0x7ce   :  { %1794 = vrot.lane.b32.xlu1 %v1129_v58, %s2594_s16 }
 0x7cf   :  { %v2276_v24 = vpop.eup %2275 }
 0x7d0   :  { %v1458_v25 = vmul.f32 %v2276_v24, %v3023_v47 }
 0x7d2   :  { %1800 = vrot.lane.b32.xlu1 %v1458_v25, %s2610_s28 }
 0x817   :  { %v1630_v23 = vpop.xlane.xlu0 %1629 }
 0x818   :  { %2277 = vrcp.f32 %v1630_v23  ;;  %v2018_v23 = vld [vmem:[#allocation20] ss:$0 sm:$0xff] }
 0x81b   :  { %v644_v34 = vpop.xlane.xlu0 %643 }
 0x822   :  { %v2278_v28 = vpop.eup %2277 }
 0x829   :  { %v1633_v36 = vpop.xlane.xlu1 %1632 }
 0x82a   :  { %2279 = vrcp.f32 %v1633_v36 }
 0x82b   :  { %2281 = vrcp.f32 %v644_v34 }
 0x82d   :  { %v647_v42 = vpop.xlane.xlu1 %646 }
 0x82e   :  { %2283 = vrcp.f32 %v647_v42  ;;  %v1793_v47 = vpop.permute.xlu0 %1792 }
 0x832   :  { %v1803_v56 = vpop.permute.xlu0 %1802 }
 0x834   :  { %v2280_v40 = vpop.eup %2279 }
 0x835   :  { %v2282_v45 = vpop.eup %2281 }
 0x836   :  { %v796_v49 = vmul.f32 %v2282_v45, %v2955_v62 }
 0x838   :  { %v1814_v50 = vsel %vm477_vm2, %v796_v49, %v1793_v47  ;;  %v2284_v54 = vpop.eup %2283 }
 0x839   :  { %v797_v55 = vmul.f32 %v2284_v54, %v2957_v0 }
 0x840   :  { %v1795_v43 = vpop.permute.xlu1 %1794 }
 0x841   :  { %v1815_v18 = vsel %vm477_vm2, %v797_v55, %v1795_v43 }
 0x842   :  { %v1818_v59 = vsel %vm1816_vm4, %v1815_v18, %v1803_v56 }
 0x844   :  { %v1801_v48 = vpop.permute.xlu1 %1800 }
 0x845   :  { %v1817_v51 = vsel %vm1816_vm4, %v1814_v50, %v1801_v48 }
 0x864   :  { %v1708_v37 = vpop.f32.mrb[14].mxu0 }
 0x865   :  { %v1788_v38 = vmul.f32 %v2278_v28, %v1708_v37  ;;  %v2182_v39 = vpop.f32.mrb[15].mxu0 }
 0x867   :  { %1808 = vrot.lane.b32.xlu1 %v1788_v38, %s2611_s1 }
 0x86e   :  { %v1784_v32 = vpop.f32.mrb[20].mxu1 }
 0x86f   :  { %v1789_v33 = vmul.f32 %v2280_v40, %v1784_v32  ;;  %v2187_v41 = vpop.f32.mrb[21].mxu1 }
 0x871   :  { %1810 = vrot.lane.b32.xlu0 %v1789_v33, %s2611_s1 }
 0x8d9   :  { %v1809_v52 = vpop.permute.xlu1 %1808 }
 0x8da   :  { %v1820_v53 = vsel %vm1819_vm3, %v1817_v51, %v1809_v52 }
 0x8db   :  { %2196 = vmatprep.mubr.msk.f32.mxu0 %vm227_vm0, %v1820_v53 }
 0x8e3   :  { %v1811_v60 = vpop.permute.xlu0 %1810 }
 0x8e4   :  { %v1821_v61 = vsel %vm1819_vm3, %v1818_v59, %v1811_v60 }
 0x8e5   :  { %2197 = vmatmul.mubr.msk.f32.vlgmr.msra.gmra.mrb[16].mxu0 %vm227_vm0, %v1821_v61 }
 0x9b8   :  { %v2198_v62 = vpop.f32.mrb[16].mxu0 }
 0x9b9   :  { %v1904_v63 = vadd.f32 %v2198_v62, %v2872_v15  ;;  %v1894_v1 = vpop.f32.mrb[17].mxu0 }
 0x9ba   :  { %v1903_v2 = vadd.f32 %v1894_v1, %v2869_v11 }
 0x9bb   :  { %v1912_v46 = vadd.f32 %v2016_v44, %v1904_v63 }
 0x9bc   :  { %v1911_v3 = vadd.f32 %v2016_v44, %v1903_v2 }
 0x9bd   :  { %v1916_v4 = vsel %vm227_vm0, %v1912_v46, 0.0 }
 0x9be   :  { %1917 = vadd.xlane.f32.xlu0 %v1916_v4  ;;  %v1913_v0 = vsel %vm227_vm0, %v1911_v3, 0.0 }
 0x9bf   :  { %1914 = vadd.xlane.f32.xlu1 %v1913_v0 }
 0xa4b   :  { %v1918_v5 = vpop.xlane.xlu0 %1917 }
 0xa4c   :  { %v1921_v6 = vmul.f32 0.03125, %v1918_v5  ;;  %v1915_v7 = vpop.xlane.xlu1 %1914 }
 0xa4d   :  { %v1920_v8 = vmul.f32 0.03125, %v1915_v7 }
 0xa4e   :  { %v1923_v9 = vsub.f32 %v1912_v46, %v1921_v6 }
 0xa4f   :  { %v1922_v10 = vsub.f32 %v1911_v3, %v1920_v8 }
 0xa50   :  { %v1925_v12 = vmul.f32 %v1923_v9, %v1923_v9 }
 0xa51   :  { %v1924_v13 = vmul.f32 %v1922_v10, %v1922_v10 }
 0xa52   :  { %v1929_v15 = vsel %vm227_vm0, %v1925_v12, 0.0 }
 0xa53   :  { %1930 = vadd.xlane.f32.xlu1 %v1929_v15  ;;  %v1926_v11 = vsel %vm227_vm0, %v1924_v13, 0.0 }
 0xa54   :  { %1927 = vadd.xlane.f32.xlu0 %v1926_v11 }
 0xae0   :  { %v1931_v57 = vpop.xlane.xlu1 %1930 }
 0xae1   :  { %v1933_v14 = vmul.f32 0.03125, %v1931_v57  ;;  %v1928_v16 = vpop.xlane.xlu0 %1927 }
 0xae2   :  { %v1932_v17 = vmul.f32 0.03125, %v1928_v16 }
 0xae3   :  { %v1935_v19 = vadd.f32 1e-05, %v1933_v14 }
 0xae4   :  { %v1934_v20 = vadd.f32 1e-05, %v1932_v17 }
 0xae5   :  { %2285 = vrsqrt.f32 %v1935_v19 }
 0xae6   :  { %2287 = vrsqrt.f32 %v1934_v20 }
 0xaef   :  { %v2286_v21 = vpop.eup %2285 }
 0xaf0   :  { %v2288_v58 = vpop.eup %2287  ;;  %v1939_v24 = vmul.f32 %v2286_v21, %v1923_v9 }
 0xaf1   :  { %v1938_v25 = vmul.f32 %v2288_v58, %v1922_v10 }
 0xaf2   :  { %v1947_v26 = vmul.f32 %v2017_v22, %v1939_v24 }
 0xaf3   :  { %v1946_v27 = vmul.f32 %v2017_v22, %v1938_v25 }
 0xaf4   :  { %v1955_v29 = vadd.f32 %v2018_v23, %v1947_v26 }
 0xaf5   :  { %v1954_v30 = vadd.f32 %v2018_v23, %v1946_v27 }
 0xaf6   :  { %1957 = vst.msk [vmem:[#allocation22 + $0x8] sm:$0xff] %vm227_vm0, %v1955_v29 }
 0xaf7   :  { %1956 = vst.msk [vmem:[#allocation22] sm:$0xff] %vm227_vm0, %v1954_v30 }
 0xaf8   :  { %2564 = shalt.err (!%p2561_p2)
}
 0xaf9   :  { %s2565_s19 = scalar_lea.hbm %s3091_s12, 256 }
 0xafa   :  { %p2566_p3 = scmp.ne.s32.totalorder %s3091_s12, %s2565_s19  ;;  %p2569_p4 = scmp.lt.u32.totalorder %s2565_s19, %s3091_s12 }
 0xafc   :  { %p2571_p5 = pnand %p2569_p4, %p2566_p3 }
 0xafe   :  { %2574 = shalt.err (!%p2571_p5)
}
 0xaff   :  { %1969 = dma.vmem_to_hbm [thread:$0]  %s1964_s7, 256, %s3091_s12, [#allocation4], %s2593_s15, %s2593_s15, %s2594_s16  }
 0xb00   :  { %2589 = dma.done.wait [#allocation4], 256  }
 0xb01   :  { %2590 = vsyncadd [#allocation4], 4294967040 }
 0xb02   :  { %1973 = vsyncpa [#allocation3], 1 }
 0xb03   :  { %1974 = vsyncpa [#allocation6], 1 }
 0xb04   :  { %1975 = vsyncpa [#allocation9], 1 }
 0xb05   :  { %1976 = vsyncpa [#allocation12], 1 }
 0xb06   :  { %1977 = vsyncpa [#allocation15], 1 }
 0xb07   :  { %1978 = vsyncpa [#allocation18], 1 }
 0xb08   :  { %1979 = vsyncpa [#allocation21], 1 }
 0xb09   :  { %1980 = vsyncpa [#allocation4], 1 }

// kernel: _decoder_layer.4
= control target key start
LH: loop header
LB: loop body
LE: loop exit
PB: predicated region body
PF: predicated region fallthrough
CT: control target
= control target key end

     0   :  { %19 = vsyncpa [#allocation3], 0  ;;  %s3510_s0 = inlined_call_operand.hbm [shape: f32[2,8,32], index: 0, kind: input, shape index: {}]   ;;  %s3511_s1 = inlined_call_operand.hbm [shape: f32[2,8,32], index: 1, kind: input, shape index: {}]   ;;  %s3512_s2 = inlined_call_operand.hbm [shape: f32[2,16,32], index: 2, kind: input, shape index: {}]   ;;  %s3513_s3 = inlined_call_operand.hbm [shape: f32[2,16,32], index: 3, kind: input, shape index: {}]   ;;  %s3514_s4 = inlined_call_operand.hbm [shape: f32[32,32], index: 4, kind: input, shape index: {}]   ;;  %s3515_s5 = inlined_call_operand.hbm [shape: f32[1,32], index: 5, kind: input, shape index: {}]   ;;  %s3516_s6 = inlined_call_operand.hbm [shape: f32[32,32], index: 6, kind: input, shape index: {}]   ;;  %s3517_s7 = inlined_call_operand.hbm [shape: f32[1,32], index: 7, kind: input, shape index: {}]   ;;  %s3518_s8 = inlined_call_operand.hbm [shape: f32[32,32], index: 8, kind: input, shape index: {}]   ;;  %s3519_s9 = inlined_call_operand.hbm [shape: f32[1,32], index: 9, kind: input, shape index: {}]   ;;  %s3520_s10 = inlined_call_operand.hbm [shape: f32[32,32], index: 10, kind: input, shape index: {}]   ;;  %s3521_s11 = inlined_call_operand.hbm [shape: f32[1,32], index: 11, kind: input, shape index: {}]   ;;  %s3522_s12 = inlined_call_operand.hbm [shape: f32[1,32], index: 12, kind: input, shape index: {}]   ;;  %s3523_s13 = inlined_call_operand.hbm [shape: f32[1,32], index: 13, kind: input, shape index: {}]   ;;  %s3524_s14 = inlined_call_operand.hbm [shape: f32[2,8,32], index: 14, kind: output, shape index: {}]  }
   0x1   :  { %20 = vsyncpa [#allocation6], 0 }
   0x2   :  { %21 = vsyncpa [#allocation9], 0 }
   0x3   :  { %22 = vsyncpa [#allocation12], 0 }
   0x4   :  { %23 = vsyncpa [#allocation15], 0 }
   0x5   :  { %24 = vsyncpa [#allocation18], 0 }
   0x6   :  { %25 = vsyncpa [#allocation21], 0 }
   0x7   :  { %26 = vsyncpa [#allocation24], 0 }
   0x8   :  { %27 = vsyncpa [#allocation4], 0  ;;  %s2960_s29 = smov [#allocation5]   ;;  %s2961_s15 = smov [#allocation8]  }
   0x9   :  { %s45_s30 = sshll.u32 %s2960_s29, 4  ;;  %s69_s16 = sshll.u32 %s2961_s15, 4  ;;  %s46_s30 = int_to_ptr.vmem [resolvable:$true] %s45_s30  ;;  %s3060_s16 = int_to_ptr.vmem [resolvable:$true] %s69_s16 }
   0xa   :  { %s2612_s19 = scalar_lea.hbm %s3511_s1, 256 }
   0xb   :  { %p2613_p0 = scmp.ne.s32.totalorder %s3511_s1, %s2612_s19  ;;  %p2616_p1 = scmp.lt.u32.totalorder %s2612_s19, %s3511_s1 }
   0xd   :  { %p2618_p2 = pnand %p2616_p1, %p2613_p0 }
   0xf   :  { %2621 = shalt.err (!%p2618_p2)
}
  0x10   :  { %s2622_s24 = scalar_lea.vmem %s46_s30, 256  ;;  %p2627_p4 = scmp.lt.s32.totalorder %s46_s30, %s46_s30 }
  0x11   :  { %p2623_p3 = scmp.ne.s32.totalorder %s46_s30, %s2622_s24  ;;  %p2628_p5 = scmp.lt.s32.totalorder %s2622_s24, %s2622_s24 }
  0x13   :  { %p2629_p6 = por %p2628_p5, %p2627_p4 }
  0x15   :  { %p2630_p7 = pnand %p2629_p6, %p2623_p3 }
  0x17   :  { %2633 = shalt.err (!%p2630_p7)
}
  0x18   :  { %s2962_s25 = smov 128   ;;  %s2963_s26 = smov 8  }
  0x19   :  { %51 = dma.hbm_to_vmem [thread:$0]  %s3511_s1, 256, %s46_s30, [#allocation6], %s2962_s25, %s2962_s25, %s2963_s26  }
  0x1a   :  { %s2634_s17 = scalar_lea.hbm %s3513_s3, 512 }
  0x1b   :  { %p2635_p8 = scmp.ne.s32.totalorder %s3513_s3, %s2634_s17  ;;  %p2638_p9 = scmp.lt.u32.totalorder %s2634_s17, %s3513_s3 }
  0x1d   :  { %p2640_p10 = pnand %p2638_p9, %p2635_p8 }
  0x1f   :  { %2643 = shalt.err (!%p2640_p10)
}
  0x20   :  { %s2644_s22 = scalar_lea.vmem %s3060_s16, 512  ;;  %p2649_p12 = scmp.lt.s32.totalorder %s3060_s16, %s3060_s16 }
  0x21   :  { %p2645_p11 = scmp.ne.s32.totalorder %s3060_s16, %s2644_s22  ;;  %p2650_p13 = scmp.lt.s32.totalorder %s2644_s22, %s2644_s22 }
  0x23   :  { %p2651_p0 = por %p2650_p13, %p2649_p12 }
  0x25   :  { %p2652_p1 = pnand %p2651_p0, %p2645_p11 }
  0x27   :  { %2655 = shalt.err (!%p2652_p1)
}
  0x28   :  { %75 = dma.hbm_to_vmem [thread:$0]  %s3513_s3, 512, %s3060_s16, [#allocation9], %s2962_s25, %s2962_s25, %s2963_s26  }
  0x29   :  { %s2964_s23 = smov [#allocation11]   ;;  %s2965_s27 = smov [#allocation14]  }
  0x2a   :  { %s94_s24 = sshll.u32 %s2964_s23, 4  ;;  %s116_s28 = sshll.u32 %s2965_s27, 4  ;;  %s95_s24 = int_to_ptr.vmem [resolvable:$true] %s94_s24  ;;  %s117_s28 = int_to_ptr.vmem [resolvable:$true] %s116_s28 }
  0x2b   :  { %s2656_s17 = scalar_lea.hbm %s3515_s5, 16 }
  0x2c   :  { %p2657_p2 = scmp.ne.s32.totalorder %s3515_s5, %s2656_s17  ;;  %p2660_p3 = scmp.lt.u32.totalorder %s2656_s17, %s3515_s5 }
  0x2e   :  { %p2662_p4 = pnand %p2660_p3, %p2657_p2 }
  0x30   :  { %2665 = shalt.err (!%p2662_p4)
}
  0x31   :  { %s2666_s3 = scalar_lea.vmem %s95_s24, 16  ;;  %s2670_s16 = scalar_lea.vmem %s95_s24, 32 }
  0x32   :  { %p2667_p5 = scmp.ne.s32.totalorder %s95_s24, %s2666_s3  ;;  %p2671_p6 = scmp.lt.s32.totalorder %s95_s24, %s95_s24 }
  0x33   :  { %p2672_p7 = scmp.lt.s32.totalorder %s2670_s16, %s2666_s3 }
  0x35   :  { %p2673_p8 = por %p2672_p7, %p2671_p6 }
  0x37   :  { %p2674_p9 = pnand %p2673_p8, %p2667_p5 }
  0x39   :  { %2677 = shalt.err (!%p2674_p9)
}
  0x3a   :  { %97 = dma.hbm_to_vmem [thread:$0]  %s3515_s5, 16, %s95_s24, [#allocation12]  }
  0x3b   :  { %s2678_s27 = scalar_lea.hbm %s3517_s7, 16 }
  0x3c   :  { %p2679_p10 = scmp.ne.s32.totalorder %s3517_s7, %s2678_s27  ;;  %p2682_p11 = scmp.lt.u32.totalorder %s2678_s27, %s3517_s7 }
  0x3e   :  { %p2684_p12 = pnand %p2682_p11, %p2679_p10 }
  0x40   :  { %2687 = shalt.err (!%p2684_p12)
}
  0x41   :  { %s2688_s19 = scalar_lea.vmem %s117_s28, 16  ;;  %s2692_s20 = scalar_lea.vmem %s117_s28, 32 }
  0x42   :  { %p2689_p13 = scmp.ne.s32.totalorder %s117_s28, %s2688_s19  ;;  %p2693_p0 = scmp.lt.s32.totalorder %s117_s28, %s117_s28 }
  0x43   :  { %p2694_p1 = scmp.lt.s32.totalorder %s2692_s20, %s2688_s19 }
  0x45   :  { %p2695_p2 = por %p2694_p1, %p2693_p0 }
  0x47   :  { %p2696_p3 = pnand %p2695_p2, %p2689_p13 }
  0x49   :  { %2699 = shalt.err (!%p2696_p3)
}
  0x4a   :  { %119 = dma.hbm_to_vmem [thread:$0]  %s3517_s7, 16, %s117_s28, [#allocation15]  }
  0x4b   :  { %s2966_s21 = smov [#allocation17]   ;;  %s2967_s16 = smov [#allocation20]  }
  0x4c   :  { %s138_s3 = sshll.u32 %s2966_s21, 4  ;;  %s160_s22 = sshll.u32 %s2967_s16, 4  ;;  %s139_s3 = int_to_ptr.vmem [resolvable:$true] %s138_s3  ;;  %s161_s22 = int_to_ptr.vmem [resolvable:$true] %s160_s22 }
  0x4d   :  { %s2700_s23 = scalar_lea.hbm %s3519_s9, 16 }
  0x4e   :  { %p2701_p4 = scmp.ne.s32.totalorder %s3519_s9, %s2700_s23  ;;  %p2704_p5 = scmp.lt.u32.totalorder %s2700_s23, %s3519_s9 }
  0x50   :  { %p2706_p6 = pnand %p2704_p5, %p2701_p4 }
  0x52   :  { %2709 = shalt.err (!%p2706_p6)
}
  0x53   :  { %s2710_s7 = scalar_lea.vmem %s139_s3, 16  ;;  %s2714_s28 = scalar_lea.vmem %s139_s3, 32 }
  0x54   :  { %p2711_p7 = scmp.ne.s32.totalorder %s139_s3, %s2710_s7  ;;  %p2715_p8 = scmp.lt.s32.totalorder %s139_s3, %s139_s3 }
  0x55   :  { %p2716_p9 = scmp.lt.s32.totalorder %s2714_s28, %s2710_s7 }
  0x57   :  { %p2717_p10 = por %p2716_p9, %p2715_p8 }
  0x59   :  { %p2718_p11 = pnand %p2717_p10, %p2711_p7 }
  0x5b   :  { %2721 = shalt.err (!%p2718_p11)
}
  0x5c   :  { %141 = dma.hbm_to_vmem [thread:$0]  %s3519_s9, 16, %s139_s3, [#allocation18]  }
  0x5d   :  { %s2722_s24 = scalar_lea.hbm %s3521_s11, 16 }
  0x5e   :  { %p2723_p12 = scmp.ne.s32.totalorder %s3521_s11, %s2722_s24  ;;  %p2726_p13 = scmp.lt.u32.totalorder %s2722_s24, %s3521_s11 }
  0x60   :  { %p2728_p0 = pnand %p2726_p13, %p2723_p12 }
  0x62   :  { %2731 = shalt.err (!%p2728_p0)
}
  0x63   :  { %s2732_s23 = scalar_lea.vmem %s161_s22, 16  ;;  %s2736_s27 = scalar_lea.vmem %s161_s22, 32 }
  0x64   :  { %p2733_p1 = scmp.ne.s32.totalorder %s161_s22, %s2732_s23  ;;  %p2737_p2 = scmp.lt.s32.totalorder %s161_s22, %s161_s22 }
  0x65   :  { %p2738_p3 = scmp.lt.s32.totalorder %s2736_s27, %s2732_s23 }
  0x67   :  { %p2739_p4 = por %p2738_p3, %p2737_p2 }
  0x69   :  { %p2740_p5 = pnand %p2739_p4, %p2733_p1 }
  0x6b   :  { %2743 = shalt.err (!%p2740_p5)
}
  0x6c   :  { %163 = dma.hbm_to_vmem [thread:$0]  %s3521_s11, 16, %s161_s22, [#allocation21]  }
  0x6d   :  { %s2968_s29 = smov [#allocation2]   ;;  %s2969_s17 = smov [#allocation7]  }
  0x6e   :  { %s33_s15 = sshll.u32 %s2968_s29, 4  ;;  %s57_s7 = sshll.u32 %s2969_s17, 4  ;;  %s34_s15 = int_to_ptr.vmem [resolvable:$true] %s33_s15  ;;  %s3145_s7 = int_to_ptr.vmem [resolvable:$true] %s57_s7 }
  0x6f   :  { %s2744_s19 = scalar_lea.hbm %s3510_s0, 256 }
  0x70   :  { %p2745_p6 = scmp.ne.s32.totalorder %s3510_s0, %s2744_s19  ;;  %p2748_p7 = scmp.lt.u32.totalorder %s2744_s19, %s3510_s0 }
  0x72   :  { %p2750_p8 = pnand %p2748_p7, %p2745_p6 }
  0x74   :  { %2753 = shalt.err (!%p2750_p8)
}
  0x75   :  { %s2754_s11 = scalar_lea.vmem %s34_s15, 256  ;;  %p2759_p10 = scmp.lt.s32.totalorder %s34_s15, %s34_s15 }
  0x76   :  { %p2755_p9 = scmp.ne.s32.totalorder %s34_s15, %s2754_s11  ;;  %p2760_p11 = scmp.lt.s32.totalorder %s2754_s11, %s2754_s11 }
  0x78   :  { %p2761_p12 = por %p2760_p11, %p2759_p10 }
  0x7a   :  { %p2762_p13 = pnand %p2761_p12, %p2755_p9 }
  0x7c   :  { %2765 = shalt.err (!%p2762_p13)
}
  0x7d   :  { %39 = dma.hbm_to_vmem [thread:$0]  %s3510_s0, 256, %s34_s15, [#allocation3], %s2962_s25, %s2962_s25, %s2963_s26  }
  0x7e   :  { %s2766_s23 = scalar_lea.hbm %s3512_s2, 512 }
  0x7f   :  { %p2767_p0 = scmp.ne.s32.totalorder %s3512_s2, %s2766_s23  ;;  %p2770_p1 = scmp.lt.u32.totalorder %s2766_s23, %s3512_s2 }
  0x81   :  { %p2772_p2 = pnand %p2770_p1, %p2767_p0 }
  0x83   :  { %2775 = shalt.err (!%p2772_p2)
}
  0x84   :  { %s2776_s17 = scalar_lea.vmem %s3145_s7, 512  ;;  %p2781_p4 = scmp.lt.s32.totalorder %s3145_s7, %s3145_s7 }
  0x85   :  { %p2777_p3 = scmp.ne.s32.totalorder %s3145_s7, %s2776_s17  ;;  %p2782_p5 = scmp.lt.s32.totalorder %s2776_s17, %s2776_s17 }
  0x87   :  { %p2783_p6 = por %p2782_p5, %p2781_p4 }
  0x89   :  { %p2784_p7 = pnand %p2783_p6, %p2777_p3 }
  0x8b   :  { %2787 = shalt.err (!%p2784_p7)
}
  0x8c   :  { %63 = dma.hbm_to_vmem [thread:$0]  %s3512_s2, 512, %s3145_s7, [#allocation6], %s2962_s25, %s2962_s25, %s2963_s26  }
  0x8d   :  { %s2970_s28 = smov [#allocation10]   ;;  %s2971_s19 = smov [#allocation13]  }
  0x8e   :  { %s81_s18 = sshll.u32 %s2970_s28, 4  ;;  %s103_s20 = sshll.u32 %s2971_s19, 4  ;;  %s82_s18 = int_to_ptr.vmem [resolvable:$true] %s81_s18  ;;  %s3182_s20 = int_to_ptr.vmem [resolvable:$true] %s103_s20 }
  0x8f   :  { %s2788_s21 = scalar_lea.hbm %s3514_s4, 512 }
  0x90   :  { %p2789_p8 = scmp.ne.s32.totalorder %s3514_s4, %s2788_s21  ;;  %p2792_p9 = scmp.lt.u32.totalorder %s2788_s21, %s3514_s4 }
  0x92   :  { %p2794_p10 = pnand %p2792_p9, %p2789_p8 }
  0x94   :  { %2797 = shalt.err (!%p2794_p10)
}
  0x95   :  { %s2798_s2 = scalar_lea.vmem %s82_s18, 512  ;;  %p2803_p12 = scmp.lt.s32.totalorder %s82_s18, %s82_s18 }
  0x96   :  { %p2799_p11 = scmp.ne.s32.totalorder %s82_s18, %s2798_s2  ;;  %p2804_p13 = scmp.lt.s32.totalorder %s2798_s2, %s2798_s2 }
  0x98   :  { %p2805_p0 = por %p2804_p13, %p2803_p12 }
  0x9a   :  { %p2806_p1 = pnand %p2805_p0, %p2799_p11 }
  0x9c   :  { %2809 = shalt.err (!%p2806_p1)
}
  0x9d   :  { %87 = dma.hbm_to_vmem [thread:$0]  %s3514_s4, 512, %s82_s18, [#allocation9], %s2962_s25, %s2962_s25, %s2963_s26  }
  0x9e   :  { %s2810_s9 = scalar_lea.hbm %s3516_s6, 512 }
  0x9f   :  { %p2811_p2 = scmp.ne.s32.totalorder %s3516_s6, %s2810_s9  ;;  %p2814_p3 = scmp.lt.u32.totalorder %s2810_s9, %s3516_s6 }
  0xa1   :  { %p2816_p4 = pnand %p2814_p3, %p2811_p2 }
  0xa3   :  { %2819 = shalt.err (!%p2816_p4)
}
  0xa4   :  { %s2820_s15 = scalar_lea.vmem %s3182_s20, 512  ;;  %p2825_p6 = scmp.lt.s32.totalorder %s3182_s20, %s3182_s20 }
  0xa5   :  { %p2821_p5 = scmp.ne.s32.totalorder %s3182_s20, %s2820_s15  ;;  %p2826_p7 = scmp.lt.s32.totalorder %s2820_s15, %s2820_s15 }
  0xa7   :  { %p2827_p8 = por %p2826_p7, %p2825_p6 }
  0xa9   :  { %p2828_p9 = pnand %p2827_p8, %p2821_p5 }
  0xab   :  { %2831 = shalt.err (!%p2828_p9)
}
  0xac   :  { %109 = dma.hbm_to_vmem [thread:$0]  %s3516_s6, 512, %s3182_s20, [#allocation12], %s2962_s25, %s2962_s25, %s2963_s26  }
  0xad   :  { %s2972_s18 = smov [#allocation16]   ;;  %s2973_s5 = smov [#allocation19]  }
  0xae   :  { %s125_s19 = sshll.u32 %s2972_s18, 4  ;;  %s147_s24 = sshll.u32 %s2973_s5, 4  ;;  %s126_s19 = int_to_ptr.vmem [resolvable:$true] %s125_s19  ;;  %s3219_s24 = int_to_ptr.vmem [resolvable:$true] %s147_s24 }
  0xaf   :  { %s2832_s22 = scalar_lea.hbm %s3518_s8, 512 }
  0xb0   :  { %p2833_p10 = scmp.ne.s32.totalorder %s3518_s8, %s2832_s22  ;;  %p2836_p11 = scmp.lt.u32.totalorder %s2832_s22, %s3518_s8 }
  0xb2   :  { %p2838_p12 = pnand %p2836_p11, %p2833_p10 }
  0xb4   :  { %2841 = shalt.err (!%p2838_p12)
}
  0xb5   :  { %s2842_s6 = scalar_lea.vmem %s126_s19, 512  ;;  %p2847_p0 = scmp.lt.s32.totalorder %s126_s19, %s126_s19 }
  0xb6   :  { %p2843_p13 = scmp.ne.s32.totalorder %s126_s19, %s2842_s6  ;;  %p2848_p1 = scmp.lt.s32.totalorder %s2842_s6, %s2842_s6 }
  0xb8   :  { %p2849_p2 = por %p2848_p1, %p2847_p0 }
  0xba   :  { %p2850_p3 = pnand %p2849_p2, %p2843_p13 }
  0xbc   :  { %2853 = shalt.err (!%p2850_p3)
}
  0xbd   :  { %131 = dma.hbm_to_vmem [thread:$0]  %s3518_s8, 512, %s126_s19, [#allocation15], %s2962_s25, %s2962_s25, %s2963_s26  }
  0xbe   :  { %s2854_s9 = scalar_lea.hbm %s3520_s10, 512 }
  0xbf   :  { %p2855_p4 = scmp.ne.s32.totalorder %s3520_s10, %s2854_s9  ;;  %p2858_p5 = scmp.lt.u32.totalorder %s2854_s9, %s3520_s10 }
  0xc1   :  { %p2860_p6 = pnand %p2858_p5, %p2855_p4 }
  0xc3   :  { %2863 = shalt.err (!%p2860_p6)
}
  0xc4   :  { %s2864_s15 = scalar_lea.vmem %s3219_s24, 512  ;;  %p2869_p8 = scmp.lt.s32.totalorder %s3219_s24, %s3219_s24 }
  0xc5   :  { %p2865_p7 = scmp.ne.s32.totalorder %s3219_s24, %s2864_s15  ;;  %p2870_p9 = scmp.lt.s32.totalorder %s2864_s15, %s2864_s15 }
  0xc7   :  { %p2871_p10 = por %p2870_p9, %p2869_p8 }
  0xc9   :  { %p2872_p11 = pnand %p2871_p10, %p2865_p7 }
  0xcb   :  { %2875 = shalt.err (!%p2872_p11)
}
  0xcc   :  { %153 = dma.hbm_to_vmem [thread:$0]  %s3520_s10, 512, %s3219_s24, [#allocation18], %s2962_s25, %s2962_s25, %s2963_s26  }
  0xcd   :  { %s2974_s28 = smov [#allocation22]   ;;  %s2975_s19 = smov [#allocation23]  }
  0xce   :  { %s170_s18 = sshll.u32 %s2974_s28, 4  ;;  %s180_s5 = sshll.u32 %s2975_s19, 4  ;;  %s171_s18 = int_to_ptr.vmem [resolvable:$true] %s170_s18  ;;  %s181_s5 = int_to_ptr.vmem [resolvable:$true] %s180_s5 }
  0xcf   :  { %s2876_s22 = scalar_lea.hbm %s3522_s12, 16 }
  0xd0   :  { %p2877_p12 = scmp.ne.s32.totalorder %s3522_s12, %s2876_s22  ;;  %p2880_p13 = scmp.lt.u32.totalorder %s2876_s22, %s3522_s12 }
  0xd2   :  { %p2882_p0 = pnand %p2880_p13, %p2877_p12 }
  0xd4   :  { %2885 = shalt.err (!%p2882_p0)
}
  0xd5   :  { %s2886_s10 = scalar_lea.vmem %s171_s18, 16  ;;  %s2890_s24 = scalar_lea.vmem %s171_s18, 32 }
  0xd6   :  { %p2887_p1 = scmp.ne.s32.totalorder %s171_s18, %s2886_s10  ;;  %p2891_p2 = scmp.lt.s32.totalorder %s171_s18, %s171_s18 }
  0xd7   :  { %p2892_p3 = scmp.lt.s32.totalorder %s2890_s24, %s2886_s10 }
  0xd9   :  { %p2893_p4 = por %p2892_p3, %p2891_p2 }
  0xdb   :  { %p2894_p5 = pnand %p2893_p4, %p2887_p1 }
  0xdd   :  { %2897 = shalt.err (!%p2894_p5)
}
  0xde   :  { %173 = dma.hbm_to_vmem [thread:$0]  %s3522_s12, 16, %s171_s18, [#allocation21]  }
  0xdf   :  { %s2898_s27 = scalar_lea.hbm %s3523_s13, 16 }
  0xe0   :  { %p2899_p6 = scmp.ne.s32.totalorder %s3523_s13, %s2898_s27  ;;  %p2902_p7 = scmp.lt.u32.totalorder %s2898_s27, %s3523_s13 }
  0xe2   :  { %p2904_p8 = pnand %p2902_p7, %p2899_p6 }
  0xe4   :  { %2907 = shalt.err (!%p2904_p8)
}
  0xe5   :  { %s2908_s0 = scalar_lea.vmem %s181_s5, 16  ;;  %s2912_s15 = scalar_lea.vmem %s181_s5, 32 }
  0xe6   :  { %p2909_p9 = scmp.ne.s32.totalorder %s181_s5, %s2908_s0  ;;  %p2913_p10 = scmp.lt.s32.totalorder %s181_s5, %s181_s5 }
  0xe7   :  { %p2914_p11 = scmp.lt.s32.totalorder %s2912_s15, %s2908_s0 }
  0xe9   :  { %p2915_p12 = por %p2914_p11, %p2913_p10 }
  0xeb   :  { %p2916_p13 = pnand %p2915_p12, %p2909_p9 }
  0xed   :  { %2919 = shalt.err (!%p2916_p13)
}
  0xee   :  { %183 = dma.hbm_to_vmem [thread:$0]  %s3523_s13, 16, %s181_s5, [#allocation24]  }
  0xef   :  { %2942 = dma.done.wait [#allocation3], 256  }
  0xf0   :  { %2943 = vsyncadd [#allocation3], 4294967040 }
  0xf1   :  { %2944 = dma.done.wait [#allocation6], 768  }
  0xf2   :  { %2945 = vsyncadd [#allocation6], 4294966528 }
  0xf3   :  { %2946 = dma.done.wait [#allocation9], 1024  }
  0xf4   :  { %2947 = vsyncadd [#allocation9], 4294966272 }
  0xf5   :  { %2948 = dma.done.wait [#allocation12], 528  }
  0xf6   :  { %2949 = vsyncadd [#allocation12], 4294966768 }
  0xf7   :  { %2950 = dma.done.wait [#allocation15], 528  }
  0xf8   :  { %2951 = vsyncadd [#allocation15], 4294966768 }
  0xf9   :  { %2952 = dma.done.wait [#allocation18], 528  }
  0xfa   :  { %2953 = vsyncadd [#allocation18], 4294966768 }
  0xfb   :  { %2954 = dma.done.wait [#allocation21], 32  }
  0xfc   :  { %2955 = vsyncadd [#allocation21], 4294967264 }
  0xfd   :  { %2956 = dma.done.wait [#allocation24], 16  }
  0xfe   :  { %2957 = vsyncadd [#allocation24], 4294967280  ;;  %v249_v0 = vld [vmem:[#allocation13] sm:$0xff]  ;;  %v250_v1 = vld [vmem:[#allocation13 + $0x8] sm:$0xff]  ;;  %vm272_vm0 = vcmask 261120   ;;  %v2976_v36 = vmov 0.0|0.0  }
  0xff   :  { %v251_v2 = vld [vmem:[#allocation13 + $0x10] sm:$0xff]  ;;  %v2411_v3 = vpack.c.bf16 %v250_v1, %v249_v0  ;;  %v252_v4 = vld [vmem:[#allocation13 + $0x18] sm:$0xff]  ;;  %v245_v6 = vld [vmem:[#allocation10 + $0x8] sm:$0xff]  ;;  %vm2977_vm1 = vmmov 0   ;;  %v2978_v37 = vmov 0.0   ;;  %vm560_vm2 = vcmask 64512  }
 0x100   :  { %v244_v5 = vld [vmem:[#allocation10] sm:$0xff]  ;;  %v2415_v7 = vpack.c.bf16 %v252_v4, %v251_v2  ;;  %v246_v12 = vld [vmem:[#allocation10 + $0x10] sm:$0xff]  ;;  %v247_v13 = vld [vmem:[#allocation10 + $0x18] sm:$0xff]  ;;  %s2979_s13 = smov 120   ;;  %vm719_vm4 = vcmask 130048   ;;  %s2980_s4 = smov 112  }
 0x101   :  { %v2403_v8 = vpack.c.bf16 %v245_v6, %v244_v5  ;;  %v228_v9 = vld [vmem:[#allocation7] sm:$0xff]  ;;  %2412 = vmatprep.subr.bf16.mxu1 %v2411_v3  ;;  %v229_v14 = vld [vmem:[#allocation7 + $0x8] sm:$0xff]  ;;  %v2407_v16 = vpack.c.bf16 %v247_v13, %v246_v12  ;;  %v230_v17 = vld [vmem:[#allocation7 + $0x10] sm:$0xff]  ;;  %s2981_s28 = smov 104   ;;  %s2982_s18 = smov 16   ;;  %vm1952_vm5 = vcmask 195584  }
 0x102   :  { %v236_v10 = vld [vmem:[#allocation8] sm:$0xff]  ;;  %2414 = vmatpush3.bf16.msra.mxu1 %v2411_v3  ;;  %v237_v15 = vld [vmem:[#allocation8 + $0x8] sm:$0xff]  ;;  %v238_v18 = vld [vmem:[#allocation8 + $0x10] sm:$0xff]  ;;  %s2983_s19 = smov 24   ;;  %s2984_s5 = smov [#allocation25]  }
 0x103   :  { %v240_v11 = vadd.f32 %v236_v10, %v228_v9  ;;  %2404 = vmatprep.subr.bf16.mxu0 %v2403_v8  ;;  %2416 = vmatprep.subr.bf16.mxu1 %v2415_v7  ;;  %v3280_v19 = vld [vmem:[#allocation2] sm:$0xff]  ;;  %v232_v20 = vld [vmem:[#allocation5] sm:$0xff]  ;;  %v3284_v22 = vld [vmem:[#allocation2 + $0x8] sm:$0xff]  ;;  %v241_v25 = vadd.f32 %v237_v15, %v229_v14  ;;  %v242_v27 = vadd.f32 %v238_v18, %v230_v17  ;;  %s2096_s21 = sshll.u32 %s2984_s5, 4  ;;  %s2097_s21 = int_to_ptr.vmem [resolvable:$true] %s2096_s21 }
 0x104   :  { %2406 = vmatpush3.bf16.msra.mxu0 %v2403_v8  ;;  %v234_v21 = vadd.f32 %v232_v20, %v3280_v19  ;;  %v233_v23 = vld [vmem:[#allocation5 + $0x8] sm:$0xff]  ;;  %v254_v24 = vld [vmem:[#allocation16] sm:$0xff]  ;;  %v255_v26 = vld [vmem:[#allocation16 + $0x8] sm:$0xff]  ;;  %s2920_s11 = scalar_lea.vmem %s2097_s21, 256  ;;  %p2925_p1 = scmp.lt.s32.totalorder %s2097_s21, %s2097_s21 }
 0x105   :  { %2260 = vmatprep.mubr.msk.f32.mxu1 %vm272_vm0, %v240_v11  ;;  %2408 = vmatprep.subr.bf16.mxu0 %v2407_v16  ;;  %v231_v28 = vld [vmem:[#allocation7 + $0x18] sm:$0xff]  ;;  %v235_v30 = vadd.f32 %v233_v23, %v3284_v22  ;;  %v2419_v31 = vpack.c.bf16 %v255_v26, %v254_v24  ;;  %v2118_v38 = vld [vmem:[#allocation14] ss:$0 sm:$0xff]  ;;  %v2115_v45 = vld [vmem:[#allocation11] ss:$0 sm:$0xff]  ;;  %p2921_p0 = scmp.ne.s32.totalorder %s2097_s21, %s2920_s11  ;;  %p2926_p2 = scmp.lt.s32.totalorder %s2920_s11, %s2920_s11 }
 0x106   :  { %2418 = vmatpush3.bf16.msra.mxu1 %v2415_v7  ;;  %v239_v29 = vld [vmem:[#allocation8 + $0x18] sm:$0xff]  ;;  %2249 = vmatprep.mubr.msk.f32.mxu0 %vm272_vm0, %v234_v21  ;;  %vm3304_vm3 = vmpackc.low %vm560_vm2, %vm560_vm2  ;;  %v2123_v58 = vld [vmem:[#allocation17] ss:$0 sm:$0xff] }
 0x107   :  { %v243_v32 = vadd.f32 %v239_v29, %v231_v28  ;;  %v256_v33 = vld [vmem:[#allocation16 + $0x10] sm:$0xff]  ;;  %v257_v34 = vld [vmem:[#allocation16 + $0x18] sm:$0xff]  ;;  %2427 = vmatprep.subr.bf16.mxu1 %v2976_v36  ;;  %p2927_p3 = por %p2926_p2, %p2925_p1 }
 0x108   :  { %2410 = vmatpush3.bf16.msra.mxu0 %v2407_v16  ;;  %v2423_v35 = vpack.c.bf16 %v257_v34, %v256_v33 }
 0x109   :  { %2420 = vmatprep.subr.bf16.mxu0 %v2419_v31  ;;  %2261 = vmatmul.mubr.msk.f32.vlgmr.msra.gmra.mrb[0].mxu1 %vm272_vm0, %v241_v25  ;;  %p2928_p4 = pnand %p2927_p3, %p2921_p0 }
 0x10a   :  { %2263 = vmatprep.mubr.msk.f32.mxu1 %vm272_vm0, %v242_v27 }
 0x10b   :  { %2250 = vmatmul.mubr.msk.f32.vlgmr.msra.gmra.mrb[0].mxu0 %vm272_vm0, %v235_v30 }
 0x10c   :  { %2422 = vmatpush3.bf16.msra.mxu0 %v2419_v31  ;;  %2274 = vmatprep.mubr.msk.f32.mxu0 %vm272_vm0, %v228_v9 }
 0x10d   :  { %2264 = vmatmul.mubr.msk.f32.gmra.mrb[2].mxu1 %vm272_vm0, %v243_v32  ;;  %2424 = vmatprep.subr.bf16.mxu0 %v2423_v35 }
 0x10e   :  { %2284 = vmatprep.mubr.msk.f32.mxu1 %vm2977_vm1, %v2978_v37 }
 0x110   :  { %2426 = vmatpush3.bf16.msra.mxu0 %v2423_v35 }
 0x111   :  { %2431 = vmatprep.subr.bf16.mxu0 %v2976_v36 }
 0x113   :  { %2275 = vmatmul.mubr.msk.f32.vlgmr.msra.gmra.mrb[2].mxu0 %vm272_vm0, %v229_v14 }
 0x114   :  { %2277 = vmatprep.mubr.msk.f32.mxu0 %vm272_vm0, %v230_v17 }
 0x117   :  { %2278 = vmatmul.mubr.msk.f32.gmra.mrb[4].mxu0 %vm272_vm0, %v231_v28 }
 0x118   :  { %2291 = vmatprep.mubr.msk.f32.mxu0 %vm2977_vm1, %v2978_v37 }
 0x1dc   :  { %v2262_v39 = vpop.f32.mrb[0].mxu1 }
 0x1dd   :  { %v444_v40 = vadd.f32 %v2262_v39, %v2118_v38  ;;  %v438_v41 = vpop.f32.mrb[1].mxu1 }
 0x1de   :  { %v2251_v42 = vpop.f32.mrb[0].mxu0  ;;  %v439_v43 = vadd.f32 %v2118_v38, %v438_v41 }
 0x1df   :  { %v345_v44 = vpop.f32.mrb[1].mxu0  ;;  %v3324_v56 = vadd.f32 %v2251_v42, %v2115_v45 }
 0x1e0   :  { %v2428_v47 = vpack.c.bf16 %v444_v40, %v439_v43  ;;  %v2265_v48 = vpop.f32.mrb[2].mxu1  ;;  %v3308_v49 = vpack.i.bf16 %v444_v40, %v439_v43  ;;  %v3314_v53 = vadd.f32 %v2115_v45, %v345_v44 }
 0x1e1   :  { %v454_v50 = vadd.f32 %v2265_v48, %v2118_v38  ;;  %v448_v51 = vpop.f32.mrb[3].mxu1 }
 0x1e2   :  { %v449_v52 = vadd.f32 %v2118_v38, %v448_v51  ;;  %2517 = vrot.lane.b32.xlu1 %v3308_v49, %s2979_s13  ;;  %2430 = vmatpush3.bf16.xpose.msk.msra.mxu1 %vm3304_vm3, %v2428_v47 }
 0x1e3   :  { %2435 = vmatprep.subr.bf16.mxu1 %v2976_v36 }
 0x1e4   :  { %v2432_v54 = vpack.c.bf16 %v454_v50, %v449_v52  ;;  %v3317_v55 = vpack.i.bf16 %v454_v50, %v449_v52 }
 0x1e6   :  { %2434 = vmatpush3.bf16.xpose.msk.msra.mxu0 %vm3304_vm3, %v2432_v54  ;;  %888 = vrot.lane.b32.xlu1 %v3314_v53, %s2979_s13  ;;  %v2276_v57 = vpop.f32.mrb[2].mxu0 }
 0x1e7   :  { %2441 = vmatprep.subr.bf16.mxu0 %v2976_v36  ;;  %v547_v59 = vadd.f32 %v2276_v57, %v2123_v58  ;;  %v541_v60 = vpop.f32.mrb[3].mxu0 }
 0x1e8   :  { %v542_v61 = vadd.f32 %v2123_v58, %v541_v60 }
 0x1e9   :  { %2285 = vmatmul.mubr.msk.f32.vlgmr.msra.gmra.mrb[4].mxu1 %vm560_vm2, %v3314_v53 }
 0x1ea   :  { %970 = vrot.lane.b32.xlu1 %v3324_v56, %s2979_s13  ;;  %2298 = vmatprep.mubr.msk.f32.mxu1 %vm2977_vm1, %v2978_v37  ;;  %v2279_v62 = vpop.f32.mrb[4].mxu0  ;;  %v3336_v2 = vpack.i.bf16 %v547_v59, %v542_v61  ;;  %v2436_v3 = vpack.c.bf16 %v547_v59, %v542_v61 }
 0x1eb   :  { %v557_v63 = vadd.f32 %v2279_v62, %v2123_v58  ;;  %v551_v0 = vpop.f32.mrb[5].mxu0 }
 0x1ec   :  { %v552_v1 = vadd.f32 %v2123_v58, %v551_v0  ;;  %2437 = vmatpush3.bf16.msra.mxu1 %v2436_v3 }
 0x1ed   :  { %2292 = vmatmul.mubr.msk.f32.vlgmr.msra.gmra.mrb[6].mxu0 %vm560_vm2, %v3324_v56  ;;  %2438 = vmatprep.subr.bf16.mxu1 %v2976_v36 }
 0x1ee   :  { %2312 = vmatprep.mubr.msk.f32.mxu0 %vm2977_vm1, %v2978_v37  ;;  %2527 = vrot.lane.b32.xlu1 %v3336_v2, %s2979_s13  ;;  %v2439_v4 = vpack.c.bf16 %v557_v63, %v552_v1  ;;  %v3341_v5 = vpack.i.bf16 %v557_v63, %v552_v1 }
 0x254   :  { %v2518_v6 = vpop.permute.xlu1 %2517 }
 0x255   :  { %v2520_v7 = vunpack.i.h.bf16 %v2518_v6  ;;  %v2519_v8 = vunpack.i.l.bf16 %v2518_v6 }
 0x257   :  { %v2442_v9 = vpack.c.bf16 %v2520_v7, %v2519_v8 }
 0x258   :  { %v889_v10 = vpop.permute.xlu1 %888 }
 0x259   :  { %2444 = vmatpush3.bf16.xpose.msk.msra.mxu0 %vm3304_vm3, %v2442_v9 }
 0x25a   :  { %2455 = vmatprep.subr.bf16.mxu0 %v2976_v36 }
 0x25c   :  { %v971_v33 = vpop.permute.xlu1 %970 }
 0x260   :  { %2313 = vmatmul.mubr.msk.f32.vlgmr.msra.gmra.mrb[8].mxu0 %vm560_vm2, %v889_v10  ;;  %v2528_v35 = vpop.permute.xlu1 %2527 }
 0x261   :  { %2340 = vmatprep.mubr.msk.f32.mxu0 %vm2977_vm1, %v2978_v37  ;;  %v2530_v38 = vunpack.i.h.bf16 %v2528_v35  ;;  %v2529_v39 = vunpack.i.l.bf16 %v2528_v35 }
 0x263   :  { %v2450_v40 = vpack.c.bf16 %v2530_v38, %v2529_v39 }
 0x2bc   :  { %v636_v11 = vpop.f32.mrb[4].mxu1 }
 0x2bd   :  { %v2286_v12 = vpop.f32.mrb[5].mxu1  ;;  %v720_v13 = vsel %vm719_vm4, %v636_v11, -inf }
 0x2be   :  { %721 = vmax.xlane.f32.xlu0 %v720_v13 }
 0x2c0   :  { %v715_v14 = vpop.f32.mrb[6].mxu0 }
 0x2c1   :  { %v2293_v15 = vpop.f32.mrb[7].mxu0  ;;  %v723_v16 = vsel %vm719_vm4, %v715_v14, -inf }
 0x2c2   :  { %724 = vmax.xlane.f32.xlu0 %v723_v16 }
 0x2d8   :  { %2522 = vrot.lane.b32.xlu0 %v3317_v55, %s2979_s13 }
 0x333   :  { %v966_v17 = vpop.f32.mrb[8].mxu0 }
 0x334   :  { %v2314_v18 = vpop.f32.mrb[9].mxu0  ;;  %v1052_v20 = vsel %vm719_vm4, %v966_v17, -inf }
 0x335   :  { %1053 = vmax.xlane.f32.xlu1 %v1052_v20 }
 0x346   :  { %2537 = vrot.lane.b32.xlu1 %v3308_v49, %s2980_s4 }
 0x34a   :  { %2542 = vrot.lane.b32.xlu1 %v3317_v55, %s2980_s4 }
 0x34b   :  { %v722_v21 = vpop.xlane.xlu0 %721 }
 0x34c   :  { %v726_v23 = vsub.f32 %v636_v11, %v722_v21 }
 0x34e   :  { %v728_v24 = vmul.f32 1.442695, %v726_v23  ;;  %1236 = vrot.lane.b32.xlu1 %v3314_v53, %s2980_s4 }
 0x34f   :  { %v725_v25 = vpop.xlane.xlu0 %724 }
 0x350   :  { %2576 = vpow2.f32 %v728_v24  ;;  %v727_v26 = vsub.f32 %v715_v14, %v725_v25 }
 0x352   :  { %v730_v27 = vmul.f32 1.442695, %v727_v26  ;;  %1318 = vrot.lane.b32.xlu1 %v3324_v56, %s2980_s4 }
 0x353   :  { %v2523_v29 = vpop.permute.xlu0 %2522 }
 0x354   :  { %2578 = vpow2.f32 %v730_v27  ;;  %v2525_v31 = vunpack.i.h.bf16 %v2523_v29  ;;  %v2524_v32 = vunpack.i.l.bf16 %v2523_v29 }
 0x356   :  { %v2446_v34 = vpack.c.bf16 %v2525_v31, %v2524_v32 }
 0x35a   :  { %v3362_v28 = vpop.eup %2576 }
 0x35b   :  { %2299 = vmatmul.mubr.msk.f32.vlgmr.msra.gmra.mrb[6].mxu1 %vm719_vm4, %v3362_v28 }
 0x35c   :  { %2440 = vmatpush3.bf16.msra.mxu1 %v2439_v4  ;;  %2305 = vmatprep.mubr.msk.f32.mxu1 %vm2977_vm1, %v2978_v37 }
 0x35d   :  { %2445 = vmatprep.subr.bf16.mxu1 %v2976_v36 }
 0x35e   :  { %v3369_v30 = vpop.eup %2578 }
 0x35f   :  { %2306 = vmatmul.mubr.msk.f32.vlgmr.msra.gmra.mrb[8].mxu1 %vm719_vm4, %v3369_v30 }
 0x360   :  { %2319 = vmatprep.mubr.msk.f32.mxu1 %vm2977_vm1, %v2978_v37 }
 0x365   :  { %2448 = vmatpush3.bf16.xpose.msk.msra.mxu1 %vm3304_vm3, %v2446_v34 }
 0x366   :  { %2449 = vmatprep.subr.bf16.mxu1 %v2976_v36 }
 0x36c   :  { %2320 = vmatmul.mubr.msk.f32.vlgmr.msra.gmra.mrb[10].mxu1 %vm560_vm2, %v971_v33 }
 0x36d   :  { %2451 = vmatpush3.bf16.msra.mxu1 %v2450_v40  ;;  %2326 = vmatprep.mubr.msk.f32.mxu1 %vm2977_vm1, %v2978_v37 }
 0x36e   :  { %2452 = vmatprep.subr.bf16.mxu1 %v2976_v36 }
 0x3c2   :  { %v1054_v41 = vpop.xlane.xlu1 %1053 }
 0x3c3   :  { %v1058_v42 = vsub.f32 %v966_v17, %v1054_v41 }
 0x3c5   :  { %v1060_v43 = vmul.f32 1.442695, %v1058_v42 }
 0x3c6   :  { %v2538_v44 = vpop.permute.xlu1 %2537 }
 0x3c7   :  { %2580 = vpow2.f32 %v1060_v43  ;;  %v2540_v45 = vunpack.i.h.bf16 %v2538_v44  ;;  %v2539_v47 = vunpack.i.l.bf16 %v2538_v44 }
 0x3c9   :  { %v2456_v48 = vpack.c.bf16 %v2540_v45, %v2539_v47 }
 0x3ca   :  { %v2543_v50 = vpop.permute.xlu1 %2542 }
 0x3cb   :  { %2458 = vmatpush3.bf16.xpose.msk.msra.mxu0 %vm3304_vm3, %v2456_v48  ;;  %v2545_v17 = vunpack.i.h.bf16 %v2543_v50 }
 0x3cc   :  { %2463 = vmatprep.subr.bf16.mxu0 %v2976_v36 }
 0x3ce   :  { %v1237_v52 = vpop.permute.xlu1 %1236 }
 0x3d1   :  { %v3385_v51 = vpop.eup %2580 }
 0x3d2   :  { %2327 = vmatmul.mubr.msk.f32.vlgmr.msra.gmra.mrb[12].mxu1 %vm719_vm4, %v3385_v51  ;;  %2341 = vmatmul.mubr.msk.f32.vlgmr.msra.gmra.mrb[10].mxu0 %vm560_vm2, %v1237_v52  ;;  %v1319_v20 = vpop.permute.xlu1 %1318 }
 0x3d3   :  { %2333 = vmatprep.mubr.msk.f32.mxu1 %vm2977_vm1, %v2978_v37  ;;  %2354 = vmatprep.mubr.msk.f32.mxu0 %vm2977_vm1, %v2978_v37 }
 0x42e   :  { %v3394_v54 = vpop.f32.mrb[6].mxu1 }
 0x42f   :  { %v2300_v57 = vpop.f32.mrb[7].mxu1 }
 0x432   :  { %v3396_v58 = vpop.f32.mrb[8].mxu1 }
 0x433   :  { %v2307_v59 = vpop.f32.mrb[9].mxu1 }
 0x43f   :  { %v1048_v60 = vpop.f32.mrb[10].mxu1 }
 0x440   :  { %v2321_v61 = vpop.f32.mrb[11].mxu1  ;;  %v1055_v62 = vsel %vm719_vm4, %v1048_v60, -inf }
 0x441   :  { %1056 = vmax.xlane.f32.xlu0 %v1055_v62 }
 0x457   :  { %2532 = vrot.lane.b32.xlu0 %v3341_v5, %s2979_s13 }
 0x45b   :  { %2547 = vrot.lane.b32.xlu0 %v3336_v2, %s2980_s4 }
 0x4a5   :  { %v3403_v63 = vpop.f32.mrb[12].mxu1  ;;  %v1314_v0 = vpop.f32.mrb[10].mxu0 }
 0x4a6   :  { %v2328_v1 = vpop.f32.mrb[13].mxu1  ;;  %v2342_v3 = vpop.f32.mrb[11].mxu0  ;;  %v1400_v4 = vsel %vm719_vm4, %v1314_v0, -inf }
 0x4a7   :  { %1401 = vmax.xlane.f32.xlu1 %v1400_v4 }
 0x4b8   :  { %2552 = vrot.lane.b32.xlu1 %v3341_v5, %s2980_s4 }
 0x4bc   :  { %2557 = vrot.lane.b32.xlu1 %v3308_v49, %s2981_s28  ;;  %v2544_v49 = vunpack.i.l.bf16 %v2543_v50 }
 0x4be   :  { %v2460_v18 = vpack.c.bf16 %v2545_v17, %v2544_v49 }
 0x4c0   :  { %1580 = vrot.lane.b32.xlu1 %v3314_v53, %s2981_s28 }
 0x4ce   :  { %v1057_v6 = vpop.xlane.xlu0 %1056 }
 0x4cf   :  { %v1059_v7 = vsub.f32 %v1048_v60, %v1057_v6 }
 0x4d1   :  { %v1062_v8 = vmul.f32 1.442695, %v1059_v7 }
 0x4d2   :  { %v2533_v9 = vpop.permute.xlu0 %2532 }
 0x4d3   :  { %2582 = vpow2.f32 %v1062_v8  ;;  %v2535_v10 = vunpack.i.h.bf16 %v2533_v9  ;;  %v2534_v11 = vunpack.i.l.bf16 %v2533_v9 }
 0x4d5   :  { %v2453_v12 = vpack.c.bf16 %v2535_v10, %v2534_v11 }
 0x4d6   :  { %v2548_v13 = vpop.permute.xlu0 %2547 }
 0x4d7   :  { %v2550_v14 = vunpack.i.h.bf16 %v2548_v13  ;;  %v2549_v15 = vunpack.i.l.bf16 %v2548_v13  ;;  %2454 = vmatpush3.bf16.msra.mxu1 %v2453_v12 }
 0x4d8   :  { %2459 = vmatprep.subr.bf16.mxu1 %v2976_v36 }
 0x4d9   :  { %v2464_v16 = vpack.c.bf16 %v2550_v14, %v2549_v15 }
 0x4db   :  { %2465 = vmatpush3.bf16.msra.mxu0 %v2464_v16  ;;  %v732_v16 = vsel %vm719_vm4, %v3362_v28, 0.0 }
 0x4dc   :  { %2469 = vmatprep.subr.bf16.mxu0 %v2976_v36 }
 0x4dd   :  { %v3414_v53 = vpop.eup %2582 }
 0x4de   :  { %2334 = vmatmul.mubr.msk.f32.vlgmr.msra.gmra.mrb[14].mxu1 %vm719_vm4, %v3414_v53 }
 0x4df   :  { %2347 = vmatprep.mubr.msk.f32.mxu1 %vm2977_vm1, %v2978_v37 }
 0x4e0   :  { %2462 = vmatpush3.bf16.xpose.msk.msra.mxu1 %vm3304_vm3, %v2460_v18 }
 0x4e1   :  { %2466 = vmatprep.subr.bf16.mxu1 %v2976_v36 }
 0x4e7   :  { %2348 = vmatmul.mubr.msk.f32.vlgmr.msra.gmra.mrb[16].mxu1 %vm560_vm2, %v1319_v20 }
 0x4e8   :  { %2361 = vmatprep.mubr.msk.f32.mxu1 %vm2977_vm1, %v2978_v37 }
 0x534   :  { %v1402_v21 = vpop.xlane.xlu1 %1401 }
 0x535   :  { %v1406_v23 = vsub.f32 %v1314_v0, %v1402_v21 }
 0x537   :  { %v1408_v24 = vmul.f32 1.442695, %v1406_v23 }
 0x538   :  { %v2553_v25 = vpop.permute.xlu1 %2552 }
 0x539   :  { %2584 = vpow2.f32 %v1408_v24  ;;  %v2555_v26 = vunpack.i.h.bf16 %v2553_v25  ;;  %v2554_v27 = vunpack.i.l.bf16 %v2553_v25 }
 0x53b   :  { %v2467_v29 = vpack.c.bf16 %v2555_v26, %v2554_v27 }
 0x53c   :  { %v2558_v31 = vpop.permute.xlu1 %2557 }
 0x53d   :  { %2468 = vmatpush3.bf16.msra.mxu1 %v2467_v29  ;;  %v2560_v32 = vunpack.i.h.bf16 %v2558_v31  ;;  %v2559_v33 = vunpack.i.l.bf16 %v2558_v31  ;;  %v735_v31 = vsel %vm719_vm4, %v3369_v30, 0.0 }
 0x53e   :  { %2473 = vmatprep.subr.bf16.mxu1 %v2976_v36 }
 0x53f   :  { %v2470_v35 = vpack.c.bf16 %v2560_v32, %v2559_v33 }
 0x540   :  { %v1581_v38 = vpop.permute.xlu1 %1580 }
 0x543   :  { %v2585_v34 = vpop.eup %2584 }
 0x544   :  { %2355 = vmatmul.mubr.msk.f32.vlgmr.msra.gmra.mrb[12].mxu0 %vm719_vm4, %v2585_v34  ;;  %v1412_v13 = vsel %vm719_vm4, %v2585_v34, 0.0 }
 0x545   :  { %2472 = vmatpush3.bf16.xpose.msk.msra.mxu0 %vm3304_vm3, %v2470_v35  ;;  %2368 = vmatprep.mubr.msk.f32.mxu0 %vm2977_vm1, %v2978_v37 }
 0x546   :  { %2477 = vmatprep.subr.bf16.mxu0 %v2976_v36 }
 0x54c   :  { %2369 = vmatmul.mubr.msk.f32.vlgmr.msra.gmra.mrb[14].mxu0 %vm560_vm2, %v1581_v38 }
 0x54d   :  { %2382 = vmatprep.mubr.msk.f32.mxu0 %vm2977_vm1, %v2978_v37 }
 0x5b1   :  { %v3436_v39 = vpop.f32.mrb[14].mxu1 }
 0x5b2   :  { %v2335_v40 = vpop.f32.mrb[15].mxu1 }
 0x5ba   :  { %v1396_v41 = vpop.f32.mrb[16].mxu1 }
 0x5bb   :  { %v2349_v42 = vpop.f32.mrb[17].mxu1  ;;  %v1403_v43 = vsel %vm719_vm4, %v1396_v41, -inf }
 0x5bc   :  { %1404 = vmax.xlane.f32.xlu0 %v1403_v43  ;;  %v260_v42 = vld [vmem:[#allocation19 + $0x8] sm:$0xff] }
 0x5d2   :  { %2562 = vrot.lane.b32.xlu0 %v3317_v55, %s2981_s28 }
 0x5d6   :  { %1662 = vrot.lane.b32.xlu0 %v3324_v56, %s2981_s28  ;;  %v1064_v56 = vsel %vm719_vm4, %v3385_v51, 0.0 }
 0x617   :  { %v3443_v44 = vpop.f32.mrb[12].mxu0 }
 0x618   :  { %v2356_v45 = vpop.f32.mrb[13].mxu0 }
 0x619   :  { %v261_v45 = vld [vmem:[#allocation19 + $0x10] sm:$0xff] }
 0x61f   :  { %v1658_v47 = vpop.f32.mrb[14].mxu0 }
 0x620   :  { %v2370_v48 = vpop.f32.mrb[15].mxu0  ;;  %v1744_v50 = vsel %vm719_vm4, %v1658_v47, -inf }
 0x621   :  { %1745 = vmax.xlane.f32.xlu1 %v1744_v50 }
 0x632   :  { %2572 = vrot.lane.b32.xlu1 %v3341_v5, %s2981_s28 }
 0x649   :  { %v1405_v52 = vpop.xlane.xlu0 %1404 }
 0x64a   :  { %v1407_v57 = vsub.f32 %v1396_v41, %v1405_v52  ;;  %v259_v41 = vld [vmem:[#allocation19] sm:$0xff] }
 0x64b   :  { %v2483_v43 = vpack.c.bf16 %v260_v42, %v259_v41  ;;  %v2164_v41 = vld [vmem:[#allocation23] ss:$0 sm:$0xff] }
 0x64c   :  { %v1410_v59 = vmul.f32 1.442695, %v1407_v57 }
 0x64d   :  { %v2563_v60 = vpop.permute.xlu0 %2562 }
 0x64e   :  { %2586 = vpow2.f32 %v1410_v59  ;;  %v2565_v55 = vunpack.i.h.bf16 %v2563_v60  ;;  %v2564_v61 = vunpack.i.l.bf16 %v2563_v60 }
 0x650   :  { %v2474_v0 = vpack.c.bf16 %v2565_v55, %v2564_v61 }
 0x651   :  { %v1663_v5 = vpop.permute.xlu0 %1662 }
 0x656   :  { %1065 = vadd.xlane.f32.xlu1 %v1064_v56 }
 0x658   :  { %v2587_v62 = vpop.eup %2586 }
 0x659   :  { %2362 = vmatmul.mubr.msk.f32.vlgmr.msra.gmra.mrb[18].mxu1 %vm719_vm4, %v2587_v62  ;;  %v1415_v1 = vsel %vm719_vm4, %v2587_v62, 0.0 }
 0x65a   :  { %2476 = vmatpush3.bf16.xpose.msk.msra.mxu1 %vm3304_vm3, %v2474_v0  ;;  %1416 = vadd.xlane.f32.xlu1 %v1415_v1 }
 0x65b   :  { %2375 = vmatprep.mubr.msk.f32.mxu1 %vm2977_vm1, %v2978_v37  ;;  %2480 = vmatprep.subr.bf16.mxu1 %v2976_v36 }
 0x661   :  { %2376 = vmatmul.mubr.msk.f32.vlgmr.msra.gmra.mrb[20].mxu1 %vm560_vm2, %v1663_v5 }
 0x662   :  { %2389 = vmatprep.mubr.msk.f32.mxu1 %vm2977_vm1, %v2978_v37  ;;  %v1067_v37 = vsel %vm719_vm4, %v3414_v53, 0.0 }
 0x6ae   :  { %v1746_v51 = vpop.xlane.xlu1 %1745 }
 0x6af   :  { %v1750_v3 = vsub.f32 %v1658_v47, %v1746_v51  ;;  %v262_v47 = vld [vmem:[#allocation19 + $0x18] sm:$0xff] }
 0x6b0   :  { %v2487_v48 = vpack.c.bf16 %v262_v47, %v261_v45 }
 0x6b1   :  { %v1752_v36 = vmul.f32 1.442695, %v1750_v3 }
 0x6b2   :  { %v2573_v4 = vpop.permute.xlu1 %2572 }
 0x6b3   :  { %v2575_v6 = vunpack.i.h.bf16 %v2573_v4  ;;  %v2574_v7 = vunpack.i.l.bf16 %v2573_v4  ;;  %2588 = vpow2.f32 %v1752_v36 }
 0x6b5   :  { %v2481_v8 = vpack.c.bf16 %v2575_v6, %v2574_v7 }
 0x6b7   :  { %2482 = vmatpush3.bf16.msra.mxu1 %v2481_v8 }
 0x6bd   :  { %v2589_v14 = vpop.eup %2588 }
 0x6be   :  { %v1756_v15 = vsel %vm719_vm4, %v2589_v14, 0.0 }
 0x6e3   :  { %v1066_v17 = vpop.xlane.xlu1 %1065 }
 0x6e4   :  { %2590 = vrcp.f32 %v1066_v17 }
 0x6ee   :  { %v2591_v49 = vpop.eup %2590 }
 0x6ef   :  { %v1234_v18 = vmul.f32 %v2591_v49, %v3403_v63 }
 0x72c   :  { %v1574_v46 = vpop.f32.mrb[18].mxu1 }
 0x72d   :  { %v2363_v9 = vpop.f32.mrb[19].mxu1 }
 0x734   :  { %v1740_v10 = vpop.f32.mrb[20].mxu1 }
 0x735   :  { %v2377_v11 = vpop.f32.mrb[21].mxu1  ;;  %v1747_v12 = vsel %vm719_vm4, %v1740_v10, -inf }
 0x736   :  { %1748 = vmax.xlane.f32.xlu0 %v1747_v12 }
 0x74c   :  { %2567 = vrot.lane.b32.xlu0 %v3336_v2, %s2981_s28  ;;  %v1417_v2 = vpop.xlane.xlu1 %1416 }
 0x74d   :  { %2592 = vrcp.f32 %v1417_v2 }
 0x757   :  { %v2593_v53 = vpop.eup %2592 }
 0x758   :  { %v1579_v20 = vmul.f32 %v2593_v53, %v1574_v46 }
 0x76b   :  { %1068 = vadd.xlane.f32.xlu0 %v1067_v37 }
 0x76f   :  { %1413 = vadd.xlane.f32.xlu0 %v1412_v13  ;;  %v2162_v13 = vld [vmem:[#allocation20] ss:$0 sm:$0xff] }
 0x773   :  { %1757 = vadd.xlane.f32.xlu0 %v1756_v15 }
 0x777   :  { %733 = vadd.xlane.f32.xlu0 %v732_v16 }
 0x78d   :  { %1926 = vrot.lane.b32.xlu0 %v1234_v18, %s2963_s26 }
 0x791   :  { %1936 = vrot.lane.b32.xlu0 %v1579_v20, %s2982_s18 }
 0x7c3   :  { %v1749_v21 = vpop.xlane.xlu0 %1748 }
 0x7c4   :  { %v1751_v23 = vsub.f32 %v1740_v10, %v1749_v21 }
 0x7c6   :  { %v1754_v24 = vmul.f32 1.442695, %v1751_v23 }
 0x7c7   :  { %v2568_v25 = vpop.permute.xlu0 %2567 }
 0x7c8   :  { %2594 = vpow2.f32 %v1754_v24  ;;  %v2570_v28 = vunpack.i.h.bf16 %v2568_v25  ;;  %v2569_v26 = vunpack.i.l.bf16 %v2568_v25 }
 0x7ca   :  { %v2478_v27 = vpack.c.bf16 %v2570_v28, %v2569_v26 }
 0x7cc   :  { %2479 = vmatpush3.bf16.msra.mxu0 %v2478_v27 }
 0x7cd   :  { %2484 = vmatprep.subr.bf16.mxu0 %v2483_v43 }
 0x7cf   :  { %2383 = vmatmul.mubr.msk.f32.vlgmr.msra.gmra.mrb[16].mxu0 %vm719_vm4, %v2589_v14 }
 0x7d0   :  { %2486 = vmatpush3.bf16.msra.mxu0 %v2483_v43 }
 0x7d1   :  { %2488 = vmatprep.subr.bf16.mxu0 %v2487_v48 }
 0x7d2   :  { %v2595_v29 = vpop.eup %2594 }
 0x7d3   :  { %2390 = vmatmul.mubr.msk.f32.vlgmr.msra.gmra.mrb[22].mxu1 %vm719_vm4, %v2595_v29  ;;  %v1759_v63 = vsel %vm719_vm4, %v2595_v29, 0.0 }
 0x7d4   :  { %1760 = vadd.xlane.f32.xlu1 %v1759_v63  ;;  %2490 = vmatpush3.bf16.msra.mxu0 %v2487_v48 }
 0x7d8   :  { %736 = vadd.xlane.f32.xlu1 %v735_v31 }
 0x7f8   :  { %v1069_v32 = vpop.xlane.xlu0 %1068 }
 0x7f9   :  { %2596 = vrcp.f32 %v1069_v32 }
 0x7fc   :  { %v1414_v33 = vpop.xlane.xlu0 %1413 }
 0x7fd   :  { %2598 = vrcp.f32 %v1414_v33 }
 0x800   :  { %v1758_v30 = vpop.xlane.xlu0 %1757 }
 0x801   :  { %2600 = vrcp.f32 %v1758_v30 }
 0x803   :  { %v2597_v34 = vpop.eup %2596 }
 0x804   :  { %v1235_v35 = vmul.f32 %v2597_v34, %v3436_v39  ;;  %v734_v56 = vpop.xlane.xlu0 %733  ;;  %v2163_v34 = vld [vmem:[#allocation22] ss:$0 sm:$0xff] }
 0x806   :  { %1928 = vrot.lane.b32.xlu1 %v1235_v35, %s2963_s26 }
 0x807   :  { %v2599_v38 = vpop.eup %2598 }
 0x808   :  { %v1578_v40 = vmul.f32 %v2599_v38, %v3443_v44  ;;  %v1927_v5 = vpop.permute.xlu0 %1926 }
 0x80a   :  { %1934 = vrot.lane.b32.xlu1 %v1578_v40, %s2982_s18 }
 0x80b   :  { %v2601_v39 = vpop.eup %2600 }
 0x80c   :  { %v1937_v8 = vpop.permute.xlu0 %1936 }
 0x861   :  { %v1761_v50 = vpop.xlane.xlu1 %1760 }
 0x862   :  { %2602 = vrcp.f32 %v1761_v50 }
 0x863   :  { %2604 = vrcp.f32 %v734_v56 }
 0x865   :  { %v737_v62 = vpop.xlane.xlu1 %736 }
 0x866   :  { %2606 = vrcp.f32 %v737_v62 }
 0x86c   :  { %v2603_v44 = vpop.eup %2602 }
 0x86d   :  { %v2605_v1 = vpop.eup %2604 }
 0x86e   :  { %v886_v51 = vmul.f32 %v2605_v1, %v3394_v54 }
 0x870   :  { %v2607_v3 = vpop.eup %2606  ;;  %v1948_v6 = vsel %vm560_vm2, %v886_v51, %v1927_v5 }
 0x871   :  { %v887_v7 = vmul.f32 %v2607_v3, %v3396_v58 }
 0x878   :  { %v1929_v0 = vpop.permute.xlu1 %1928 }
 0x879   :  { %v1949_v10 = vsel %vm560_vm2, %v887_v7, %v1929_v0 }
 0x87a   :  { %v1951_v12 = vsel %vm719_vm4, %v1949_v10, %v1937_v8 }
 0x87c   :  { %v1935_v4 = vpop.permute.xlu1 %1934 }
 0x87d   :  { %v1950_v46 = vsel %vm719_vm4, %v1948_v6, %v1935_v4 }
 0x8a2   :  { %v1839_v52 = vpop.f32.mrb[16].mxu0 }
 0x8a3   :  { %v1922_v57 = vmul.f32 %v2601_v39, %v1839_v52  ;;  %v2384_v59 = vpop.f32.mrb[17].mxu0 }
 0x8a5   :  { %1942 = vrot.lane.b32.xlu1 %v1922_v57, %s2983_s19 }
 0x8a6   :  { %v1918_v60 = vpop.f32.mrb[22].mxu1 }
 0x8a7   :  { %v1923_v55 = vmul.f32 %v2603_v44, %v1918_v60  ;;  %v2391_v61 = vpop.f32.mrb[23].mxu1 }
 0x8a9   :  { %1944 = vrot.lane.b32.xlu0 %v1923_v55, %s2983_s19 }
 0x917   :  { %v1943_v9 = vpop.permute.xlu1 %1942 }
 0x918   :  { %v1953_v11 = vsel %vm1952_vm5, %v1950_v46, %v1943_v9 }
 0x919   :  { %2400 = vmatprep.mubr.msk.f32.mxu0 %vm272_vm0, %v1953_v11 }
 0x91b   :  { %v1945_v36 = vpop.permute.xlu0 %1944 }
 0x91c   :  { %v1954_v54 = vsel %vm1952_vm5, %v1951_v12, %v1945_v36 }
 0x91d   :  { %2401 = vmatmul.mubr.msk.f32.vlgmr.msra.gmra.mrb[18].mxu0 %vm272_vm0, %v1954_v54 }
 0x9f0   :  { %v2402_v37 = vpop.f32.mrb[18].mxu0 }
 0x9f1   :  { %v2037_v14 = vadd.f32 %v2402_v37, %v3284_v22  ;;  %v2027_v58 = vpop.f32.mrb[19].mxu0 }
 0x9f2   :  { %v2036_v15 = vadd.f32 %v2027_v58, %v3280_v19 }
 0x9f3   :  { %v2045_v16 = vadd.f32 %v2162_v13, %v2037_v14 }
 0x9f4   :  { %v2044_v17 = vadd.f32 %v2162_v13, %v2036_v15 }
 0x9f5   :  { %v2049_v2 = vsel %vm272_vm0, %v2045_v16, 0.0 }
 0x9f6   :  { %2050 = vadd.xlane.f32.xlu0 %v2049_v2  ;;  %v2046_v49 = vsel %vm272_vm0, %v2044_v17, 0.0 }
 0x9f7   :  { %2047 = vadd.xlane.f32.xlu1 %v2046_v49 }
 0xa83   :  { %v2051_v18 = vpop.xlane.xlu0 %2050 }
 0xa84   :  { %v2054_v53 = vmul.f32 0.03125, %v2051_v18  ;;  %v2048_v20 = vpop.xlane.xlu1 %2047 }
 0xa85   :  { %v2053_v21 = vmul.f32 0.03125, %v2048_v20 }
 0xa86   :  { %v2056_v23 = vsub.f32 %v2045_v16, %v2054_v53 }
 0xa87   :  { %v2055_v24 = vsub.f32 %v2044_v17, %v2053_v21 }
 0xa88   :  { %v2058_v25 = vmul.f32 %v2056_v23, %v2056_v23 }
 0xa89   :  { %v2057_v28 = vmul.f32 %v2055_v24, %v2055_v24 }
 0xa8a   :  { %v2062_v22 = vsel %vm272_vm0, %v2058_v25, 0.0 }
 0xa8b   :  { %2063 = vadd.xlane.f32.xlu1 %v2062_v22  ;;  %v2059_v19 = vsel %vm272_vm0, %v2057_v28, 0.0 }
 0xa8c   :  { %2060 = vadd.xlane.f32.xlu0 %v2059_v19 }
 0xb18   :  { %v2064_v26 = vpop.xlane.xlu1 %2063 }
 0xb19   :  { %v2066_v27 = vmul.f32 0.03125, %v2064_v26  ;;  %v2061_v29 = vpop.xlane.xlu0 %2060 }
 0xb1a   :  { %v2065_v63 = vmul.f32 0.03125, %v2061_v29 }
 0xb1b   :  { %v2068_v31 = vadd.f32 1e-05, %v2066_v27 }
 0xb1c   :  { %v2067_v32 = vadd.f32 1e-05, %v2065_v63 }
 0xb1d   :  { %2608 = vrsqrt.f32 %v2068_v31 }
 0xb1e   :  { %2610 = vrsqrt.f32 %v2067_v32 }
 0xb27   :  { %v2609_v33 = vpop.eup %2608 }
 0xb28   :  { %v2611_v35 = vpop.eup %2610  ;;  %v2072_v38 = vmul.f32 %v2609_v33, %v2056_v23 }
 0xb29   :  { %v2071_v40 = vmul.f32 %v2611_v35, %v2055_v24 }
 0xb2a   :  { %v2080_v42 = vmul.f32 %v2163_v34, %v2072_v38 }
 0xb2b   :  { %v2079_v43 = vmul.f32 %v2163_v34, %v2071_v40 }
 0xb2c   :  { %v2088_v30 = vadd.f32 %v2164_v41, %v2080_v42 }
 0xb2d   :  { %v2087_v45 = vadd.f32 %v2164_v41, %v2079_v43 }
 0xb2e   :  { %2090 = vst.msk [vmem:[#allocation25 + $0x8] sm:$0xff] %vm272_vm0, %v2088_v30 }
 0xb2f   :  { %2089 = vst.msk [vmem:[#allocation25] sm:$0xff] %vm272_vm0, %v2087_v45 }
 0xb30   :  { %2931 = shalt.err (!%p2928_p4)
}
 0xb31   :  { %s2932_s1 = scalar_lea.hbm %s3524_s14, 256 }
 0xb32   :  { %p2933_p5 = scmp.ne.s32.totalorder %s3524_s14, %s2932_s1  ;;  %p2936_p6 = scmp.lt.u32.totalorder %s2932_s1, %s3524_s14 }
 0xb34   :  { %p2938_p7 = pnand %p2936_p6, %p2933_p5 }
 0xb36   :  { %2941 = shalt.err (!%p2938_p7)
}
 0xb37   :  { %2102 = dma.vmem_to_hbm [thread:$0]  %s2097_s21, 256, %s3524_s14, [#allocation4], %s2962_s25, %s2962_s25, %s2963_s26  }
 0xb38   :  { %2958 = dma.done.wait [#allocation4], 256  }
 0xb39   :  { %2959 = vsyncadd [#allocation4], 4294967040 }
 0xb3a   :  { %2106 = vsyncpa [#allocation3], 1 }
 0xb3b   :  { %2107 = vsyncpa [#allocation6], 1 }
 0xb3c   :  { %2108 = vsyncpa [#allocation9], 1 }
 0xb3d   :  { %2109 = vsyncpa [#allocation12], 1 }
 0xb3e   :  { %2110 = vsyncpa [#allocation15], 1 }
 0xb3f   :  { %2111 = vsyncpa [#allocation18], 1 }
 0xb40   :  { %2112 = vsyncpa [#allocation21], 1 }
 0xb41   :  { %2113 = vsyncpa [#allocation24], 1 }
 0xb42   :  { %2114 = vsyncpa [#allocation4], 1 }

</bundles_post_ra>
